<compile_context>
chip_gen: v7x
topology: tpu7x:2x2x1
jax: 0.10.0
libtpu: 0.0.40
codegen_flags: <defaults>
</compile_context>

<pallas_src>
import functools
import math

import jax
import jax.numpy as jnp
import numpy as np
from jax.experimental import pallas as pl
from jax.experimental.pallas import tpu as pltpu


# ----------------------------- in-kernel helpers -----------------------------

def _layer_norm(x, gamma, beta, eps=1e-5):
    mu = jnp.mean(x, axis=-1, keepdims=True)
    var = jnp.mean((x - mu) ** 2, axis=-1, keepdims=True)
    return (x - mu) * jax.lax.rsqrt(var + eps) * gamma + beta


def _ffn(x, w1, b1, w2, b2):
    h = jnp.maximum(jnp.dot(x, w1, preferred_element_type=jnp.float32) + b1, 0.0)
    return jnp.dot(h, w2, preferred_element_type=jnp.float32) + b2


def _mha(x, wqkv, bqkv, wo, bo, *, tb, seq, num_heads):
    # x: (R, D) with R = tb*seq rows ordered (sequence, position).
    R, D = x.shape
    depth = D // num_heads
    scale = 1.0 / math.sqrt(depth)

    # Fused QKV projection: one wide matmul instead of three.
    qkv = jnp.dot(x, wqkv, preferred_element_type=jnp.float32) + bqkv        # (R, 3D)

    def split_heads(base):
        # lane-slices of qkv -> (num_heads * tb, seq, depth), head-major batch
        return jnp.concatenate(
            [qkv[:, base + h * depth: base + (h + 1) * depth].reshape(tb, seq, depth)
             for h in range(num_heads)], axis=0)

    q = split_heads(0)
    k = split_heads(D)
    v = split_heads(2 * D)

    # Single batched attention over (head, sequence) batch dim.
    logits = jnp.einsum("bqd,bkd->bqk", q, k,
                        preferred_element_type=jnp.float32) * scale
    logits = logits - jnp.max(logits, axis=-1, keepdims=True)
    e = jnp.exp(logits)
    attn = e / jnp.sum(e, axis=-1, keepdims=True)
    ctx = jnp.einsum("bqk,bkd->bqd", attn, v,
                     preferred_element_type=jnp.float32)                     # (H*tb, seq, depth)

    # Heads back to contiguous feature slices, then ONE output projection.
    ctx = jnp.concatenate(
        [ctx[h * tb:(h + 1) * tb].reshape(R, depth) for h in range(num_heads)],
        axis=-1)                                                             # (R, D)
    return jnp.dot(ctx, wo, preferred_element_type=jnp.float32) + bo


# --------------------------------- kernel ------------------------------------

def transformer_encoder_kernel(
        alpha_ref,                       # SMEM (L, 3) ReZero alphas
        x_ref, posb_ref, embw_ref,       # (TB,S,F), (R,D), (F,D)
        f0w1_ref, f0b1_ref, f0w2_ref, f0b2_ref,
        wqkv_ref, bqkv_ref, wo_ref, bo_ref,
        f1w1_ref, f1b1_ref, f1w2_ref, f1b2_ref,
        g1_ref, be1_ref, g2_ref, be2_ref, g3_ref, be3_ref,
        out_ref,                         # (TB, D)
        h_ref,                           # VMEM scratch (R, D): carries activations over the layer axis
        *, tb, seq, num_heads):
    l = pl.program_id(1)
    R = tb * seq

    # First layer step: embedding + folded (pos-enc + embedding bias) term.
    @pl.when(l == 0)
    def _():
        x2 = x_ref[...].reshape(R, x_ref.shape[-1])
        h_ref[...] = (jnp.dot(x2, embw_ref[...], preferred_element_type=jnp.float32)
                      + posb_ref[...])
        # TODO(synk): nn.Dropout is stochastic only in training mode; inference identity here.

    h = h_ref[...]
    a0 = alpha_ref[l, 0]                 # scalar reads from SMEM
    a1 = alpha_ref[l, 1]
    a2 = alpha_ref[l, 2]

    f = _ffn(h, f0w1_ref[0], f0b1_ref[0], f0w2_ref[0], f0b2_ref[0])
    out0 = _layer_norm(h + a0 * f, g1_ref[0], be1_ref[0])

    attn = _mha(out0, wqkv_ref[0], bqkv_ref[0], wo_ref[0], bo_ref[0],
                tb=tb, seq=seq, num_heads=num_heads)
    out1 = _layer_norm(out0 + a1 * attn, g2_ref[0], be2_ref[0])

    f = _ffn(out1, f1w1_ref[0], f1b1_ref[0], f1w2_ref[0], f1b2_ref[0])
    out2 = _layer_norm(out1 + a2 * f, g3_ref[0], be3_ref[0])

    h_ref[...] = out2

    # Last layer step: mean-pool over the sequence axis, emit TB pooled rows.
    @pl.when(l == pl.num_programs(1) - 1)
    def _():
        out_ref[...] = jnp.mean(out2.reshape(tb, seq, -1), axis=1)


# --------------------------------- wrapper -----------------------------------

def transformer_encoder(x, pos_enc, params, *, num_layers, num_heads, tb=None):
    B, S, F = x.shape
    D = params["emb_w"].shape[1]
    dff = params["f0w1"].shape[-1]
    if tb is None:
        tb = min(B, max(1, 128 // S))       # aim for >=128 rows per grid step
    assert B % tb == 0, "batch must be divisible by the per-step sequence tile"
    nb = B // tb
    R = tb * S

    # ---- wrapper-side fusions / layout prep (pure data re-arrangement) ------
    wqkv = jnp.concatenate([params["wq"], params["wk"], params["wv"]], axis=-1)   # (L, D, 3D)
    bqkv = jnp.concatenate([params["bq"], params["bk"], params["bv"]], axis=-1)   # (L, 1, 3D)
    pos_bias = jnp.tile(pos_enc + params["emb_b"], (tb, 1))                       # (R, D)
    alpha = params["alpha"]                                                       # (L, 3) -> SMEM

    layer_arrays = [params["f0w1"], params["f0b1"], params["f0w2"], params["f0b2"],
                    wqkv, bqkv, params["wo"], params["bo"],
                    params["f1w1"], params["f1b1"], params["f1w2"], params["f1b2"],
                    params["g1"], params["be1"], params["g2"], params["be2"],
                    params["g3"], params["be3"]]

    def per_layer_spec(a):
        blk = (1,) + tuple(a.shape[1:])
        return pl.BlockSpec(blk, lambda i, l, n=len(blk) - 1: (l,) + (0,) * n)

    def resident_spec(a):
        n = a.ndim
        return pl.BlockSpec(tuple(a.shape), lambda i, l, n=n: (0,) * n)

    in_specs = ([pl.BlockSpec(memory_space=pltpu.MemorySpace.SMEM),       # alpha -> SMEM
                 pl.BlockSpec((tb, S, F), lambda i, l: (i, 0, 0)),        # TB sequences / step
                 resident_spec(pos_bias),
                 resident_spec(params["emb_w"])]
                + [per_layer_spec(a) for a in layer_arrays])              # one layer / step

    kernel = functools.partial(transformer_encoder_kernel,
                               tb=tb, seq=S, num_heads=num_heads)

    # Explicit VMEM budget from the actual footprint (with headroom, capped
    # below physical VMEM on v7x).
    weight_bytes = 4 * (sum(int(np.prod(a.shape[1:])) for a in layer_arrays)
                        + int(params["emb_w"].size) + int(pos_bias.size))
    act_bytes = 4 * R * max(D, dff, 3 * D) * 6
    vmem_limit = int(min(48 * 2**20, max(16 * 2**20, 4 * (weight_bytes + act_bytes))))

    return pl.pallas_call(
        kernel,
        out_shape=jax.ShapeDtypeStruct((B, D), jnp.float32),
        grid=(nb, num_layers),
        in_specs=in_specs,
        out_specs=pl.BlockSpec((tb, D), lambda i, l: (i, 0)),
        scratch_shapes=[pltpu.VMEM((R, D), jnp.float32)],
        compiler_params=pltpu.CompilerParams(
            dimension_semantics=("parallel", "arbitrary"),
            vmem_limit_bytes=vmem_limit),
    )(alpha, x, pos_bias, params["emb_w"], *layer_arrays)


# ------------------------- parameters & positional enc ------------------------

def positional_encoding(position, d_model):
    pos = jnp.arange(position, dtype=jnp.float32)[:, None]
    i = jnp.arange(d_model, dtype=jnp.float32)[None, :]
    angle_rates = 1.0 / jnp.power(10000.0, (2.0 * jnp.floor(i / 2.0)) / d_model)
    ang = pos * angle_rates
    even = (jnp.arange(d_model) % 2) == 0
    return jnp.where(even[None, :], jnp.sin(ang), jnp.cos(ang))     # (position, d_model)


def init_params(key, F, D, dff, L):
    keys = jax.random.split(key, 19)

    def w(k, shape, scale=0.1):
        return (scale * jax.random.normal(k, shape)).astype(jnp.float32)

    p = {
        "emb_w": w(keys[0], (F, D)),      "emb_b": w(keys[1], (1, D)),
        "f0w1": w(keys[2], (L, D, dff)),  "f0b1": w(keys[3], (L, 1, dff)),
        "f0w2": w(keys[4], (L, dff, D)),  "f0b2": w(keys[5], (L, 1, D)),
        "wq": w(keys[6], (L, D, D)),      "bq": w(keys[7], (L, 1, D)),
        "wk": w(keys[8], (L, D, D)),      "bk": w(keys[9], (L, 1, D)),
        "wv": w(keys[10], (L, D, D)),     "bv": w(keys[11], (L, 1, D)),
        "wo": w(keys[12], (L, D, D)),     "bo": w(keys[13], (L, 1, D)),
        "f1w1": w(keys[14], (L, D, dff)), "f1b1": w(keys[15], (L, 1, dff)),
        "f1w2": w(keys[16], (L, dff, D)), "f1b2": w(keys[17], (L, 1, D)),
        # ReZero alphas init to zero in torch; use nonzero values here so the
        # FFN / attention branches actually contribute in this synthetic test.
        "alpha": w(keys[18], (L, 3), scale=0.5),
    }
    for name in ("g1", "g2", "g3"):
        p[name] = jnp.ones((L, 1, D), jnp.float32)
    for name in ("be1", "be2", "be3"):
        p[name] = jnp.zeros((L, 1, D), jnp.float32)
    return p


# ------------------------------ pure-JAX reference ----------------------------

def reference_forward(x, pos_enc, params, num_layers, num_heads):
    def ln(z, g, b, eps=1e-5):
        mu = z.mean(-1, keepdims=True)
        var = ((z - mu) ** 2).mean(-1, keepdims=True)
        return (z - mu) / jnp.sqrt(var + eps) * g + b

    def ffn(z, w1, b1, w2, b2):
        return jnp.maximum(z @ w1 + b1, 0.0) @ w2 + b2

    B, S, _ = x.shape
    D = params["emb_w"].shape[1]
    H = num_heads
    depth = D // H

    h = x @ params["emb_w"] + params["emb_b"]
    h = h + pos_enc[None]
    for l in range(num_layers):
        a = params["alpha"][l]
        f = ffn(h, params["f0w1"][l], params["f0b1"][l], params["f0w2"][l], params["f0b2"][l])
        out0 = ln(h + a[0] * f, params["g1"][l], params["be1"][l])

        q = (out0 @ params["wq"][l] + params["bq"][l]).reshape(B, S, H, depth).transpose(0, 2, 1, 3)
        k = (out0 @ params["wk"][l] + params["bk"][l]).reshape(B, S, H, depth).transpose(0, 2, 1, 3)
        v = (out0 @ params["wv"][l] + params["bv"][l]).reshape(B, S, H, depth).transpose(0, 2, 1, 3)
        logits = jnp.einsum("bhqd,bhkd->bhqk", q, k) / math.sqrt(depth)
        attn_w = jax.nn.softmax(logits, axis=-1)
        ctx = jnp.einsum("bhqk,bhkd->bhqd", attn_w, v).transpose(0, 2, 1, 3).reshape(B, S, D)
        attn = ctx @ params["wo"][l] + params["bo"][l]
        out1 = ln(out0 + a[1] * attn, params["g2"][l], params["be2"][l])

        f = ffn(out1, params["f1w1"][l], params["f1b1"][l], params["f1w2"][l], params["f1b2"][l])
        h = ln(out1 + a[2] * f, params["g3"][l], params["be3"][l])
    return h.mean(axis=1)


# ----------------------------------- main -------------------------------------

if __name__ == "__main__":
    B, S, F = 16, 8, 16          # batch, seq len, input_feature
    D, H, dff, L = 32, 4, 64, 2  # d_model, num_heads, dff, num_layers
    max_position = 64

    key = jax.random.PRNGKey(0)
    kx, kp = jax.random.split(key)
    x = jax.random.normal(kx, (B, S, F), dtype=jnp.float32)
    params = init_params(kp, F, D, dff, L)
    pos_enc = positional_encoding(max_position, D)[:S, :]           # (S, D)

    # tb=8 sequences per grid step -> 64 rows/step, 2 parallel row blocks.
    out = transformer_encoder(x, pos_enc, params, num_layers=L, num_heads=H, tb=8)
    out = jax.block_until_ready(out)

    ref = reference_forward(x, pos_enc, params, L, H)
    assert out.shape == (B, D)
    np.testing.assert_allclose(np.asarray(out), np.asarray(ref), rtol=2e-2, atol=2e-2)

    print("KERNEL_OK")
</pallas_src>

<mosaic_0001>
module attributes {stable_mosaic.version = 11 : i64} {
  func.func @transformer_encoder_kernel(%arg0: i32, %arg1: i32, %arg2: memref<2x3xf32, #tpu.memory_space<smem>>, %arg3: memref<8x8x16xf32, #tpu.memory_space<vmem>>, %arg4: memref<64x32xf32, #tpu.memory_space<vmem>>, %arg5: memref<16x32xf32, #tpu.memory_space<vmem>>, %arg6: memref<1x32x64xf32, #tpu.memory_space<vmem>>, %arg7: memref<1x1x64xf32, #tpu.memory_space<vmem>>, %arg8: memref<1x64x32xf32, #tpu.memory_space<vmem>>, %arg9: memref<1x1x32xf32, #tpu.memory_space<vmem>>, %arg10: memref<1x32x96xf32, #tpu.memory_space<vmem>>, %arg11: memref<1x1x96xf32, #tpu.memory_space<vmem>>, %arg12: memref<1x32x32xf32, #tpu.memory_space<vmem>>, %arg13: memref<1x1x32xf32, #tpu.memory_space<vmem>>, %arg14: memref<1x32x64xf32, #tpu.memory_space<vmem>>, %arg15: memref<1x1x64xf32, #tpu.memory_space<vmem>>, %arg16: memref<1x64x32xf32, #tpu.memory_space<vmem>>, %arg17: memref<1x1x32xf32, #tpu.memory_space<vmem>>, %arg18: memref<1x1x32xf32, #tpu.memory_space<vmem>>, %arg19: memref<1x1x32xf32, #tpu.memory_space<vmem>>, %arg20: memref<1x1x32xf32, #tpu.memory_space<vmem>>, %arg21: memref<1x1x32xf32, #tpu.memory_space<vmem>>, %arg22: memref<1x1x32xf32, #tpu.memory_space<vmem>>, %arg23: memref<1x1x32xf32, #tpu.memory_space<vmem>>, %arg24: memref<8x32xf32, #tpu.memory_space<vmem>>, %arg25: memref<64x32xf32, #tpu.memory_space<vmem>>) attributes {dimension_semantics = [#tpu.dimension_semantics<parallel>, #tpu.dimension_semantics<arbitrary>], iteration_bounds = array<i64: 2, 2>, scalar_prefetch = 0 : i64, scratch_operands = 1 : i64, tpu.core_type = #tpu.core_type<tc>, window_params = [{transform_indices = @transform_0, window_bounds = array<i64: 2, 3>}, {transform_indices = @transform_1, window_bounds = array<i64: 8, 8, 16>}, {pipeline_mode = #tpu.pipeline_mode<synchronous>, transform_indices = @transform_2, window_bounds = array<i64: 64, 32>}, {pipeline_mode = #tpu.pipeline_mode<synchronous>, transform_indices = @transform_3, window_bounds = array<i64: 16, 32>}, {transform_indices = @transform_4, window_bounds = array<i64: 1, 32, 64>}, {transform_indices = @transform_5, window_bounds = array<i64: 1, 1, 64>}, {transform_indices = @transform_6, window_bounds = array<i64: 1, 64, 32>}, {transform_indices = @transform_7, window_bounds = array<i64: 1, 1, 32>}, {transform_indices = @transform_8, window_bounds = array<i64: 1, 32, 96>}, {transform_indices = @transform_9, window_bounds = array<i64: 1, 1, 96>}, {transform_indices = @transform_10, window_bounds = array<i64: 1, 32, 32>}, {transform_indices = @transform_11, window_bounds = array<i64: 1, 1, 32>}, {transform_indices = @transform_12, window_bounds = array<i64: 1, 32, 64>}, {transform_indices = @transform_13, window_bounds = array<i64: 1, 1, 64>}, {transform_indices = @transform_14, window_bounds = array<i64: 1, 64, 32>}, {transform_indices = @transform_15, window_bounds = array<i64: 1, 1, 32>}, {transform_indices = @transform_16, window_bounds = array<i64: 1, 1, 32>}, {transform_indices = @transform_17, window_bounds = array<i64: 1, 1, 32>}, {transform_indices = @transform_18, window_bounds = array<i64: 1, 1, 32>}, {transform_indices = @transform_19, window_bounds = array<i64: 1, 1, 32>}, {transform_indices = @transform_20, window_bounds = array<i64: 1, 1, 32>}, {transform_indices = @transform_21, window_bounds = array<i64: 1, 1, 32>}, {transform_indices = @transform_22, window_bounds = array<i64: 8, 32>}]} {
    %c0_i32 = arith.constant 0 : i32
    %0 = arith.cmpi eq, %arg1, %c0_i32 : i32
    %1 = arith.extui %0 : i1 to i32
    %c0_i32_0 = arith.constant 0 : i32
    %2 = arith.cmpi ne, %1, %c0_i32_0 : i32
    scf.if %2 {
      %c0_87 = arith.constant 0 : index
      %c0_88 = arith.constant 0 : index
      %c0_89 = arith.constant 0 : index
      %196 = vector.load %arg3[%c0_87, %c0_88, %c0_89] : memref<8x8x16xf32, #tpu.memory_space<vmem>>, vector<8x8x16xf32>
      %197 = vector.shape_cast %196 : vector<8x8x16xf32> to vector<64x16xf32>
      %c0_90 = arith.constant 0 : index
      %c0_91 = arith.constant 0 : index
      %198 = vector.load %arg5[%c0_90, %c0_91] : memref<16x32xf32, #tpu.memory_space<vmem>>, vector<16x32xf32>
      %cst_92 = arith.constant dense<0.000000e+00> : vector<64x32xf32>
      %199 = tpu.matmul %197, %198, %cst_92 {dimension_numbers = #tpu.dot_dimension_numbers<[1], [0], [0], [1], [0, 0, 1, 1], [], []>} : vector<64x16xf32>, vector<16x32xf32>, vector<64x32xf32> -> vector<64x32xf32>
      %c0_93 = arith.constant 0 : index
      %c0_94 = arith.constant 0 : index
      %200 = vector.load %arg4[%c0_93, %c0_94] : memref<64x32xf32, #tpu.memory_space<vmem>>, vector<64x32xf32>
      %201 = arith.addf %199, %200 : vector<64x32xf32>
      %c0_95 = arith.constant 0 : index
      %c0_96 = arith.constant 0 : index
      %202 = vector.load %arg25[%c0_95, %c0_96] : memref<64x32xf32, #tpu.memory_space<vmem>>, vector<64x32xf32>
      tpu.vector_store %arg25[%c0_95, %c0_96], %201 {strides = array<i32>} : memref<64x32xf32, #tpu.memory_space<vmem>>, vector<64x32xf32>,
    } else {
    }
    %c0 = arith.constant 0 : index
    %c0_1 = arith.constant 0 : index
    %3 = vector.load %arg25[%c0, %c0_1] : memref<64x32xf32, #tpu.memory_space<vmem>>, vector<64x32xf32>
    %4 = arith.index_cast %arg1 : i32 to index
    %c0_2 = arith.constant 0 : index
    %5 = memref.load %arg2[%4, %c0_2] : memref<2x3xf32, #tpu.memory_space<smem>>
    %6 = arith.index_cast %arg1 : i32 to index
    %c1 = arith.constant 1 : index
    %7 = memref.load %arg2[%6, %c1] : memref<2x3xf32, #tpu.memory_space<smem>>
    %8 = arith.index_cast %arg1 : i32 to index
    %c2 = arith.constant 2 : index
    %9 = memref.load %arg2[%8, %c2] : memref<2x3xf32, #tpu.memory_space<smem>>
    %c0_3 = arith.constant 0 : index
    %c0_4 = arith.constant 0 : index
    %c0_5 = arith.constant 0 : index
    %10 = vector.load %arg6[%c0_3, %c0_4, %c0_5] : memref<1x32x64xf32, #tpu.memory_space<vmem>>, vector<1x32x64xf32>
    %11 = vector.shape_cast %10 : vector<1x32x64xf32> to vector<32x64xf32>
    %c0_6 = arith.constant 0 : index
    %c0_7 = arith.constant 0 : index
    %c0_8 = arith.constant 0 : index
    %12 = vector.load %arg7[%c0_6, %c0_7, %c0_8] : memref<1x1x64xf32, #tpu.memory_space<vmem>>, vector<1x1x64xf32>
    %13 = vector.shape_cast %12 : vector<1x1x64xf32> to vector<1x64xf32>
    %c0_9 = arith.constant 0 : index
    %c0_10 = arith.constant 0 : index
    %c0_11 = arith.constant 0 : index
    %14 = vector.load %arg8[%c0_9, %c0_10, %c0_11] : memref<1x64x32xf32, #tpu.memory_space<vmem>>, vector<1x64x32xf32>
    %15 = vector.shape_cast %14 : vector<1x64x32xf32> to vector<64x32xf32>
    %c0_12 = arith.constant 0 : index
    %c0_13 = arith.constant 0 : index
    %c0_14 = arith.constant 0 : index
    %16 = vector.load %arg9[%c0_12, %c0_13, %c0_14] : memref<1x1x32xf32, #tpu.memory_space<vmem>>, vector<1x1x32xf32>
    %17 = vector.shape_cast %16 : vector<1x1x32xf32> to vector<1x32xf32>
    %cst = arith.constant dense<0.000000e+00> : vector<64x64xf32>
    %18 = tpu.matmul %3, %11, %cst {dimension_numbers = #tpu.dot_dimension_numbers<[1], [0], [0], [1], [0, 0, 1, 1], [], []>} : vector<64x32xf32>, vector<32x64xf32>, vector<64x64xf32> -> vector<64x64xf32>
    %19 = vector.broadcast %13 : vector<1x64xf32> to vector<64x64xf32>
    %20 = arith.addf %18, %19 : vector<64x64xf32>
    %cst_15 = arith.constant 0.000000e+00 : f32
    %21 = vector.broadcast %cst_15 : f32 to vector<64x64xf32>
    %22 = arith.maximumf %20, %21 : vector<64x64xf32>
    %cst_16 = arith.constant dense<0.000000e+00> : vector<64x32xf32>
    %23 = tpu.matmul %22, %15, %cst_16 {dimension_numbers = #tpu.dot_dimension_numbers<[1], [0], [0], [1], [0, 0, 1, 1], [], []>} : vector<64x64xf32>, vector<64x32xf32>, vector<64x32xf32> -> vector<64x32xf32>
    %24 = vector.broadcast %17 : vector<1x32xf32> to vector<64x32xf32>
    %25 = arith.addf %23, %24 : vector<64x32xf32>
    %26 = vector.broadcast %5 : f32 to vector<64x32xf32>
    %27 = arith.mulf %26, %25 : vector<64x32xf32>
    %28 = arith.addf %3, %27 : vector<64x32xf32>
    %c0_17 = arith.constant 0 : index
    %c0_18 = arith.constant 0 : index
    %c0_19 = arith.constant 0 : index
    %29 = vector.load %arg18[%c0_17, %c0_18, %c0_19] : memref<1x1x32xf32, #tpu.memory_space<vmem>>, vector<1x1x32xf32>
    %30 = vector.shape_cast %29 : vector<1x1x32xf32> to vector<1x32xf32>
    %c0_20 = arith.constant 0 : index
    %c0_21 = arith.constant 0 : index
    %c0_22 = arith.constant 0 : index
    %31 = vector.load %arg19[%c0_20, %c0_21, %c0_22] : memref<1x1x32xf32, #tpu.memory_space<vmem>>, vector<1x1x32xf32>
    %32 = vector.shape_cast %31 : vector<1x1x32xf32> to vector<1x32xf32>
    %cst_23 = arith.constant dense<0.000000e+00> : vector<64xf32>
    %33 = vector.multi_reduction <add>, %28, %cst_23 [1] : vector<64x32xf32> to vector<64xf32>
    %34 = vector.shape_cast %33 : vector<64xf32> to vector<64x1xf32>
    %cst_24 = arith.constant 3.200000e+01 : f32
    %35 = vector.broadcast %cst_24 : f32 to vector<64x1xf32>
    %36 = arith.divf %34, %35 : vector<64x1xf32>
    %37 = vector.broadcast %36 : vector<64x1xf32> to vector<64x32xf32>
    %38 = arith.subf %28, %37 : vector<64x32xf32>
    %39 = arith.mulf %38, %38 : vector<64x32xf32>
    %cst_25 = arith.constant dense<0.000000e+00> : vector<64xf32>
    %40 = vector.multi_reduction <add>, %39, %cst_25 [1] : vector<64x32xf32> to vector<64xf32>
    %41 = vector.shape_cast %40 : vector<64xf32> to vector<64x1xf32>
    %cst_26 = arith.constant 3.200000e+01 : f32
    %42 = vector.broadcast %cst_26 : f32 to vector<64x1xf32>
    %43 = arith.divf %41, %42 : vector<64x1xf32>
    %44 = vector.broadcast %36 : vector<64x1xf32> to vector<64x32xf32>
    %45 = arith.subf %28, %44 : vector<64x32xf32>
    %cst_27 = arith.constant 9.99999974E-6 : f32
    %46 = vector.broadcast %cst_27 : f32 to vector<64x1xf32>
    %47 = arith.addf %43, %46 : vector<64x1xf32>
    %48 = math.rsqrt %47 : vector<64x1xf32>
    %49 = vector.broadcast %48 : vector<64x1xf32> to vector<64x32xf32>
    %50 = arith.mulf %45, %49 : vector<64x32xf32>
    %51 = vector.broadcast %30 : vector<1x32xf32> to vector<64x32xf32>
    %52 = arith.mulf %50, %51 : vector<64x32xf32>
    %53 = vector.broadcast %32 : vector<1x32xf32> to vector<64x32xf32>
    %54 = arith.addf %52, %53 : vector<64x32xf32>
    %c0_28 = arith.constant 0 : index
    %c0_29 = arith.constant 0 : index
    %c0_30 = arith.constant 0 : index
    %55 = vector.load %arg10[%c0_28, %c0_29, %c0_30] : memref<1x32x96xf32, #tpu.memory_space<vmem>>, vector<1x32x96xf32>
    %56 = vector.shape_cast %55 : vector<1x32x96xf32> to vector<32x96xf32>
    %c0_31 = arith.constant 0 : index
    %c0_32 = arith.constant 0 : index
    %c0_33 = arith.constant 0 : index
    %57 = vector.load %arg11[%c0_31, %c0_32, %c0_33] : memref<1x1x96xf32, #tpu.memory_space<vmem>>, vector<1x1x96xf32>
    %58 = vector.shape_cast %57 : vector<1x1x96xf32> to vector<1x96xf32>
    %c0_34 = arith.constant 0 : index
    %c0_35 = arith.constant 0 : index
    %c0_36 = arith.constant 0 : index
    %59 = vector.load %arg12[%c0_34, %c0_35, %c0_36] : memref<1x32x32xf32, #tpu.memory_space<vmem>>, vector<1x32x32xf32>
    %60 = vector.shape_cast %59 : vector<1x32x32xf32> to vector<32x32xf32>
    %c0_37 = arith.constant 0 : index
    %c0_38 = arith.constant 0 : index
    %c0_39 = arith.constant 0 : index
    %61 = vector.load %arg13[%c0_37, %c0_38, %c0_39] : memref<1x1x32xf32, #tpu.memory_space<vmem>>, vector<1x1x32xf32>
    %62 = vector.shape_cast %61 : vector<1x1x32xf32> to vector<1x32xf32>
    %cst_40 = arith.constant dense<0.000000e+00> : vector<64x96xf32>
    %63 = tpu.matmul %54, %56, %cst_40 {dimension_numbers = #tpu.dot_dimension_numbers<[1], [0], [0], [1], [0, 0, 1, 1], [], []>} : vector<64x32xf32>, vector<32x96xf32>, vector<64x96xf32> -> vector<64x96xf32>
    %64 = vector.broadcast %58 : vector<1x96xf32> to vector<64x96xf32>
    %65 = arith.addf %63, %64 : vector<64x96xf32>
    %66 = vector.extract_strided_slice %65 {offsets = [0, 0], sizes = [64, 8], strides = [1, 1]} : vector<64x96xf32> to vector<64x8xf32>
    %67 = vector.shape_cast %66 : vector<64x8xf32> to vector<8x8x8xf32>
    %68 = vector.extract_strided_slice %65 {offsets = [0, 8], sizes = [64, 8], strides = [1, 1]} : vector<64x96xf32> to vector<64x8xf32>
    %69 = vector.shape_cast %68 : vector<64x8xf32> to vector<8x8x8xf32>
    %70 = vector.extract_strided_slice %65 {offsets = [0, 16], sizes = [64, 8], strides = [1, 1]} : vector<64x96xf32> to vector<64x8xf32>
    %71 = vector.shape_cast %70 : vector<64x8xf32> to vector<8x8x8xf32>
    %72 = vector.extract_strided_slice %65 {offsets = [0, 24], sizes = [64, 8], strides = [1, 1]} : vector<64x96xf32> to vector<64x8xf32>
    %73 = vector.shape_cast %72 : vector<64x8xf32> to vector<8x8x8xf32>
    %74 = tpu.concatenate %67, %69, %71, %73 in 0 : vector<8x8x8xf32>, vector<8x8x8xf32>, vector<8x8x8xf32>, vector<8x8x8xf32> -> vector<32x8x8xf32>
    %75 = vector.extract_strided_slice %65 {offsets = [0, 32], sizes = [64, 8], strides = [1, 1]} : vector<64x96xf32> to vector<64x8xf32>
    %76 = vector.shape_cast %75 : vector<64x8xf32> to vector<8x8x8xf32>
    %77 = vector.extract_strided_slice %65 {offsets = [0, 40], sizes = [64, 8], strides = [1, 1]} : vector<64x96xf32> to vector<64x8xf32>
    %78 = vector.shape_cast %77 : vector<64x8xf32> to vector<8x8x8xf32>
    %79 = vector.extract_strided_slice %65 {offsets = [0, 48], sizes = [64, 8], strides = [1, 1]} : vector<64x96xf32> to vector<64x8xf32>
    %80 = vector.shape_cast %79 : vector<64x8xf32> to vector<8x8x8xf32>
    %81 = vector.extract_strided_slice %65 {offsets = [0, 56], sizes = [64, 8], strides = [1, 1]} : vector<64x96xf32> to vector<64x8xf32>
    %82 = vector.shape_cast %81 : vector<64x8xf32> to vector<8x8x8xf32>
    %83 = tpu.concatenate %76, %78, %80, %82 in 0 : vector<8x8x8xf32>, vector<8x8x8xf32>, vector<8x8x8xf32>, vector<8x8x8xf32> -> vector<32x8x8xf32>
    %84 = vector.extract_strided_slice %65 {offsets = [0, 64], sizes = [64, 8], strides = [1, 1]} : vector<64x96xf32> to vector<64x8xf32>
    %85 = vector.shape_cast %84 : vector<64x8xf32> to vector<8x8x8xf32>
    %86 = vector.extract_strided_slice %65 {offsets = [0, 72], sizes = [64, 8], strides = [1, 1]} : vector<64x96xf32> to vector<64x8xf32>
    %87 = vector.shape_cast %86 : vector<64x8xf32> to vector<8x8x8xf32>
    %88 = vector.extract_strided_slice %65 {offsets = [0, 80], sizes = [64, 8], strides = [1, 1]} : vector<64x96xf32> to vector<64x8xf32>
    %89 = vector.shape_cast %88 : vector<64x8xf32> to vector<8x8x8xf32>
    %90 = vector.extract_strided_slice %65 {offsets = [0, 88], sizes = [64, 8], strides = [1, 1]} : vector<64x96xf32> to vector<64x8xf32>
    %91 = vector.shape_cast %90 : vector<64x8xf32> to vector<8x8x8xf32>
    %92 = tpu.concatenate %85, %87, %89, %91 in 0 : vector<8x8x8xf32>, vector<8x8x8xf32>, vector<8x8x8xf32>, vector<8x8x8xf32> -> vector<32x8x8xf32>
    "tpu.trace_start"() <{level = 10 : i32, message = "bqd,bkd->bqk"}> : () -> ()
    %cst_41 = arith.constant dense<0.000000e+00> : vector<32x8x8xf32>
    %93 = tpu.matmul %74, %83, %cst_41 {dimension_numbers = #tpu.dot_dimension_numbers<[2], [2], [1], [1], [0, 0, 0, 1, 1, 1], [0], [0]>} : vector<32x8x8xf32>, vector<32x8x8xf32>, vector<32x8x8xf32> -> vector<32x8x8xf32>
    "tpu.trace_stop"() : () -> ()
    %cst_42 = arith.constant 0.353553385 : f32
    %94 = vector.broadcast %cst_42 : f32 to vector<32x8x8xf32>
    %95 = arith.mulf %93, %94 : vector<32x8x8xf32>
    %cst_43 = arith.constant dense<0xFF800000> : vector<32x8xf32>
    %96 = vector.multi_reduction <maximumf>, %95, %cst_43 [2] : vector<32x8x8xf32> to vector<32x8xf32>
    %97 = vector.shape_cast %96 : vector<32x8xf32> to vector<32x8x1xf32>
    %98 = vector.broadcast %97 : vector<32x8x1xf32> to vector<32x8x8xf32>
    %99 = arith.subf %95, %98 : vector<32x8x8xf32>
    %100 = math.exp %99 : vector<32x8x8xf32>
    %cst_44 = arith.constant dense<0.000000e+00> : vector<32x8xf32>
    %101 = vector.multi_reduction <add>, %100, %cst_44 [2] : vector<32x8x8xf32> to vector<32x8xf32>
    %102 = vector.shape_cast %101 : vector<32x8xf32> to vector<32x8x1xf32>
    %103 = vector.broadcast %102 : vector<32x8x1xf32> to vector<32x8x8xf32>
    %104 = arith.divf %100, %103 : vector<32x8x8xf32>
    "tpu.trace_start"() <{level = 10 : i32, message = "bqk,bkd->bqd"}> : () -> ()
    %cst_45 = arith.constant dense<0.000000e+00> : vector<32x8x8xf32>
    %105 = tpu.matmul %104, %92, %cst_45 {dimension_numbers = #tpu.dot_dimension_numbers<[2], [1], [1], [2], [0, 0, 0, 1, 1, 2], [0], [0]>} : vector<32x8x8xf32>, vector<32x8x8xf32>, vector<32x8x8xf32> -> vector<32x8x8xf32>
    "tpu.trace_stop"() : () -> ()
    %106 = vector.extract_strided_slice %105 {offsets = [0, 0, 0], sizes = [8, 8, 8], strides = [1, 1, 1]} : vector<32x8x8xf32> to vector<8x8x8xf32>
    %107 = vector.shape_cast %106 : vector<8x8x8xf32> to vector<64x8xf32>
    %108 = vector.extract_strided_slice %105 {offsets = [8, 0, 0], sizes = [8, 8, 8], strides = [1, 1, 1]} : vector<32x8x8xf32> to vector<8x8x8xf32>
    %109 = vector.shape_cast %108 : vector<8x8x8xf32> to vector<64x8xf32>
    %110 = vector.extract_strided_slice %105 {offsets = [16, 0, 0], sizes = [8, 8, 8], strides = [1, 1, 1]} : vector<32x8x8xf32> to vector<8x8x8xf32>
    %111 = vector.shape_cast %110 : vector<8x8x8xf32> to vector<64x8xf32>
    %112 = vector.extract_strided_slice %105 {offsets = [24, 0, 0], sizes = [8, 8, 8], strides = [1, 1, 1]} : vector<32x8x8xf32> to vector<8x8x8xf32>
    %113 = vector.shape_cast %112 : vector<8x8x8xf32> to vector<64x8xf32>
    %114 = tpu.concatenate %107, %109, %111, %113 in 1 : vector<64x8xf32>, vector<64x8xf32>, vector<64x8xf32>, vector<64x8xf32> -> vector<64x32xf32>
    %cst_46 = arith.constant dense<0.000000e+00> : vector<64x32xf32>
    %115 = tpu.matmul %114, %60, %cst_46 {dimension_numbers = #tpu.dot_dimension_numbers<[1], [0], [0], [1], [0, 0, 1, 1], [], []>} : vector<64x32xf32>, vector<32x32xf32>, vector<64x32xf32> -> vector<64x32xf32>
    %116 = vector.broadcast %62 : vector<1x32xf32> to vector<64x32xf32>
    %117 = arith.addf %115, %116 : vector<64x32xf32>
    %118 = vector.broadcast %7 : f32 to vector<64x32xf32>
    %119 = arith.mulf %118, %117 : vector<64x32xf32>
    %120 = arith.addf %54, %119 : vector<64x32xf32>
    %c0_47 = arith.constant 0 : index
    %c0_48 = arith.constant 0 : index
    %c0_49 = arith.constant 0 : index
    %121 = vector.load %arg20[%c0_47, %c0_48, %c0_49] : memref<1x1x32xf32, #tpu.memory_space<vmem>>, vector<1x1x32xf32>
    %122 = vector.shape_cast %121 : vector<1x1x32xf32> to vector<1x32xf32>
    %c0_50 = arith.constant 0 : index
    %c0_51 = arith.constant 0 : index
    %c0_52 = arith.constant 0 : index
    %123 = vector.load %arg21[%c0_50, %c0_51, %c0_52] : memref<1x1x32xf32, #tpu.memory_space<vmem>>, vector<1x1x32xf32>
    %124 = vector.shape_cast %123 : vector<1x1x32xf32> to vector<1x32xf32>
    %cst_53 = arith.constant dense<0.000000e+00> : vector<64xf32>
    %125 = vector.multi_reduction <add>, %120, %cst_53 [1] : vector<64x32xf32> to vector<64xf32>
    %126 = vector.shape_cast %125 : vector<64xf32> to vector<64x1xf32>
    %cst_54 = arith.constant 3.200000e+01 : f32
    %127 = vector.broadcast %cst_54 : f32 to vector<64x1xf32>
    %128 = arith.divf %126, %127 : vector<64x1xf32>
    %129 = vector.broadcast %128 : vector<64x1xf32> to vector<64x32xf32>
    %130 = arith.subf %120, %129 : vector<64x32xf32>
    %131 = arith.mulf %130, %130 : vector<64x32xf32>
    %cst_55 = arith.constant dense<0.000000e+00> : vector<64xf32>
    %132 = vector.multi_reduction <add>, %131, %cst_55 [1] : vector<64x32xf32> to vector<64xf32>
    %133 = vector.shape_cast %132 : vector<64xf32> to vector<64x1xf32>
    %cst_56 = arith.constant 3.200000e+01 : f32
    %134 = vector.broadcast %cst_56 : f32 to vector<64x1xf32>
    %135 = arith.divf %133, %134 : vector<64x1xf32>
    %136 = vector.broadcast %128 : vector<64x1xf32> to vector<64x32xf32>
    %137 = arith.subf %120, %136 : vector<64x32xf32>
    %cst_57 = arith.constant 9.99999974E-6 : f32
    %138 = vector.broadcast %cst_57 : f32 to vector<64x1xf32>
    %139 = arith.addf %135, %138 : vector<64x1xf32>
    %140 = math.rsqrt %139 : vector<64x1xf32>
    %141 = vector.broadcast %140 : vector<64x1xf32> to vector<64x32xf32>
    %142 = arith.mulf %137, %141 : vector<64x32xf32>
    %143 = vector.broadcast %122 : vector<1x32xf32> to vector<64x32xf32>
    %144 = arith.mulf %142, %143 : vector<64x32xf32>
    %145 = vector.broadcast %124 : vector<1x32xf32> to vector<64x32xf32>
    %146 = arith.addf %144, %145 : vector<64x32xf32>
    %c0_58 = arith.constant 0 : index
    %c0_59 = arith.constant 0 : index
    %c0_60 = arith.constant 0 : index
    %147 = vector.load %arg14[%c0_58, %c0_59, %c0_60] : memref<1x32x64xf32, #tpu.memory_space<vmem>>, vector<1x32x64xf32>
    %148 = vector.shape_cast %147 : vector<1x32x64xf32> to vector<32x64xf32>
    %c0_61 = arith.constant 0 : index
    %c0_62 = arith.constant 0 : index
    %c0_63 = arith.constant 0 : index
    %149 = vector.load %arg15[%c0_61, %c0_62, %c0_63] : memref<1x1x64xf32, #tpu.memory_space<vmem>>, vector<1x1x64xf32>
    %150 = vector.shape_cast %149 : vector<1x1x64xf32> to vector<1x64xf32>
    %c0_64 = arith.constant 0 : index
    %c0_65 = arith.constant 0 : index
    %c0_66 = arith.constant 0 : index
    %151 = vector.load %arg16[%c0_64, %c0_65, %c0_66] : memref<1x64x32xf32, #tpu.memory_space<vmem>>, vector<1x64x32xf32>
    %152 = vector.shape_cast %151 : vector<1x64x32xf32> to vector<64x32xf32>
    %c0_67 = arith.constant 0 : index
    %c0_68 = arith.constant 0 : index
    %c0_69 = arith.constant 0 : index
    %153 = vector.load %arg17[%c0_67, %c0_68, %c0_69] : memref<1x1x32xf32, #tpu.memory_space<vmem>>, vector<1x1x32xf32>
    %154 = vector.shape_cast %153 : vector<1x1x32xf32> to vector<1x32xf32>
    %cst_70 = arith.constant dense<0.000000e+00> : vector<64x64xf32>
    %155 = tpu.matmul %146, %148, %cst_70 {dimension_numbers = #tpu.dot_dimension_numbers<[1], [0], [0], [1], [0, 0, 1, 1], [], []>} : vector<64x32xf32>, vector<32x64xf32>, vector<64x64xf32> -> vector<64x64xf32>
    %156 = vector.broadcast %150 : vector<1x64xf32> to vector<64x64xf32>
    %157 = arith.addf %155, %156 : vector<64x64xf32>
    %cst_71 = arith.constant 0.000000e+00 : f32
    %158 = vector.broadcast %cst_71 : f32 to vector<64x64xf32>
    %159 = arith.maximumf %157, %158 : vector<64x64xf32>
    %cst_72 = arith.constant dense<0.000000e+00> : vector<64x32xf32>
    %160 = tpu.matmul %159, %152, %cst_72 {dimension_numbers = #tpu.dot_dimension_numbers<[1], [0], [0], [1], [0, 0, 1, 1], [], []>} : vector<64x64xf32>, vector<64x32xf32>, vector<64x32xf32> -> vector<64x32xf32>
    %161 = vector.broadcast %154 : vector<1x32xf32> to vector<64x32xf32>
    %162 = arith.addf %160, %161 : vector<64x32xf32>
    %163 = vector.broadcast %9 : f32 to vector<64x32xf32>
    %164 = arith.mulf %163, %162 : vector<64x32xf32>
    %165 = arith.addf %146, %164 : vector<64x32xf32>
    %c0_73 = arith.constant 0 : index
    %c0_74 = arith.constant 0 : index
    %c0_75 = arith.constant 0 : index
    %166 = vector.load %arg22[%c0_73, %c0_74, %c0_75] : memref<1x1x32xf32, #tpu.memory_space<vmem>>, vector<1x1x32xf32>
    %167 = vector.shape_cast %166 : vector<1x1x32xf32> to vector<1x32xf32>
    %c0_76 = arith.constant 0 : index
    %c0_77 = arith.constant 0 : index
    %c0_78 = arith.constant 0 : index
    %168 = vector.load %arg23[%c0_76, %c0_77, %c0_78] : memref<1x1x32xf32, #tpu.memory_space<vmem>>, vector<1x1x32xf32>
    %169 = vector.shape_cast %168 : vector<1x1x32xf32> to vector<1x32xf32>
    %cst_79 = arith.constant dense<0.000000e+00> : vector<64xf32>
    %170 = vector.multi_reduction <add>, %165, %cst_79 [1] : vector<64x32xf32> to vector<64xf32>
    %171 = vector.shape_cast %170 : vector<64xf32> to vector<64x1xf32>
    %cst_80 = arith.constant 3.200000e+01 : f32
    %172 = vector.broadcast %cst_80 : f32 to vector<64x1xf32>
    %173 = arith.divf %171, %172 : vector<64x1xf32>
    %174 = vector.broadcast %173 : vector<64x1xf32> to vector<64x32xf32>
    %175 = arith.subf %165, %174 : vector<64x32xf32>
    %176 = arith.mulf %175, %175 : vector<64x32xf32>
    %cst_81 = arith.constant dense<0.000000e+00> : vector<64xf32>
    %177 = vector.multi_reduction <add>, %176, %cst_81 [1] : vector<64x32xf32> to vector<64xf32>
    %178 = vector.shape_cast %177 : vector<64xf32> to vector<64x1xf32>
    %cst_82 = arith.constant 3.200000e+01 : f32
    %179 = vector.broadcast %cst_82 : f32 to vector<64x1xf32>
    %180 = arith.divf %178, %179 : vector<64x1xf32>
    %181 = vector.broadcast %173 : vector<64x1xf32> to vector<64x32xf32>
    %182 = arith.subf %165, %181 : vector<64x32xf32>
    %cst_83 = arith.constant 9.99999974E-6 : f32
    %183 = vector.broadcast %cst_83 : f32 to vector<64x1xf32>
    %184 = arith.addf %180, %183 : vector<64x1xf32>
    %185 = math.rsqrt %184 : vector<64x1xf32>
    %186 = vector.broadcast %185 : vector<64x1xf32> to vector<64x32xf32>
    %187 = arith.mulf %182, %186 : vector<64x32xf32>
    %188 = vector.broadcast %167 : vector<1x32xf32> to vector<64x32xf32>
    %189 = arith.mulf %187, %188 : vector<64x32xf32>
    %190 = vector.broadcast %169 : vector<1x32xf32> to vector<64x32xf32>
    %191 = arith.addf %189, %190 : vector<64x32xf32>
    %c0_84 = arith.constant 0 : index
    %c0_85 = arith.constant 0 : index
    %192 = vector.load %arg25[%c0_84, %c0_85] : memref<64x32xf32, #tpu.memory_space<vmem>>, vector<64x32xf32>
    tpu.vector_store %arg25[%c0_84, %c0_85], %191 {strides = array<i32>} : memref<64x32xf32, #tpu.memory_space<vmem>>, vector<64x32xf32>,
    %c1_i32 = arith.constant 1 : i32
    %193 = arith.cmpi eq, %arg1, %c1_i32 : i32
    %194 = arith.extui %193 : i1 to i32
    %c0_i32_86 = arith.constant 0 : i32
    %195 = arith.cmpi ne, %194, %c0_i32_86 : i32
    scf.if %195 {
      %196 = vector.shape_cast %191 : vector<64x32xf32> to vector<8x8x32xf32>
      %cst_87 = arith.constant dense<0.000000e+00> : vector<8x32xf32>
      %197 = vector.multi_reduction <add>, %196, %cst_87 [1] : vector<8x8x32xf32> to vector<8x32xf32>
      %cst_88 = arith.constant 8.000000e+00 : f32
      %198 = vector.broadcast %cst_88 : f32 to vector<8x32xf32>
      %199 = arith.divf %197, %198 : vector<8x32xf32>
      %c0_89 = arith.constant 0 : index
      %c0_90 = arith.constant 0 : index
      %200 = vector.load %arg24[%c0_89, %c0_90] : memref<8x32xf32, #tpu.memory_space<vmem>>, vector<8x32xf32>
      tpu.vector_store %arg24[%c0_89, %c0_90], %199 {strides = array<i32>} : memref<8x32xf32, #tpu.memory_space<vmem>>, vector<8x32xf32>,
    } else {
    }
    return
  }
  func.func @transform_0(%arg0: i32, %arg1: i32) -> (i32, i32) {
    %c0_i32 = arith.constant 0 : i32
    %c0_i32_0 = arith.constant 0 : i32
    %c0_i32_1 = arith.constant 0 : i32
    return %c0_i32, %c0_i32_0 : i32, i32
  }
  func.func @transform_1(%arg0: i32, %arg1: i32) -> (i32, i32, i32) {
    %c0_i32 = arith.constant 0 : i32
    %c0_i32_0 = arith.constant 0 : i32
    %c0_i32_1 = arith.constant 0 : i32
    return %arg0, %c0_i32, %c0_i32_0 : i32, i32, i32
  }
  func.func @transform_2(%arg0: i32, %arg1: i32) -> (i32, i32) {
    %c0_i32 = arith.constant 0 : i32
    %c0_i32_0 = arith.constant 0 : i32
    %c0_i32_1 = arith.constant 0 : i32
    return %c0_i32, %c0_i32_0 : i32, i32
  }
  func.func @transform_3(%arg0: i32, %arg1: i32) -> (i32, i32) {
    %c0_i32 = arith.constant 0 : i32
    %c0_i32_0 = arith.constant 0 : i32
    %c0_i32_1 = arith.constant 0 : i32
    return %c0_i32, %c0_i32_0 : i32, i32
  }
  func.func @transform_4(%arg0: i32, %arg1: i32) -> (i32, i32, i32) {
    %c0_i32 = arith.constant 0 : i32
    %c0_i32_0 = arith.constant 0 : i32
    %c0_i32_1 = arith.constant 0 : i32
    return %arg1, %c0_i32, %c0_i32_0 : i32, i32, i32
  }
  func.func @transform_5(%arg0: i32, %arg1: i32) -> (i32, i32, i32) {
    %c0_i32 = arith.constant 0 : i32
    %c0_i32_0 = arith.constant 0 : i32
    %c0_i32_1 = arith.constant 0 : i32
    return %arg1, %c0_i32, %c0_i32_0 : i32, i32, i32
  }
  func.func @transform_6(%arg0: i32, %arg1: i32) -> (i32, i32, i32) {
    %c0_i32 = arith.constant 0 : i32
    %c0_i32_0 = arith.constant 0 : i32
    %c0_i32_1 = arith.constant 0 : i32
    return %arg1, %c0_i32, %c0_i32_0 : i32, i32, i32
  }
  func.func @transform_7(%arg0: i32, %arg1: i32) -> (i32, i32, i32) {
    %c0_i32 = arith.constant 0 : i32
    %c0_i32_0 = arith.constant 0 : i32
    %c0_i32_1 = arith.constant 0 : i32
    return %arg1, %c0_i32, %c0_i32_0 : i32, i32, i32
  }
  func.func @transform_8(%arg0: i32, %arg1: i32) -> (i32, i32, i32) {
    %c0_i32 = arith.constant 0 : i32
    %c0_i32_0 = arith.constant 0 : i32
    %c0_i32_1 = arith.constant 0 : i32
    return %arg1, %c0_i32, %c0_i32_0 : i32, i32, i32
  }
  func.func @transform_9(%arg0: i32, %arg1: i32) -> (i32, i32, i32) {
    %c0_i32 = arith.constant 0 : i32
    %c0_i32_0 = arith.constant 0 : i32
    %c0_i32_1 = arith.constant 0 : i32
    return %arg1, %c0_i32, %c0_i32_0 : i32, i32, i32
  }
  func.func @transform_10(%arg0: i32, %arg1: i32) -> (i32, i32, i32) {
    %c0_i32 = arith.constant 0 : i32
    %c0_i32_0 = arith.constant 0 : i32
    %c0_i32_1 = arith.constant 0 : i32
    return %arg1, %c0_i32, %c0_i32_0 : i32, i32, i32
  }
  func.func @transform_11(%arg0: i32, %arg1: i32) -> (i32, i32, i32) {
    %c0_i32 = arith.constant 0 : i32
    %c0_i32_0 = arith.constant 0 : i32
    %c0_i32_1 = arith.constant 0 : i32
    return %arg1, %c0_i32, %c0_i32_0 : i32, i32, i32
  }
  func.func @transform_12(%arg0: i32, %arg1: i32) -> (i32, i32, i32) {
    %c0_i32 = arith.constant 0 : i32
    %c0_i32_0 = arith.constant 0 : i32
    %c0_i32_1 = arith.constant 0 : i32
    return %arg1, %c0_i32, %c0_i32_0 : i32, i32, i32
  }
  func.func @transform_13(%arg0: i32, %arg1: i32) -> (i32, i32, i32) {
    %c0_i32 = arith.constant 0 : i32
    %c0_i32_0 = arith.constant 0 : i32
    %c0_i32_1 = arith.constant 0 : i32
    return %arg1, %c0_i32, %c0_i32_0 : i32, i32, i32
  }
  func.func @transform_14(%arg0: i32, %arg1: i32) -> (i32, i32, i32) {
    %c0_i32 = arith.constant 0 : i32
    %c0_i32_0 = arith.constant 0 : i32
    %c0_i32_1 = arith.constant 0 : i32
    return %arg1, %c0_i32, %c0_i32_0 : i32, i32, i32
  }
  func.func @transform_15(%arg0: i32, %arg1: i32) -> (i32, i32, i32) {
    %c0_i32 = arith.constant 0 : i32
    %c0_i32_0 = arith.constant 0 : i32
    %c0_i32_1 = arith.constant 0 : i32
    return %arg1, %c0_i32, %c0_i32_0 : i32, i32, i32
  }
  func.func @transform_16(%arg0: i32, %arg1: i32) -> (i32, i32, i32) {
    %c0_i32 = arith.constant 0 : i32
    %c0_i32_0 = arith.constant 0 : i32
    %c0_i32_1 = arith.constant 0 : i32
    return %arg1, %c0_i32, %c0_i32_0 : i32, i32, i32
  }
  func.func @transform_17(%arg0: i32, %arg1: i32) -> (i32, i32, i32) {
    %c0_i32 = arith.constant 0 : i32
    %c0_i32_0 = arith.constant 0 : i32
    %c0_i32_1 = arith.constant 0 : i32
    return %arg1, %c0_i32, %c0_i32_0 : i32, i32, i32
  }
  func.func @transform_18(%arg0: i32, %arg1: i32) -> (i32, i32, i32) {
    %c0_i32 = arith.constant 0 : i32
    %c0_i32_0 = arith.constant 0 : i32
    %c0_i32_1 = arith.constant 0 : i32
    return %arg1, %c0_i32, %c0_i32_0 : i32, i32, i32
  }
  func.func @transform_19(%arg0: i32, %arg1: i32) -> (i32, i32, i32) {
    %c0_i32 = arith.constant 0 : i32
    %c0_i32_0 = arith.constant 0 : i32
    %c0_i32_1 = arith.constant 0 : i32
    return %arg1, %c0_i32, %c0_i32_0 : i32, i32, i32
  }
  func.func @transform_20(%arg0: i32, %arg1: i32) -> (i32, i32, i32) {
    %c0_i32 = arith.constant 0 : i32
    %c0_i32_0 = arith.constant 0 : i32
    %c0_i32_1 = arith.constant 0 : i32
    return %arg1, %c0_i32, %c0_i32_0 : i32, i32, i32
  }
  func.func @transform_21(%arg0: i32, %arg1: i32) -> (i32, i32, i32) {
    %c0_i32 = arith.constant 0 : i32
    %c0_i32_0 = arith.constant 0 : i32
    %c0_i32_1 = arith.constant 0 : i32
    return %arg1, %c0_i32, %c0_i32_0 : i32, i32, i32
  }
  func.func @transform_22(%arg0: i32, %arg1: i32) -> (i32, i32) {
    %c0_i32 = arith.constant 0 : i32
    %c0_i32_0 = arith.constant 0 : i32
    return %arg0, %c0_i32 : i32, i32
  }
}

</mosaic_0001>

<bundles_post_ra>
// kernel: tpu_custom_call.1
= control target key start
LH: loop header
LB: loop body
LE: loop exit
PB: predicated region body
PF: predicated region fallthrough
CT: control target
= control target key end

     0   :  { %s12008_s0 = inlined_call_operand.vmem [shape: f32[2,3], index: 0, kind: input, shape index: {}]   ;;  %s12009_s1 = inlined_call_operand.vmem [shape: f32[16,8,16], index: 1, kind: input, shape index: {}]   ;;  %s12010_s2 = inlined_call_operand.vmem [shape: f32[64,32], index: 2, kind: input, shape index: {}]   ;;  %s12011_s3 = inlined_call_operand.hbm [shape: f32[16,32], index: 3, kind: input, shape index: {}]   ;;  %s12012_s4 = inlined_call_operand.vmem [shape: f32[2,32,64], index: 4, kind: input, shape index: {}]   ;;  %s12013_s5 = inlined_call_operand.vmem [shape: f32[2,1,64], index: 5, kind: input, shape index: {}]   ;;  %s12014_s6 = inlined_call_operand.vmem [shape: f32[2,64,32], index: 6, kind: input, shape index: {}]   ;;  %s12015_s7 = inlined_call_operand.hbm [shape: f32[2,1,32], index: 7, kind: input, shape index: {}]   ;;  %s12016_s8 = inlined_call_operand.vmem [shape: f32[2,32,96], index: 8, kind: input, shape index: {}]   ;;  %s12017_s9 = inlined_call_operand.hbm [shape: f32[2,1,96], index: 9, kind: input, shape index: {}]   ;;  %s12018_s10 = inlined_call_operand.vmem [shape: f32[2,32,32], index: 10, kind: input, shape index: {}]   ;;  %s12019_s11 = inlined_call_operand.hbm [shape: f32[2,1,32], index: 11, kind: input, shape index: {}]   ;;  %s12020_s12 = inlined_call_operand.vmem [shape: f32[2,32,64], index: 12, kind: input, shape index: {}]   ;;  %s12021_s13 = inlined_call_operand.vmem [shape: f32[2,1,64], index: 13, kind: input, shape index: {}]   ;;  %s12022_s14 = inlined_call_operand.vmem [shape: f32[2,64,32], index: 14, kind: input, shape index: {}]   ;;  %s12023_s15 = inlined_call_operand.vmem [shape: f32[2,1,32], index: 15, kind: input, shape index: {}]   ;;  %s12024_s16 = inlined_call_operand.vmem [shape: f32[2,1,32], index: 16, kind: input, shape index: {}]   ;;  %s12025_s17 = inlined_call_operand.vmem [shape: f32[2,1,32], index: 17, kind: input, shape index: {}]   ;;  %s12026_s18 = inlined_call_operand.vmem [shape: f32[2,1,32], index: 18, kind: input, shape index: {}]   ;;  %s12027_s19 = inlined_call_operand.vmem [shape: f32[2,1,32], index: 19, kind: input, shape index: {}]   ;;  %s12028_s20 = inlined_call_operand.vmem [shape: f32[2,1,32], index: 20, kind: input, shape index: {}]   ;;  %s12029_s21 = inlined_call_operand.vmem [shape: f32[2,1,32], index: 21, kind: input, shape index: {}]   ;;  %s12030_s22 = inlined_call_operand.hbm [shape: f32[16,32], index: 22, kind: output, shape index: {}]  }
   0x1   :  { %12069 = sst [smem:[#allocation56_spill]] %s12008_s0 }
   0x2   :  { %12070 = sst [smem:[#allocation57_spill]] %s12009_s1 }
   0x3   :  { %12071 = sst [smem:[#allocation58_spill]] %s12010_s2 }
   0x4   :  { %12072 = sst [smem:[#allocation59_spill]] %s12011_s3 }
   0x5   :  { %12073 = sst [smem:[#allocation60_spill]] %s12012_s4 }
   0x6   :  { %12074 = sst [smem:[#allocation61_spill]] %s12013_s5 }
   0x7   :  { %12075 = sst [smem:[#allocation62_spill]] %s12014_s6 }
   0x8   :  { %12076 = sst [smem:[#allocation63_spill]] %s12015_s7 }
   0x9   :  { %12077 = sst [smem:[#allocation64_spill]] %s12016_s8 }
   0xa   :  { %12078 = sst [smem:[#allocation65_spill]] %s12017_s9 }
   0xb   :  { %12079 = sst [smem:[#allocation66_spill]] %s12018_s10 }
   0xc   :  { %12080 = sst [smem:[#allocation67_spill]] %s12019_s11 }
   0xd   :  { %12081 = sst [smem:[#allocation68_spill]] %s12020_s12 }
   0xe   :  { %12082 = sst [smem:[#allocation69_spill]] %s12021_s13 }
   0xf   :  { %12083 = sst [smem:[#allocation70_spill]] %s12022_s14 }
  0x10   :  { %12084 = sst [smem:[#allocation71_spill]] %s12023_s15 }
  0x11   :  { %12085 = sst [smem:[#allocation72_spill]] %s12024_s16 }
  0x12   :  { %12086 = sst [smem:[#allocation73_spill]] %s12025_s17 }
  0x13   :  { %12087 = sst [smem:[#allocation74_spill]] %s12026_s18 }
  0x14   :  { %12088 = sst [smem:[#allocation75_spill]] %s12027_s19 }
  0x15   :  { %12089 = sst [smem:[#allocation76_spill]] %s12028_s20 }
  0x16   :  { %12090 = sst [smem:[#allocation77_spill]] %s12029_s21 }
  0x17   :  { %12091 = sst [smem:[#allocation78_spill]] %s12030_s22 }
  0x18   :  { %27 = vsyncpa [#allocation6], 0 }
  0x19   :  { %28 = vsyncpa [#allocation4], 0 }
  0x1a   :  { %29 = vsyncpa [#allocation9], 0 }
  0x1b   :  { %31 = vsyncpa [#allocation9 + $0x1], 0 }
  0x1c   :  { %32 = vsyncpa [#allocation12], 0 }
  0x1d   :  { %34 = vsyncpa [#allocation12 + $0x1], 0 }
  0x1e   :  { %35 = vsyncpa [#allocation5], 0 }
  0x1f   :  { %37 = vsyncpa [#allocation5 + $0x1], 0  ;;  %s10098_s3 = smov 0   ;;  %s10100_s28 = smov 0  }
  0x20   :  { %s10102_s29 = smov 0   ;;  %s10104_s30 = smov 0  }
  0x21   :  { %s10106_s4 = smov 0   ;;  %s10108_s0 = smov 0  }
  0x22   :  { %s10110_s23 = smov 0   ;;  %s10112_s1 = smov 0  }
  0x23   :  { %s10114_s5 = smov 0   ;;  %s10116_s24 = smov 0  }
  0x24   :  { %s10118_s6 = smov 0  }
  0x25 LB: > { %12092 = sst [smem:[#allocation19_spill]] %s9923_s3  ;;  %s52_s25 = sadd.s32 1, %s9955_s5  ;;  %s9963_s6 = sphi %s10118_s6, %s43_s6   ;;  %s9959_s24 = sphi %s10116_s24, %s12226_s24   ;;  %s9955_s5 = sphi %s10114_s5, %s12225_s5   ;;  %s9951_s1 = sphi %s10112_s1, %s12224_s1   ;;  %s9947_s23 = sphi %s10110_s23, %s12223_s23   ;;  %s9943_s0 = sphi %s10108_s0, %s12222_s0   ;;  %s9939_s4 = sphi %s10106_s4, %s12221_s4   ;;  %s9935_s30 = sphi %s10104_s30, %s12220_s30   ;;  %s9931_s29 = sphi %s10102_s29, %s12219_s29   ;;  %s9927_s28 = sphi %s10100_s28, %s12218_s28   ;;  %s9923_s3 = sphi %s10098_s3, %s12217_s3  }
  0x26   : > { %12093 = sst [smem:[#allocation20_spill]] %s9927_s28  ;;  %s55_s26 = sadd.s32 1, %s9959_s24 }
  0x27   : > { %12094 = sst [smem:[#allocation21_spill]] %s9931_s29  ;;  %p53_p0 = scmp.ge.s32.totalorder %s52_s25, 2 }
  0x28   : > { %12095 = sst [smem:[#allocation22_spill]] %s9939_s4  ;;  %s229_s2 = sadd.s32 1, %s9943_s0 }
  0x29   : > { %12096 = sst [smem:[#allocation23_spill]] %s9943_s0  ;;  %p236_p1 = scmp.ne.s32.totalorder %s9943_s0, %s9939_s4 }
  0x2a   : > { %12097 = sst [smem:[#allocation24_spill]] %s9951_s1  ;;  %p237_p2 = scmp.eq.s32.totalorder %s9963_s6, 0 }
  0x2b   : > { %12098 = sst [smem:[#allocation25_spill]] %s9955_s5  ;;  %s12228_s25 = smov (%p53_p0, %s52_s25), 0 }
  0x2c   : > { %12099 = sst [smem:[#allocation26_spill]] %s9959_s24  ;;  %s12230_s26 = smov (!%p53_p0, %s55_s26), %s9959_s24 }
  0x2d   : > { %12100 = sst [smem:[#allocation27_spill]] %s9963_s6  ;;  %s226_s27 = ssub.s32 %s9955_s5, %s12228_s25 }
  0x2e   : > { %12101 = sst [smem:[#allocation28_spill]] %s12228_s25  ;;  %p10164_p3 = por %p237_p2, %p236_p1 }
  0x2f   : > { %p57_p4 = scmp.ge.s32.totalorder %s12230_s26, 2  ;;  %p227_p5 = scmp.eq.s32.totalorder %s226_s27, 0 }
  0x30   : > { %p9414_p6 = scmp.lt.s32.totalorder %s9963_s6, 4  ;;  %s714_s19 = sand.u32 1, %s9963_s6  }
  0x31   : > { %s12232_s26 = smov (%p57_p4, %s12230_s26), 0  ;;  %s10182_s25 = sand.u32 1, %s9943_s0  }
  0x32   : > { %12103 = sst [smem:[#allocation29_spill]] %s12232_s26  ;;  %s616_s20 = ssub.s32 %s9959_s24, %s12232_s26 }
  0x33   : > { %s10172_s21 = scalar_select %p227_p5, %s9943_s0, %s229_s2  }
  0x34   : > { %p10177_p7 = scmp.eq.s32.totalorder %s616_s20, 0  ;;  %s10185_s17 = sshll.u32 %s9955_s5, 4 }
  0x35   : > { %12104 = sst [smem:[#allocation30_spill]] %s10172_s21  ;;  %s717_s2 = scalar_lea.vmem [#allocation8], %s10182_s25 }
  0x36   : > { %s12105_s18 = scalar_select %p10177_p7, 1, 0 }
  0x37   : > { %s12106_s7 = sld [smem:[#allocation63_spill]]  ;;  %s724_s20 = sshll.u32 %s717_s2, 4  ;;  %s10200_s20 = int_to_ptr.vmem [resolvable:$true] %s724_s20 }
  0x38   : > { %p10196_p8 = pnand %p9414_p6, %p10164_p3  ;;  %s10202_s24 = scalar_lea.sflag [#allocation9], %s714_s19 }
  0x3a   : > { %s12107_s26 = scalar_select %p10196_p8, 1, 0 }
  0x3b   : > { %p10208_p10 = pneg %p10196_p8 }
  0x3d   : > { %s10191_s15 = scalar_lea.hbm %s12106_s7, %s10185_s17  ;;  %s9701_s2 = scalar_lea.hbm %s12106_s7, 32 }
  0x3e   : > { %s9696_s5 = scalar_lea.hbm %s10191_s15, 16  ;;  %p9702_p13 = scmp.lt.u32.totalorder %s10191_s15, %s12106_s7 }
  0x3f   : > { %p9697_p9 = scmp.ne.s32.totalorder %s10191_s15, %s9696_s5  ;;  %p9703_p0 = scmp.lt.u32.totalorder %s9701_s2, %s9696_s5 }
  0x40   : > { %p9705_p2 = scmp.lt.u32.totalorder %s9696_s5, %s10191_s15 }
  0x41   : > { %p9699_p11 = pnand %p10208_p10, %p9697_p9  ;;  %p9704_p1 = por %p9703_p0, %p9702_p13 }
  0x43   : > { %p9700_p12 = pneg %p9699_p11  ;;  %p9706_p3 = por %p9705_p2, %p9704_p1 }
  0x45   : > { %p9707_p4 = pnand %p9706_p3, %p9700_p12 }
  0x47   : > { %9710 = shalt.err (!%p9707_p4)
}
  0x48   : > { %s9711_s19 = scalar_lea.vmem %s10200_s20, 16  ;;  %s9965_s22 = smov [#allocation8]  }
  0x49   : > { %p9712_p5 = scmp.ne.s32.totalorder %s10200_s20, %s9711_s19  ;;  %s9716_s27 = sshll.u32 %s9965_s22, 4  ;;  %s9717_s27 = int_to_ptr.vmem [resolvable:$false] %s9716_s27 }
  0x4a   : > { %s9718_s21 = scalar_lea.vmem %s9717_s27, 32  ;;  %p9719_p11 = scmp.lt.s32.totalorder %s10200_s20, %s9717_s27 }
  0x4b   : > { %p9714_p6 = pnand %p9712_p5, %p10208_p10  ;;  %p9720_p7 = scmp.lt.s32.totalorder %s9718_s21, %s9711_s19 }
  0x4d   : > { %p9715_p9 = pneg %p9714_p6  ;;  %p9721_p13 = por %p9720_p7, %p9719_p11 }
  0x4f   : > { %p9722_p0 = pnand %p9721_p13, %p9715_p9 }
  0x51   : > { %9725 = shalt.err (!%p9722_p0)
}
  0x52   : > { %9401 = dma.hbm_to_vmem [thread:$0]  (!%p10196_p8), %s10191_s15, 16, %s10200_s20, %s10202_s24  }
  0x53   : > { %s10233_s0 = sadd.s32 4294967295, %s9963_s6   ;;  %s8412_s5 = sadd.s32 4294967294, %s9963_s6  }
  0x54   : > { %p242_p7 = scmp.ne.s32.totalorder %s9939_s4, %s9935_s30  ;;  %p12042_p12 = scmp.eq.s32.totalorder %s10233_s0, 0 }
  0x55   : > { %s619_s2 = sadd.s32 1, %s9931_s29  ;;  %p629_p1 = scmp.ne.s32.totalorder %s9931_s29, %s9927_s28 }
  0x56   : > { %p10244_p2 = por %p12042_p12, %p242_p7  ;;  %p630_p3 = scmp.eq.s32.totalorder %s10233_s0, 3 }
  0x57   : > { %p12110_p4 = scmp.ne.s32.totalorder %s12105_s18, 0  ;;  %p635_p6 = scmp.ne.s32.totalorder %s9927_s28, %s9923_s3 }
  0x58   : > { %s12109_s19 = scalar_select %p10244_p2, 1, 0 }
  0x59   : > { %s10252_s15 = scalar_select %p12110_p4, %s9931_s29, %s619_s2  }
  0x5a   : > { %p10254_p5 = por %p630_p3, %p629_p1  ;;  %p636_p9 = scmp.eq.s32.totalorder %s8412_s5, 3 }
  0x5b   : > { %12111 = sst [smem:[#allocation31_spill]] %s10252_s15  ;;  %p8413_p11 = scmp.ge.s32.totalorder %s9963_s6, 1 }
  0x5c   : > { %s12112_s20 = scalar_select %p10254_p5, 1, 0 }
  0x5d   : > { %p643_p13 = scmp.lt.s32.totalorder %s9963_s6, 5  ;;  %p10262_p0 = por %p636_p9, %p635_p6 }
  0x5e   : > { %12113 = sst [smem:[#allocation32_spill]] %s12112_s20  ;;  %s12116_s21 = sld [smem:[#allocation56_spill]] }
  0x5f   : > { %s12114_s30 = scalar_select %p10262_p0, 1, 0 }
  0x60   : > { %p10269_p7 = pnand %p8413_p11, %p643_p13  ;;  %s9966_s7 = smov [#allocation7]  }
  0x61   : > { %12115 = sst [smem:[#allocation33_spill]] %s12114_s30  ;;  %s669_s5 = sshll.u32 %s9966_s7, 4  ;;  %s10275_s5 = int_to_ptr.vmem [resolvable:$true] %s669_s5 }
  0x62   : > { %s12117_s2 = scalar_select %p10269_p7, 1, 0 }
  0x63   : > { %p9391_p1 = pneg %p10269_p7  ;;  %s12119_s9 = sld [smem:[#allocation65_spill]] }
  0x64   : > { %s656_s18 = sshll.u32 %s12116_s21, 4  ;;  %s742_s21 = scalar_lea.vmem [#allocation10], %s10182_s25  ;;  %s657_s18 = int_to_ptr.vmem [resolvable:$true] %s656_s18 }
  0x65   : > { %p10279_p3 = pnand %p9391_p1, %p12042_p12  ;;  %s10290_s30 = sshll.u32 %s742_s21, 4  ;;  %s750_s30 = int_to_ptr.vmem [resolvable:$true] %s10290_s30 }
  0x66   : > { %s9726_s3 = scalar_lea.vmem %s657_s18, 32  ;;  %p9734_p13 = scmp.lt.s32.totalorder %s657_s18, %s657_s18 }
  0x67   : > { %p9727_p4 = scmp.ne.s32.totalorder %s657_s18, %s9726_s3  ;;  %p9728_p6 = pneg %p10279_p3 }
  0x68   : > { %p9735_p1 = scmp.lt.s32.totalorder %s9726_s3, %s9726_s3 }
  0x69   : > { %s10287_s27 = scalar_lea.hbm %s12119_s9, %s10185_s17  ;;  %p9729_p9 = pnand %p9728_p6, %p9727_p4 }
  0x6a   : > { %p9736_p12 = por %p9735_p1, %p9734_p13 }
  0x6b   : > { %p9730_p11 = pneg %p9729_p9 }
  0x6d   : > { %p9737_p0 = pnand %p9736_p12, %p9730_p11 }
  0x6f   : > { %9740 = shalt.err (!%p9737_p0)
}
  0x70   : > { %s9967_s7 = smov [#allocation3]   ;;  %s12120_s21 = sld [smem:[#allocation59_spill]] }
  0x71   : > { %9394 = dma.vmem_to_smem (!%p10279_p3), %s657_s18, 32, %s9967_s7, [#allocation6]  }
  0x76   : > { %s9741_s6 = scalar_lea.hbm %s12120_s21, 256 }
  0x77   : > { %p9742_p5 = scmp.ne.s32.totalorder %s12120_s21, %s9741_s6  ;;  %p9748_p12 = scmp.lt.u32.totalorder %s9741_s6, %s12120_s21 }
  0x79   : > { %p9744_p4 = pnand %p9742_p5, %p9728_p6 }
  0x7b   : > { %p9745_p9 = pneg %p9744_p4 }
  0x7d   : > { %p9750_p0 = pnand %p9748_p12, %p9745_p9 }
  0x7f   : > { %9753 = shalt.err (!%p9750_p0)
}
  0x80   : > { %s9754_s18 = scalar_lea.vmem %s10275_s5, 256  ;;  %p9762_p2 = scmp.lt.s32.totalorder %s10275_s5, %s10275_s5 }
  0x81   : > { %p9755_p11 = scmp.ne.s32.totalorder %s10275_s5, %s9754_s18  ;;  %p9763_p5 = scmp.lt.s32.totalorder %s9754_s18, %s9754_s18 }
  0x83   : > { %p9757_p13 = pnand %p9755_p11, %p9728_p6  ;;  %p9764_p4 = por %p9763_p5, %p9762_p2 }
  0x85   : > { %p9758_p1 = pneg %p9757_p13 }
  0x87   : > { %p9765_p7 = pnand %p9764_p4, %p9758_p1 }
  0x89   : > { %9768 = shalt.err (!%p9765_p7)
}
  0x8a   : > { %s9968_s13 = smov 128   ;;  %s9969_s14 = smov 8  }
  0x8b   : > { %9397 = dma.hbm_to_vmem [thread:$0]  (!%p10279_p3), %s12120_s21, 256, %s10275_s5, [#allocation4], %s9968_s13, %s9968_s13, %s9969_s14  }
  0x8c   : > { %s9769_s7 = scalar_lea.hbm %s10287_s27, 16  ;;  %s9774_s3 = scalar_lea.hbm %s12119_s9, 32 }
  0x8d   : > { %p9770_p2 = scmp.ne.s32.totalorder %s10287_s27, %s9769_s7  ;;  %p9775_p9 = scmp.lt.u32.totalorder %s10287_s27, %s12119_s9 }
  0x8e   : > { %p9776_p12 = scmp.lt.u32.totalorder %s9774_s3, %s9769_s7  ;;  %p9778_p11 = scmp.lt.u32.totalorder %s9769_s7, %s10287_s27 }
  0x8f   : > { %p9772_p7 = pnand %p9770_p2, %p10208_p10 }
  0x90   : > { %p9777_p0 = por %p9776_p12, %p9775_p9 }
  0x91   : > { %p9773_p6 = pneg %p9772_p7 }
  0x92   : > { %p9779_p13 = por %p9778_p11, %p9777_p0 }
  0x94   : > { %p9780_p1 = pnand %p9779_p13, %p9773_p6 }
  0x96   : > { %9783 = shalt.err (!%p9780_p1)
}
  0x97   : > { %s9784_s15 = scalar_lea.vmem %s750_s30, 16  ;;  %s9970_s5 = smov [#allocation10]  }
  0x98   : > { %p9785_p3 = scmp.ne.s32.totalorder %s750_s30, %s9784_s15  ;;  %s9789_s13 = sshll.u32 %s9970_s5, 4  ;;  %s9790_s13 = int_to_ptr.vmem [resolvable:$false] %s9789_s13 }
  0x99   : > { %s9791_s14 = scalar_lea.vmem %s9790_s13, 32  ;;  %p9792_p2 = scmp.lt.s32.totalorder %s750_s30, %s9790_s13 }
  0x9a   : > { %p9787_p5 = pnand %p9785_p3, %p10208_p10  ;;  %p9793_p7 = scmp.lt.s32.totalorder %s9791_s14, %s9784_s15 }
  0x9c   : > { %p9788_p4 = pneg %p9787_p5  ;;  %p9794_p8 = por %p9793_p7, %p9792_p2 }
  0x9e   : > { %p9795_p9 = pnand %p9794_p8, %p9788_p4 }
  0xa0   : > { %9798 = shalt.err (!%p9795_p9)
}
  0xa1   : > { %p12121_p12 = scmp.ne.s32.totalorder %s12107_s26, 0  ;;  %s12122_s11 = sld [smem:[#allocation67_spill]] }
  0xa2   : > { %s767_s7 = scalar_lea.vmem [#allocation11], %s10182_s25  ;;  %s765_s22 = scalar_lea.sflag [#allocation12], %s10182_s25 }
  0xa3   : > { %9404 = dma.hbm_to_vmem [thread:$0]  (!%p12121_p12), %s10287_s27, 16, %s750_s30, %s10202_s24  }
  0xa4   : > { %s774_s29 = sshll.u32 %s767_s7, 4  ;;  %s775_s29 = int_to_ptr.vmem [resolvable:$true] %s774_s29 }
  0xa7   : > { %s10347_s20 = scalar_lea.hbm %s12122_s11, %s10185_s17  ;;  %s9804_s30 = scalar_lea.hbm %s12122_s11, 32 }
  0xa8   : > { %s9799_s3 = scalar_lea.hbm %s10347_s20, 16  ;;  %p9805_p11 = scmp.lt.u32.totalorder %s10347_s20, %s12122_s11 }
  0xa9   : > { %p9800_p8 = scmp.ne.s32.totalorder %s10347_s20, %s9799_s3  ;;  %p9806_p13 = scmp.lt.u32.totalorder %s9804_s30, %s9799_s3 }
  0xaa   : > { %p9808_p3 = scmp.lt.u32.totalorder %s9799_s3, %s10347_s20 }
  0xab   : > { %p9802_p6 = pnand %p9800_p8, %p10208_p10  ;;  %p9807_p1 = por %p9806_p13, %p9805_p11 }
  0xad   : > { %p9803_p0 = pneg %p9802_p6  ;;  %p9809_p5 = por %p9808_p3, %p9807_p1 }
  0xaf   : > { %p9810_p4 = pnand %p9809_p5, %p9803_p0 }
  0xb1   : > { %9813 = shalt.err (!%p9810_p4)
}
  0xb2   : > { %s9814_s25 = scalar_lea.vmem %s775_s29, 16  ;;  %s9971_s15 = smov [#allocation11]  }
  0xb3   : > { %p9815_p2 = scmp.ne.s32.totalorder %s775_s29, %s9814_s25  ;;  %s9819_s5 = sshll.u32 %s9971_s15, 4  ;;  %s9820_s5 = int_to_ptr.vmem [resolvable:$false] %s9819_s5 }
  0xb4   : > { %s9821_s13 = scalar_lea.vmem %s9820_s5, 32  ;;  %p9822_p8 = scmp.lt.s32.totalorder %s775_s29, %s9820_s5 }
  0xb5   : > { %p9817_p7 = pnand %p9815_p2, %p10208_p10  ;;  %p9823_p6 = scmp.lt.s32.totalorder %s9821_s13, %s9814_s25 }
  0xb7   : > { %p9818_p9 = pneg %p9817_p7  ;;  %p9824_p12 = por %p9823_p6, %p9822_p8 }
  0xb9   : > { %p9825_p11 = pnand %p9824_p12, %p9818_p9 }
  0xbb   : > { %9828 = shalt.err (!%p9825_p11)
}
  0xbc   : > { %p12123_p13 = scmp.ne.s32.totalorder %s12107_s26, 0  ;;  %p12124_p0 = scmp.ne.s32.totalorder %s12117_s2, 0 }
  0xbe   : > { %9407 = dma.hbm_to_vmem [thread:$0]  (!%p12123_p13), %s10347_s20, 16, %s775_s29, %s765_s22  }
  0xbf   : > { %847 = sbr.rel (%p12124_p0) target bundleno = 3953 (0xf71), region = 108 }
  0xc6   : > { %p12125_p1 = scmp.eq.s32.totalorder %s10233_s0, 0 }
  0xc8   : > { %9902 = dma.done.wait (%p12125_p1), [#allocation6], 32   ;;  %p12126_p10 = pmov %p12125_p1 }
  0xc9   : > { %p12127_p3 = pmov %p12125_p1 }
  0xca   : > { %9904 = vsyncadd (%p12126_p10), [#allocation6], 4294967264 }
  0xcb   : > { %9906 = dma.done.wait (%p12127_p3), [#allocation4], 256   ;;  %p12128_p5 = pmov %p12125_p1 }
  0xcc   : > { %s857_s26 = sand.u32 1, %s10233_s0   ;;  %s10380_s16 = sand.u32 1, %s9939_s4  }
  0xcd   : > { %9908 = vsyncadd (%p12128_p5), [#allocation4], 4294967040  ;;  %s858_s2 = scalar_lea.sflag [#allocation9], %s857_s26  ;;  %p12129_p12 = scmp.ne.s32.totalorder %s12109_s19, 0 }
  0xcf   : > { %9910 = dma.done.wait (%p12129_p12), %s858_s2, 32  }
  0xd0   : > { %9912 = vsyncadd (%p12129_p12), %s858_s2, 4294967264  ;;  %s874_s6 = scalar_lea.sflag [#allocation12], %s10380_s16 }
  0xd1   : > { %9914 = dma.done.wait (%p12129_p12), %s874_s6, 16  }
  0xd2   : > { %9916 = vsyncadd (%p12129_p12), %s874_s6, 4294967280 }
  0xd3   : > { %881 = sfence }
  0xd4   : > { %s12052_s0 = sand.u32 1, %s9927_s28   ;;  %s8424_s7 = sshll.u32 %s9951_s1, 3 }
  0xd5   : > { %s10398_s29 = sshll.u32 %s12052_s0, 3  ;;  %p1008_p4 = scmp.lt.s32.totalorder %s8424_s7, 15 }
  0xd6   : > { %p1013_p2 = scmp.lt.s32.totalorder %s9947_s23, 1  ;;  %s12130_s24 = sld [smem:[#allocation57_spill]] }
  0xd7   : > { %s12234_s7 = smov (!%p1008_p4, %s8424_s7), 15  ;;  %s12131_s15 = sld [smem:[#allocation60_spill]] }
  0xd8   : > { %s10402_s22 = scalar_select %p1013_p2, %s9947_s23, 1 }
  0xd9   : > { %s8425_s19 = sshll.u32 %s12234_s7, 3  ;;  %s12133_s8 = sld [smem:[#allocation64_spill]] }
  0xda   : > { %s8609_s27 = sshll.u32 %s10402_s22, 5  ;;  %s8610_s7 = sshll.u32 %s10402_s22, 6 }
  0xdb   : > { %s12135_s10 = sld [smem:[#allocation66_spill]]  ;;  %s12136_s26 = sld [smem:[#allocation68_spill]] }
  0xdc   : > { %s10407_s30 = scalar_lea.vmem %s12130_s24, %s8425_s19  ;;  %s12134_s24 = sld [smem:[#allocation62_spill]] }
  0xdd   : > { %s10413_s5 = scalar_lea.vmem %s12131_s15, %s8609_s27  ;;  %s12139_s21 = sld [smem:[#allocation70_spill]] }
  0xde   : > { %s12142_s28 = sld [smem:[#allocation72_spill]]  ;;  %s12143_s13 = sld [smem:[#allocation73_spill]] }
  0xdf   : > { %s10423_s3 = scalar_lea.vmem %s12133_s8, %s8609_s27  ;;  %s12144_s6 = sld [smem:[#allocation74_spill]] }
  0xe0   : > { %s12145_s11 = sld [smem:[#allocation75_spill]]  ;;  %s12146_s18 = sld [smem:[#allocation76_spill]] }
  0xe1   : > { %s10433_s15 = scalar_lea.vmem %s12135_s10, %s8609_s27  ;;  %s10438_s2 = scalar_lea.vmem %s12136_s26, %s8609_s27 }
  0xe2   : > { %s10428_s12 = scalar_lea.vmem %s12134_s24, %s8610_s7  ;;  %12137 = sst [smem:[#allocation34_spill]] %s10438_s2 }
  0xe3   : > { %s10447_s19 = scalar_lea.vmem %s12139_s21, %s8610_s7  ;;  %s12147_s10 = sld [smem:[#allocation77_spill]] }
  0xe4   : > { %12140 = sst [smem:[#allocation35_spill]] %s10447_s19  ;;  %s1054_s1 = scalar_lea.vmem %s12142_s28, %s10402_s22 }
  0xe5   : > { %s1057_s26 = scalar_lea.vmem %s12143_s13, %s10402_s22  ;;  %s1060_s20 = scalar_lea.vmem %s12144_s6, %s10402_s22 }
  0xe6   : > { %s1063_s21 = scalar_lea.vmem %s12145_s11, %s10402_s22  ;;  %s1066_s4 = scalar_lea.vmem %s12146_s18, %s10402_s22 }
  0xe7   : > { %s1006_s25 = scalar_lea.vmem [#allocation13], %s10398_s29  ;;  %p8438_p7 = scmp.ne.s32.totalorder %s9947_s23, 0 }
  0xe8   : > { %v1082_v0 = vld [vmem:[#allocation7] sm:$0xff] (!%p8438_p7)  ;;  %v1083_v1 = vld [vmem:[#allocation7 + $0x8] sm:$0xff] (!%p8438_p7)  ;;  %vm1092_vm0 = vcmask (!%p8438_p7), 130048   ;;  %v1076_v7 = vld [vmem:[%s10407_s30 + $0x10] sm:$0xff] (!%p8438_p7)  ;;  %s12148_s19 = sld [smem:[#allocation58_spill]] (!%p8438_p7)  ;;  %vm1222_vm1 = vcmask (!%p8438_p7), 261120  }
  0xe9   : > { %s1069_s28 = scalar_lea.vmem %s12147_s10, %s10402_s22  ;;  %1073 = sbr.rel (%p8438_p7) target bundleno = 460 (0x1cc), region = 132  ;;  %v1074_v2 = vld [vmem:[%s10407_s30] sm:$0xff] (!%p8438_p7)  ;;  %v9305_v3 = vpack.c.bf16 (!%p8438_p7), %v1083_v1, %v1082_v0  ;;  %v1075_v5 = vld [vmem:[%s10407_s30 + $0x8] sm:$0xff] (!%p8438_p7)  ;;  %v1080_v8 = vld [vmem:[%s10407_s30 + $0x30] sm:$0xff] (!%p8438_p7) }
  0xea   : > { %8837 = vmatprep.mubr.msk.f32.mxu0 (!%p8438_p7), %vm1092_vm0, %v1074_v2  ;;  %v1078_v4 = vld [vmem:[%s10407_s30 + $0x20] sm:$0xff] (!%p8438_p7)  ;;  %v1079_v6 = vld [vmem:[%s10407_s30 + $0x28] sm:$0xff] (!%p8438_p7)  ;;  %v1077_v9 = vld [vmem:[%s10407_s30 + $0x18] sm:$0xff] (!%p8438_p7) }
  0xeb   : > { %8843 = vmatprep.mubr.msk.f32.mxu1 (!%p8438_p7), %vm1092_vm0, %v1078_v4  ;;  %9306 = vmatprep.subr.bf16.mxu0 (!%p8438_p7), %v9305_v3  ;;  %v1081_v10 = vld [vmem:[%s10407_s30 + $0x38] sm:$0xff] (!%p8438_p7) }
  0xec   : > { %9373 = vmatprep.subr.bf16.mxu1 (!%p8438_p7), %v9305_v3  ;;  %9308 = vmatpush3.bf16.msra.mxu0 (!%p8438_p7), %v9305_v3 }
  0xed   : > { %9374 = vmatpush3.bf16.msra.mxu1 (!%p8438_p7), %v9305_v3 }
  0xee   : > { %v1085_v11 = vld [vmem:[%s12148_s19 + $0x8] sm:$0xff] (!%p8438_p7)  ;;  %v1084_v13 = vld [vmem:[%s12148_s19] sm:$0xff] (!%p8438_p7)  ;;  %v1087_v23 = vld [vmem:[%s12148_s19 + $0x18] sm:$0xff] (!%p8438_p7) }
  0xef   : > { %8838 = vmatmul.mubr.msk.f32.vlgmr.msra.gmra.mrb[0].mxu0 (!%p8438_p7), %vm1092_vm0, %v1075_v5  ;;  %v1089_v12 = vld [vmem:[%s12148_s19 + $0x28] sm:$0xff] (!%p8438_p7)  ;;  %v1088_v14 = vld [vmem:[%s12148_s19 + $0x20] sm:$0xff] (!%p8438_p7)  ;;  %v1091_v24 = vld [vmem:[%s12148_s19 + $0x38] sm:$0xff] (!%p8438_p7) }
  0xf0   : > { %8844 = vmatmul.mubr.msk.f32.vlgmr.msra.gmra.mrb[0].mxu1 %vm1092_vm0, %v1079_v6  ;;  %8840 = vmatprep.mubr.msk.f32.mxu0 %vm1092_vm0, %v1076_v7  ;;  %v1086_v25 = vld [vmem:[%s12148_s19 + $0x10] sm:$0xff] }
  0xf1   : > { %8846 = vmatprep.mubr.msk.f32.mxu1 %vm1092_vm0, %v1080_v8  ;;  %v1090_v26 = vld [vmem:[%s12148_s19 + $0x30] sm:$0xff] }
  0xf3   : > { %8841 = vmatmul.mubr.msk.f32.gmra.mrb[2].mxu0 %vm1092_vm0, %v1077_v9 }
  0xf4   : > { %8847 = vmatmul.mubr.msk.f32.gmra.mrb[2].mxu1 %vm1092_vm0, %v1081_v10 }
 0x1c2   : > { %v8839_v15 = vpop.f32.mrb[0].mxu0 }
 0x1c3   : > { %v8845_v16 = vpop.f32.mrb[0].mxu1  ;;  %v1189_v17 = vadd.f32 %v8839_v15, %v1085_v11  ;;  %v1183_v19 = vpop.f32.mrb[1].mxu0 }
 0x1c4   : > { %v1209_v18 = vadd.f32 %v8845_v16, %v1089_v12  ;;  %v1203_v20 = vpop.f32.mrb[1].mxu1  ;;  %v1184_v21 = vadd.f32 %v1183_v19, %v1084_v13 }
 0x1c5   : > { %v1204_v22 = vadd.f32 %v1203_v20, %v1088_v14  ;;  %1224 = vst.msk [vmem:[#allocation2 + $0x8] sm:$0xff] %vm1222_vm1, %v1189_v17 }
 0x1c6   : > { %1228 = vst.msk [vmem:[#allocation2 + $0x28] sm:$0xff] %vm1222_vm1, %v1209_v18  ;;  %1223 = vst.msk [vmem:[#allocation2] sm:$0xff] %vm1222_vm1, %v1184_v21  ;;  %v8842_v27 = vpop.f32.mrb[2].mxu0 }
 0x1c7   : > { %1227 = vst.msk [vmem:[#allocation2 + $0x20] sm:$0xff] %vm1222_vm1, %v1204_v22  ;;  %v8848_v28 = vpop.f32.mrb[2].mxu1  ;;  %v1199_v29 = vadd.f32 %v8842_v27, %v1087_v23  ;;  %v1193_v31 = vpop.f32.mrb[3].mxu0 }
 0x1c8   : > { %v1219_v30 = vadd.f32 %v8848_v28, %v1091_v24  ;;  %v1213_v32 = vpop.f32.mrb[3].mxu1  ;;  %v1194_v33 = vadd.f32 %v1193_v31, %v1086_v25 }
 0x1c9   : > { %v1214_v34 = vadd.f32 %v1213_v32, %v1090_v26  ;;  %1226 = vst.msk [vmem:[#allocation2 + $0x18] sm:$0xff] %vm1222_vm1, %v1199_v29 }
 0x1ca   : > { %1230 = vst.msk [vmem:[#allocation2 + $0x38] sm:$0xff] %vm1222_vm1, %v1219_v30  ;;  %1225 = vst.msk [vmem:[#allocation2 + $0x10] sm:$0xff] %vm1222_vm1, %v1194_v33 }
 0x1cb   : > { %1229 = vst.msk [vmem:[#allocation2 + $0x30] sm:$0xff] %vm1222_vm1, %v1214_v34 }
 0x1cc PF: > { %v1245_v35 = vld [vmem:[%s10413_s5] sm:$0xff]  ;;  %v1246_v36 = vld [vmem:[%s10413_s5 + $0x8] sm:$0xff]  ;;  %v1247_v37 = vld [vmem:[%s10413_s5 + $0x10] sm:$0xff]  ;;  %vm1265_vm2 = vcmask 261120   ;;  %s12149_s17 = sld [smem:[#allocation61_spill]]  ;;  %vm1409_vm3 = vcmask 523264  }
 0x1cd   : > { %v9309_v38 = vpack.c.bf16 %v1246_v36, %v1245_v35  ;;  %v1248_v39 = vld [vmem:[%s10413_s5 + $0x18] sm:$0xff]  ;;  %v10531_v40 = vld [vmem:[#allocation2] sm:$0xff]  ;;  %v1251_v43 = vld [vmem:[%s10428_s12 + $0x8] sm:$0xff]  ;;  %s12151_s13 = scalar_lea.vmem [#allocation8], %s10380_s16  ;;  %s9973_s7 = smov 112   ;;  %vm9976_vm4 = vmmov 0  }
 0x1ce   : > { %v9313_v41 = vpack.c.bf16 %v1248_v39, %v1247_v37  ;;  %8857 = vmatprep.mubr.msk.f32.mxu1 %vm1265_vm2, %v10531_v40  ;;  %v1250_v42 = vld [vmem:[%s10428_s12] sm:$0xff]  ;;  %v1252_v45 = vld [vmem:[%s10428_s12 + $0x10] sm:$0xff]  ;;  %v1253_v46 = vld [vmem:[%s10428_s12 + $0x18] sm:$0xff]  ;;  %s9974_s18 = smov 104   ;;  %s9977_s24 = smov 96   ;;  %vm1894_vm5 = vcmask 64512  }
 0x1cf   : > { %9310 = vmatprep.subr.bf16.mxu1 %v9309_v38  ;;  %v9317_v44 = vpack.c.bf16 %v1251_v43, %v1250_v42  ;;  %v10539_v47 = vld [vmem:[#allocation2 + $0x8] sm:$0xff]  ;;  %v9321_v49 = vpack.c.bf16 %v1253_v46, %v1252_v45  ;;  %v1254_v50 = vld [vmem:[%s10428_s12 + $0x20] sm:$0xff]  ;;  %v1256_v58 = vld [vmem:[%s10428_s12 + $0x30] sm:$0xff]  ;;  %s9978_s10 = smov 64   ;;  %s9979_s2 = smov 8   ;;  %vm7245_vm6 = vcmask 130048  }
 0x1d0   : > { %9312 = vmatpush3.bf16.msra.mxu1 %v9309_v38  ;;  %v1255_v51 = vld [vmem:[%s10428_s12 + $0x28] sm:$0xff]  ;;  %v10549_v52 = vld [vmem:[#allocation2 + $0x18] sm:$0xff]  ;;  %v10551_v53 = vld [vmem:[#allocation2 + $0x20] sm:$0xff]  ;;  %s9980_s5 = smov 16   ;;  %vm7254_vm7 = vcmask 195584   ;;  %s12201_s11 = sld [smem:[#allocation69_spill]] }
 0x1d1   : > { %9314 = vmatprep.subr.bf16.mxu1 %v9313_v41  ;;  %v10541_v48 = vld [vmem:[#allocation2 + $0x10] sm:$0xff]  ;;  %v9325_v54 = vpack.c.bf16 %v1255_v51, %v1254_v50  ;;  %v10557_v55 = vld [vmem:[#allocation2 + $0x28] sm:$0xff]  ;;  %v10565_v57 = vld [vmem:[#allocation2 + $0x38] sm:$0xff]  ;;  %p8604_p9 = scmp.ne.s32.totalorder %s9947_s23, 1 }
 0x1d2   : > { %v10559_v56 = vld [vmem:[#allocation2 + $0x30] sm:$0xff]  ;;  %v1257_v59 = vld [vmem:[%s10428_s12 + $0x38] sm:$0xff]  ;;  %s12150_s14 = scalar_lea.vmem %s12149_s17, %s10402_s22  ;;  %s10585_s12 = sshll.u32 %s9947_s23, 7  ;;  %v8457_v22 = vld [vmem:[%s12151_s13] ss:$0 sm:$0xff]  ;;  %vm8077_vm8 = vcmask (!%p8604_p9), 1041409  }
 0x1d3   : > { %v9329_v60 = vpack.c.bf16 %v1257_v59, %v1256_v58  ;;  %v8448_v61 = vld [vmem:[%s12150_s14] ss:$0 sm:$0xff]  ;;  %s1240_s27 = sld [smem:[#allocation3 + %s10585_s12]]  ;;  %s1241_s0 = sadd.s32 1, %s10585_s12  ;;  %vm8079_vm9 = vcmask (!%p8604_p9), 1042434   ;;  %vm8081_vm10 = vcmask (!%p8604_p9), 1043459  }
 0x1d4   : > { %9316 = vmatpush3.bf16.msra.mxu1 %v9313_v41  ;;  %s1242_s17 = sld [smem:[#allocation3 + %s1241_s0]]  ;;  %s12188_s14 = scalar_lea.vmem [#allocation11], %s10380_s16  ;;  %vm8083_vm11 = vcmask (!%p8604_p9), 1044484   ;;  %vm8085_vm12 = vcmask (!%p8604_p9), 1045509   ;;  %vm8087_vm13 = vcmask (!%p8604_p9), 1046534   ;;  %vm8089_vm14 = vcmask (!%p8604_p9), 1047559  }
 0x1d5   : > { %9318 = vmatprep.subr.bf16.mxu1 %v9317_v44 }
 0x1d7   : > { %8858 = vmatmul.mubr.msk.f32.vlgmr.msra.gmra.mrb[0].mxu1 %vm1265_vm2, %v10539_v47 }
 0x1d8   : > { %8860 = vmatprep.mubr.msk.f32.mxu1 %vm1265_vm2, %v10541_v48  ;;  %9320 = vmatpush3.bf16.msra.mxu1 %v9317_v44 }
 0x1d9   : > { %9322 = vmatprep.subr.bf16.mxu1 %v9321_v49  ;;  %v1539_v25 = vstv %s1240_s27  ;;  %s12198_s27 = sld [smem:[#allocation35_spill]] }
 0x1db   : > { %8861 = vmatmul.mubr.msk.f32.gmra.mrb[2].mxu1 %vm1265_vm2, %v10549_v52 }
 0x1dc   : > { %8863 = vmatprep.mubr.msk.f32.mxu1 %vm1265_vm2, %v10551_v53  ;;  %9324 = vmatpush3.bf16.msra.mxu1 %v9321_v49 }
 0x1dd   : > { %9326 = vmatprep.subr.bf16.mxu1 %v9325_v54 }
 0x1df   : > { %8864 = vmatmul.mubr.msk.f32.gmra.mrb[4].mxu1 %vm1265_vm2, %v10557_v55 }
 0x1e0   : > { %8866 = vmatprep.mubr.msk.f32.mxu1 %vm1265_vm2, %v10559_v56  ;;  %9328 = vmatpush3.bf16.msra.mxu1 %v9325_v54 }
 0x1e1   : > { %9330 = vmatprep.subr.bf16.mxu1 %v9329_v60 }
 0x1e3   : > { %8867 = vmatmul.mubr.msk.f32.gmra.mrb[6].mxu1 %vm1265_vm2, %v10565_v57 }
 0x1e4   : > { %9332 = vmatpush3.bf16.msra.mxu1 %v9329_v60 }
 0x2aa   : > { %v8859_v62 = vpop.f32.mrb[0].mxu1 }
 0x2ab   : > { %v1362_v63 = vadd.f32 %v8859_v62, %v8448_v61  ;;  %v1356_v0 = vpop.f32.mrb[1].mxu1 }
 0x2ac   : > { %v1357_v1 = vadd.f32 %v8448_v61, %v1356_v0 }
 0x2ad   : > { %v1396_v4 = vmax.f32 %v1362_v63, 0.0 }
 0x2ae   : > { %v1395_v2 = vmax.f32 %v1357_v1, 0.0  ;;  %v8862_v3 = vpop.f32.mrb[2].mxu1 }
 0x2af   : > { %v1372_v5 = vadd.f32 %v8862_v3, %v8448_v61  ;;  %v1366_v6 = vpop.f32.mrb[3].mxu1 }
 0x2b0   : > { %v1367_v7 = vadd.f32 %v8448_v61, %v1366_v6  ;;  %8885 = vmatprep.mubr.msk.f32.mxu1 %vm1409_vm3, %v1395_v2 }
 0x2b1   : > { %v1398_v8 = vmax.f32 %v1372_v5, 0.0  ;;  %8886 = vmatmul.mubr.msk.f32.vlgmr.msra.gmra.mrb[8].mxu1 %vm1409_vm3, %v1396_v4 }
 0x2b2   : > { %v1397_v9 = vmax.f32 %v1367_v7, 0.0  ;;  %v8865_v10 = vpop.f32.mrb[4].mxu1 }
 0x2b3   : > { %v1382_v11 = vadd.f32 %v8865_v10, %v8448_v61  ;;  %v1376_v12 = vpop.f32.mrb[5].mxu1 }
 0x2b4   : > { %v1377_v13 = vadd.f32 %v8448_v61, %v1376_v12  ;;  %8888 = vmatprep.mubr.msk.f32.mxu1 %vm1409_vm3, %v1397_v9 }
 0x2b5   : > { %v1400_v14 = vmax.f32 %v1382_v11, 0.0  ;;  %8889 = vmatmul.mubr.msk.f32.gmra.mrb[10].mxu1 %vm1409_vm3, %v1398_v8 }
 0x2b6   : > { %v1399_v15 = vmax.f32 %v1377_v13, 0.0  ;;  %v8868_v16 = vpop.f32.mrb[6].mxu1 }
 0x2b7   : > { %v1392_v17 = vadd.f32 %v8868_v16, %v8448_v61  ;;  %v1386_v18 = vpop.f32.mrb[7].mxu1 }
 0x2b8   : > { %v1387_v19 = vadd.f32 %v8448_v61, %v1386_v18  ;;  %8891 = vmatprep.mubr.msk.f32.mxu1 %vm1409_vm3, %v1399_v15 }
 0x2b9   : > { %v1402_v20 = vmax.f32 %v1392_v17, 0.0  ;;  %8892 = vmatmul.mubr.msk.f32.gmra.mrb[12].mxu1 %vm1409_vm3, %v1400_v14 }
 0x2ba   : > { %v1401_v21 = vmax.f32 %v1387_v19, 0.0 }
 0x2bc   : > { %8894 = vmatprep.mubr.msk.f32.mxu1 %vm1409_vm3, %v1401_v21 }
 0x2bd   : > { %8895 = vmatmul.mubr.msk.f32.gmra.mrb[14].mxu1 %vm1409_vm3, %v1402_v20 }
 0x384   : > { %v8887_v23 = vpop.f32.mrb[8].mxu1 }
 0x385   : > { %v1506_v24 = vadd.f32 %v8887_v23, %v8457_v22  ;;  %v1500_v26 = vpop.f32.mrb[9].mxu1 }
 0x386   : > { %v1501_v27 = vadd.f32 %v8457_v22, %v1500_v26 }
 0x387   : > { %v1541_v28 = vmul.f32 %v1539_v25, %v1506_v24 }
 0x388   : > { %v1540_v29 = vmul.f32 %v1539_v25, %v1501_v27  ;;  %v8890_v30 = vpop.f32.mrb[10].mxu1 }
 0x389   : > { %v1516_v31 = vadd.f32 %v8890_v30, %v8457_v22  ;;  %v1510_v32 = vpop.f32.mrb[11].mxu1  ;;  %v1549_v39 = vadd.f32 %v1541_v28, %v10539_v47 }
 0x38a   : > { %v1511_v33 = vadd.f32 %v8457_v22, %v1510_v32  ;;  %v1548_v34 = vadd.f32 %v1540_v29, %v10531_v40 }
 0x38b   : > { %v1543_v35 = vmul.f32 %v1539_v25, %v1516_v31  ;;  %v1561_v40 = vsel %vm1265_vm2, %v1549_v39, 0.0 }
 0x38c   : > { %v1542_v36 = vmul.f32 %v1539_v25, %v1511_v33  ;;  %v8893_v37 = vpop.f32.mrb[12].mxu1  ;;  %v1558_v38 = vsel %vm1265_vm2, %v1548_v34, 0.0 }
 0x38d   : > { %v1526_v41 = vadd.f32 %v8893_v37, %v8457_v22  ;;  %v1520_v42 = vpop.f32.mrb[13].mxu1  ;;  %1559 = vadd.xlane.f32.xlu0 %v1558_v38  ;;  %v1551_v51 = vadd.f32 %v1543_v35, %v10549_v52 }
 0x38e   : > { %v1521_v43 = vadd.f32 %v8457_v22, %v1520_v42  ;;  %v1550_v44 = vadd.f32 %v1542_v36, %v10541_v48  ;;  %v1692_v42 = vld [vmem:[%s10423_s3 + $0x8] sm:$0xff] }
 0x38f   : > { %v1545_v45 = vmul.f32 %v1539_v25, %v1526_v41  ;;  %v1567_v62 = vsel %vm1265_vm2, %v1551_v51, 0.0  ;;  %v1691_v41 = vld [vmem:[%s10423_s3] sm:$0xff] }
 0x390   : > { %v1544_v46 = vmul.f32 %v1539_v25, %v1521_v43  ;;  %v8896_v49 = vpop.f32.mrb[14].mxu1  ;;  %v1564_v50 = vsel %vm1265_vm2, %v1550_v44, 0.0  ;;  %v9333_v43 = vpack.c.bf16 %v1692_v42, %v1691_v41 }
 0x391   : > { %v1536_v54 = vadd.f32 %v8896_v49, %v8457_v22  ;;  %v1530_v58 = vpop.f32.mrb[15].mxu1  ;;  %1565 = vadd.xlane.f32.xlu1 %v1564_v50  ;;  %1562 = vadd.xlane.f32.xlu0 %v1561_v40  ;;  %v1553_v60 = vadd.f32 %v1545_v45, %v10557_v55  ;;  %v1694_v45 = vld [vmem:[%s10423_s3 + $0x18] sm:$0xff] }
 0x392   : > { %v1531_v47 = vadd.f32 %v8457_v22, %v1530_v58  ;;  %v1552_v59 = vadd.f32 %v1544_v46, %v10551_v53  ;;  %9334 = vmatprep.subr.bf16.mxu0 %v9333_v43 }
 0x393   : > { %v1547_v61 = vmul.f32 %v1539_v25, %v1536_v54  ;;  %v1573_v0 = vsel %vm1265_vm2, %v1553_v60, 0.0  ;;  %9336 = vmatpush3.bf16.msra.mxu0 %v9333_v43 }
 0x394   : > { %v1546_v48 = vmul.f32 %v1539_v25, %v1531_v47  ;;  %v1570_v63 = vsel %vm1265_vm2, %v1552_v59, 0.0 }
 0x395   : > { %1568 = vadd.xlane.f32.xlu1 %v1567_v62  ;;  %1571 = vadd.xlane.f32.xlu0 %v1570_v63  ;;  %v1555_v1 = vadd.f32 %v1547_v61, %v10565_v57 }
 0x396   : > { %v1554_v52 = vadd.f32 %v1546_v48, %v10559_v56 }
 0x397   : > { %v1579_v53 = vsel %vm1265_vm2, %v1555_v1, 0.0 }
 0x398   : > { %v1576_v2 = vsel %vm1265_vm2, %v1554_v52, 0.0 }
 0x399   : > { %1574 = vadd.xlane.f32.xlu1 %v1573_v0  ;;  %1577 = vadd.xlane.f32.xlu0 %v1576_v2 }
 0x39d   : > { %1580 = vadd.xlane.f32.xlu1 %v1579_v53 }
 0x41a   : > { %v1560_v55 = vpop.xlane.xlu0 %1559 }
 0x41b   : > { %v1583_v3 = vmul.f32 0.03125, %v1560_v55 }
 0x41d   : > { %v10606_v4 = vsub.f32 %v1548_v34, %v1583_v3 }
 0x41e   : > { %v1566_v5 = vpop.xlane.xlu1 %1565  ;;  %v1563_v6 = vpop.xlane.xlu0 %1562 }
 0x41f   : > { %v1585_v7 = vmul.f32 0.03125, %v1566_v5  ;;  %v1584_v8 = vmul.f32 0.03125, %v1563_v6  ;;  %v1599_v56 = vmul.f32 %v10606_v4, %v10606_v4 }
 0x421   : > { %v10610_v9 = vsub.f32 %v1550_v44, %v1585_v7  ;;  %v10612_v57 = vsub.f32 %v1549_v39, %v1584_v8  ;;  %v1607_v10 = vsel %vm1265_vm2, %v1599_v56, 0.0  ;;  %v1693_v44 = vld [vmem:[%s10423_s3 + $0x10] sm:$0xff]  ;;  %v8466_v7 = vld [vmem:[%s1054_s1] ss:$0 sm:$0xff]  ;;  %s12162_s1 = scalar_lea.vmem [#allocation10], %s10380_s16  ;;  %s12197_s16 = sld [smem:[#allocation34_spill]] }
 0x422   : > { %v1569_v11 = vpop.xlane.xlu1 %1568  ;;  %1608 = vadd.xlane.f32.xlu0 %v1607_v10  ;;  %v1572_v12 = vpop.xlane.xlu0 %1571  ;;  %v9337_v46 = vpack.c.bf16 %v1694_v45, %v1693_v44  ;;  %v8468_v42 = vld [vmem:[%s12162_s1] ss:$0 sm:$0xff]  ;;  %s12202_s1 = scalar_lea.vmem %s12201_s11, %s10402_s22 }
 0x423   : > { %v1586_v13 = vmul.f32 0.03125, %v1569_v11  ;;  %v1587_v14 = vmul.f32 0.03125, %v1572_v12  ;;  %v1601_v15 = vmul.f32 %v10610_v9, %v10610_v9  ;;  %v1600_v16 = vmul.f32 %v10612_v57, %v10612_v57  ;;  %v8467_v11 = vld [vmem:[%s1057_s26] ss:$0 sm:$0xff]  ;;  %s9972_s26 = smov 120  }
 0x424   : > { %9338 = vmatprep.subr.bf16.mxu0 %v9337_v46 }
 0x425   : > { %v10619_v17 = vsub.f32 %v1551_v51, %v1586_v13  ;;  %v10621_v18 = vsub.f32 %v1552_v59, %v1587_v14  ;;  %v1613_v19 = vsel %vm1265_vm2, %v1601_v15, 0.0  ;;  %v1610_v20 = vsel %vm1265_vm2, %v1600_v16, 0.0  ;;  %9340 = vmatpush3.bf16.msra.mxu0 %v9337_v46 }
 0x426   : > { %v1575_v21 = vpop.xlane.xlu1 %1574  ;;  %1614 = vadd.xlane.f32.xlu0 %v1613_v19  ;;  %1611 = vadd.xlane.f32.xlu1 %v1610_v20  ;;  %v1578_v22 = vpop.xlane.xlu0 %1577 }
 0x427   : > { %v1588_v23 = vmul.f32 0.03125, %v1575_v21  ;;  %v1589_v24 = vmul.f32 0.03125, %v1578_v22  ;;  %v1602_v25 = vmul.f32 %v10619_v17, %v10619_v17  ;;  %v1603_v26 = vmul.f32 %v10621_v18, %v10621_v18 }
 0x429   : > { %v10629_v27 = vsub.f32 %v1553_v60, %v1588_v23  ;;  %v10631_v28 = vsub.f32 %v1554_v52, %v1589_v24  ;;  %v1616_v29 = vsel %vm1265_vm2, %v1602_v25, 0.0  ;;  %v1619_v30 = vsel %vm1265_vm2, %v1603_v26, 0.0 }
 0x42a   : > { %v1581_v31 = vpop.xlane.xlu1 %1580  ;;  %1617 = vadd.xlane.f32.xlu1 %v1616_v29  ;;  %1620 = vadd.xlane.f32.xlu0 %v1619_v30 }
 0x42b   : > { %v1590_v32 = vmul.f32 0.03125, %v1581_v31  ;;  %v1604_v33 = vmul.f32 %v10629_v27, %v10629_v27  ;;  %v1605_v34 = vmul.f32 %v10631_v28, %v10631_v28 }
 0x42d   : > { %v10639_v35 = vsub.f32 %v1555_v1, %v1590_v32  ;;  %v1622_v36 = vsel %vm1265_vm2, %v1604_v33, 0.0  ;;  %v1625_v37 = vsel %vm1265_vm2, %v1605_v34, 0.0 }
 0x42e   : > { %1623 = vadd.xlane.f32.xlu1 %v1622_v36  ;;  %1626 = vadd.xlane.f32.xlu0 %v1625_v37 }
 0x42f   : > { %v1606_v38 = vmul.f32 %v10639_v35, %v10639_v35 }
 0x431   : > { %v1628_v39 = vsel %vm1265_vm2, %v1606_v38, 0.0 }
 0x432   : > { %1629 = vadd.xlane.f32.xlu1 %v1628_v39 }
 0x4af   : > { %v1609_v49 = vpop.xlane.xlu0 %1608 }
 0x4b0   : > { %v1631_v50 = vmul.f32 0.03125, %v1609_v49 }
 0x4b2   : > { %v1639_v40 = vadd.f32 1e-05, %v1631_v50 }
 0x4b3   : > { %v1612_v51 = vpop.xlane.xlu1 %1611  ;;  %v1615_v54 = vpop.xlane.xlu0 %1614 }
 0x4b4   : > { %9520 = vrsqrt.f32 %v1639_v40  ;;  %v1632_v58 = vmul.f32 0.03125, %v1612_v51  ;;  %v1633_v47 = vmul.f32 0.03125, %v1615_v54 }
 0x4b6   : > { %v1640_v59 = vadd.f32 1e-05, %v1632_v58  ;;  %v1641_v60 = vadd.f32 1e-05, %v1633_v47 }
 0x4b7   : > { %v1618_v61 = vpop.xlane.xlu1 %1617  ;;  %v1621_v48 = vpop.xlane.xlu0 %1620 }
 0x4b8   : > { %9522 = vrsqrt.f32 %v1640_v59  ;;  %v1634_v62 = vmul.f32 0.03125, %v1618_v61  ;;  %v1635_v63 = vmul.f32 0.03125, %v1621_v48 }
 0x4b9   : > { %9524 = vrsqrt.f32 %v1641_v60 }
 0x4ba   : > { %v1642_v0 = vadd.f32 1e-05, %v1634_v62  ;;  %v1643_v52 = vadd.f32 1e-05, %v1635_v63  ;;  %v12059_v62 = vmov 0.0  }
 0x4bb   : > { %v1624_v1 = vpop.xlane.xlu1 %1623  ;;  %v1627_v2 = vpop.xlane.xlu0 %1626  ;;  %8917 = vmatprep.subr.mxu0 %v12059_v62  ;;  %8922 = vmatprep.subr.mxu1 %v12059_v62 }
 0x4bc   : > { %9526 = vrsqrt.f32 %v1642_v0  ;;  %v1636_v53 = vmul.f32 0.03125, %v1624_v1  ;;  %v1637_v55 = vmul.f32 0.03125, %v1627_v2  ;;  %8924 = vmatprep.mubr.msk.f32.mxu1 %vm9976_vm4, %v12059_v62 }
 0x4bd   : > { %9528 = vrsqrt.f32 %v1643_v52 }
 0x4be   : > { %v9521_v3 = vpop.eup %9520  ;;  %v1644_v5 = vadd.f32 1e-05, %v1636_v53  ;;  %v1645_v6 = vadd.f32 1e-05, %v1637_v55 }
 0x4bf   : > { %v1630_v8 = vpop.xlane.xlu1 %1629  ;;  %v1655_v56 = vmul.f32 %v9521_v3, %v10606_v4 }
 0x4c0   : > { %9530 = vrsqrt.f32 %v1644_v5  ;;  %v1638_v10 = vmul.f32 0.03125, %v1630_v8 }
 0x4c1   : > { %9532 = vrsqrt.f32 %v1645_v6  ;;  %v1669_v12 = vmul.f32 %v8466_v7, %v1655_v56 }
 0x4c2   : > { %v9523_v13 = vpop.eup %9522  ;;  %v1646_v14 = vadd.f32 1e-05, %v1638_v10 }
 0x4c3   : > { %v9525_v15 = vpop.eup %9524  ;;  %v10661_v16 = vadd.f32 %v8467_v11, %v1669_v12  ;;  %v1656_v19 = vmul.f32 %v9523_v13, %v10612_v57 }
 0x4c4   : > { %9534 = vrsqrt.f32 %v1646_v14  ;;  %v1657_v20 = vmul.f32 %v9525_v15, %v10610_v9 }
 0x4c5   : > { %12154 = vst [vmem:[#allocation36_spill] sm:$0xff] %v10661_v16  ;;  %8905 = vmatprep.mubr.msk.f32.mxu0 %vm1265_vm2, %v10661_v16  ;;  %v1670_v4 = vmul.f32 %v8466_v7, %v1656_v19 }
 0x4c6   : > { %v9527_v21 = vpop.eup %9526  ;;  %v1671_v22 = vmul.f32 %v8466_v7, %v1657_v20 }
 0x4c7   : > { %v9529_v23 = vpop.eup %9528  ;;  %v10667_v24 = vadd.f32 %v8467_v11, %v1670_v4  ;;  %v1658_v25 = vmul.f32 %v9527_v21, %v10619_v17 }
 0x4c8   : > { %v10670_v26 = vadd.f32 %v8467_v11, %v1671_v22  ;;  %v1659_v29 = vmul.f32 %v9529_v23, %v10621_v18 }
 0x4c9   : > { %12155 = vst [vmem:[#allocation37_spill] sm:$0xff] %v10667_v24  ;;  %8906 = vmatmul.mubr.msk.f32.vlgmr.msra.gmra.mrb[0].mxu0 %vm1265_vm2, %v10667_v24  ;;  %v1672_v57 = vmul.f32 %v8466_v7, %v1658_v25 }
 0x4ca   : > { %12156 = vst [vmem:[#allocation38_spill] sm:$0xff] %v10670_v26  ;;  %v9531_v9 = vpop.eup %9530  ;;  %8908 = vmatprep.mubr.msk.f32.mxu0 %vm1265_vm2, %v10670_v26  ;;  %v1673_v30 = vmul.f32 %v8466_v7, %v1659_v29 }
 0x4cb   : > { %v9533_v31 = vpop.eup %9532  ;;  %v10677_v32 = vadd.f32 %v8467_v11, %v1672_v57  ;;  %v1660_v33 = vmul.f32 %v9531_v9, %v10629_v27 }
 0x4cc   : > { %v10680_v17 = vadd.f32 %v8467_v11, %v1673_v30  ;;  %v1661_v34 = vmul.f32 %v9533_v31, %v10631_v28 }
 0x4cd   : > { %12157 = vst [vmem:[#allocation39_spill] sm:$0xff] %v10677_v32  ;;  %8909 = vmatmul.mubr.msk.f32.gmra.mrb[2].mxu0 %vm1265_vm2, %v10677_v32  ;;  %v1674_v18 = vmul.f32 %v8466_v7, %v1660_v33 }
 0x4ce   : > { %12158 = vst [vmem:[#allocation40_spill] sm:$0xff] %v10680_v17  ;;  %v9535_v36 = vpop.eup %9534  ;;  %8911 = vmatprep.mubr.msk.f32.mxu0 %vm1265_vm2, %v10680_v17  ;;  %v1675_v37 = vmul.f32 %v8466_v7, %v1661_v34 }
 0x4cf   : > { %v10687_v38 = vadd.f32 %v8467_v11, %v1674_v18  ;;  %v1662_v39 = vmul.f32 %v9535_v36, %v10639_v35 }
 0x4d0   : > { %v10690_v41 = vadd.f32 %v8467_v11, %v1675_v37 }
 0x4d1   : > { %12159 = vst [vmem:[#allocation41_spill] sm:$0xff] %v10687_v38  ;;  %8912 = vmatmul.mubr.msk.f32.gmra.mrb[4].mxu0 %vm1265_vm2, %v10687_v38  ;;  %v1676_v27 = vmul.f32 %v8466_v7, %v1662_v39 }
 0x4d2   : > { %12160 = vst [vmem:[#allocation42_spill] sm:$0xff] %v10690_v41  ;;  %8914 = vmatprep.mubr.msk.f32.mxu0 %vm1265_vm2, %v10690_v41 }
 0x4d3   : > { %v10696_v28 = vadd.f32 %v8467_v11, %v1676_v27 }
 0x4d5   : > { %12161 = vst [vmem:[#allocation43_spill] sm:$0xff] %v10696_v28  ;;  %8915 = vmatmul.mubr.msk.f32.gmra.mrb[6].mxu0 %vm1265_vm2, %v10696_v28 }
 0x4d6   : > { %8919 = vmatprep.mubr.msk.f32.mxu0 %vm9976_vm4, %v12059_v62 }
 0x59c   : > { %v8907_v43 = vpop.f32.mrb[0].mxu0 }
 0x59d   : > { %v10702_v44 = vadd.f32 %v8907_v43, %v8468_v42  ;;  %v1797_v35 = vpop.f32.mrb[1].mxu0 }
 0x59e   : > { %v10704_v45 = vadd.f32 %v8468_v42, %v1797_v35 }
 0x59f   : > { %1846 = vrot.lane.b32.xlu1 %v10702_v44, %s9972_s26 }
 0x5a0   : > { %1844 = vrot.lane.b32.xlu0 %v10704_v45, %s9972_s26  ;;  %v8910_v46 = vpop.f32.mrb[2].mxu0 }
 0x5a1   : > { %v1807_v49 = vpop.f32.mrb[3].mxu0  ;;  %v10712_v40 = vadd.f32 %v8910_v46, %v8468_v42 }
 0x5a2   : > { %v10718_v47 = vadd.f32 %v8468_v42, %v1807_v49 }
 0x5a3   : > { %1862 = vrot.lane.b32.xlu1 %v10702_v44, %s9973_s7 }
 0x5a4   : > { %1860 = vrot.lane.b32.xlu0 %v10704_v45, %s9973_s7  ;;  %v8913_v50 = vpop.f32.mrb[4].mxu0 }
 0x5a5   : > { %v1817_v51 = vpop.f32.mrb[5].mxu0  ;;  %v10724_v61 = vadd.f32 %v8913_v50, %v8468_v42 }
 0x5a6   : > { %v10714_v54 = vadd.f32 %v8468_v42, %v1817_v51 }
 0x5a7   : > { %1850 = vrot.lane.b32.xlu1 %v10712_v40, %s9972_s26 }
 0x5a8   : > { %1852 = vrot.lane.b32.xlu0 %v10714_v54, %s9972_s26  ;;  %v8916_v58 = vpop.f32.mrb[6].mxu0 }
 0x5a9   : > { %v1827_v59 = vpop.f32.mrb[7].mxu0  ;;  %v10729_v48 = vadd.f32 %v8916_v58, %v8468_v42 }
 0x5aa   : > { %v10720_v60 = vadd.f32 %v8468_v42, %v1827_v59 }
 0x5ab   : > { %1848 = vrot.lane.b32.xlu1 %v10718_v47, %s9972_s26 }
 0x5ac   : > { %1856 = vrot.lane.b32.xlu0 %v10720_v60, %s9972_s26 }
 0x5af   : > { %1854 = vrot.lane.b32.xlu1 %v10724_v61, %s9972_s26 }
 0x5b0   : > { %1864 = vrot.lane.b32.xlu0 %v10718_v47, %s9973_s7 }
 0x5b3   : > { %1858 = vrot.lane.b32.xlu1 %v10729_v48, %s9972_s26  ;;  %s1243_s26 = sadd.s32 2, %s10585_s12 }
 0x5b4   : > { %1868 = vrot.lane.b32.xlu0 %v10714_v54, %s9973_s7 }
 0x5b7   : > { %1866 = vrot.lane.b32.xlu1 %v10712_v40, %s9973_s7 }
 0x5b8   : > { %1876 = vrot.lane.b32.xlu0 %v10704_v45, %s9974_s18 }
 0x5bb   : > { %1870 = vrot.lane.b32.xlu1 %v10724_v61, %s9973_s7 }
 0x5bc   : > { %1872 = vrot.lane.b32.xlu0 %v10720_v60, %s9973_s7 }
 0x5bf   : > { %1874 = vrot.lane.b32.xlu1 %v10729_v48, %s9973_s7  ;;  %s1244_s7 = sld [smem:[#allocation3 + %s1243_s26]] }
 0x5c0   : > { %1880 = vrot.lane.b32.xlu0 %v10718_v47, %s9974_s18 }
 0x5c3   : > { %1878 = vrot.lane.b32.xlu1 %v10702_v44, %s9974_s18 }
 0x5c4   : > { %1884 = vrot.lane.b32.xlu0 %v10714_v54, %s9974_s18 }
 0x5c7   : > { %1882 = vrot.lane.b32.xlu1 %v10712_v40, %s9974_s18 }
 0x5c8   : > { %1892 = vrot.lane.b32.xlu0 %v10704_v45, %s9977_s24 }
 0x5cb   : > { %1886 = vrot.lane.b32.xlu1 %v10724_v61, %s9974_s18 }
 0x5cc   : > { %1888 = vrot.lane.b32.xlu0 %v10720_v60, %s9974_s18 }
 0x5cf   : > { %1969 = vrot.lane.b32.xlu1 %v10702_v44, %s9977_s24 }
 0x5d0   : > { %2045 = vrot.lane.b32.xlu0 %v10718_v47, %s9977_s24 }
 0x5d3   : > { %1890 = vrot.lane.b32.xlu1 %v10729_v48, %s9974_s18 }
 0x5d4   : > { %2197 = vrot.lane.b32.xlu0 %v10714_v54, %s9977_s24 }
 0x5d7   : > { %2121 = vrot.lane.b32.xlu1 %v10712_v40, %s9977_s24 }
 0x5d8   : > { %2349 = vrot.lane.b32.xlu0 %v10720_v60, %s9977_s24 }
 0x5db   : > { %2273 = vrot.lane.b32.xlu1 %v10724_v61, %s9977_s24 }
 0x5df   : > { %2425 = vrot.lane.b32.xlu1 %v10729_v48, %s9977_s24 }
 0x611   : > { %v10772_v63 = vpop.permute.xlu1 %1846 }
 0x612   : > { %2577 = vrot.lane.b32.xlu1 %v10772_v63, %s9977_s24  ;;  %v10776_v0 = vpop.permute.xlu0 %1844 }
 0x613   : > { %2501 = vrot.lane.b32.xlu0 %v10776_v0, %s9977_s24 }
 0x615   : > { %v10780_v52 = vpop.permute.xlu1 %1862 }
 0x616   : > { %v10782_v1 = vpop.permute.xlu0 %1860 }
 0x619   : > { %v10784_v2 = vpop.permute.xlu1 %1850 }
 0x61a   : > { %2729 = vrot.lane.b32.xlu1 %v10784_v2, %s9977_s24  ;;  %v10788_v53 = vpop.permute.xlu0 %1852 }
 0x61d   : > { %v10790_v55 = vpop.permute.xlu1 %1848 }
 0x61e   : > { %2653 = vrot.lane.b32.xlu0 %v10790_v55, %s9977_s24  ;;  %v10794_v3 = vpop.permute.xlu0 %1856 }
 0x621   : > { %v10796_v5 = vpop.permute.xlu1 %1854 }
 0x622   : > { %2881 = vrot.lane.b32.xlu1 %v10796_v5, %s9977_s24  ;;  %2805 = vrot.lane.b32.xlu0 %v10788_v53, %s9977_s24  ;;  %v10802_v6 = vpop.permute.xlu0 %1864 }
 0x625   : > { %v10804_v7 = vpop.permute.xlu1 %1858 }
 0x626   : > { %3033 = vrot.lane.b32.xlu1 %v10804_v7, %s9977_s24  ;;  %2957 = vrot.lane.b32.xlu0 %v10794_v3, %s9977_s24  ;;  %v10810_v8 = vpop.permute.xlu0 %1868 }
 0x629   : > { %v10812_v56 = vpop.permute.xlu1 %1866 }
 0x62a   : > { %3185 = vrot.lane.b32.xlu1 %v10780_v52, %s9977_s24  ;;  %3109 = vrot.lane.b32.xlu0 %v10782_v1, %s9977_s24  ;;  %v10818_v10 = vpop.permute.xlu0 %1876 }
 0x62d   : > { %v10820_v11 = vpop.permute.xlu1 %1870 }
 0x62e   : > { %3337 = vrot.lane.b32.xlu1 %v10812_v56, %s9977_s24  ;;  %3261 = vrot.lane.b32.xlu0 %v10802_v6, %s9977_s24  ;;  %v10826_v12 = vpop.permute.xlu0 %1872 }
 0x631   : > { %v10828_v13 = vpop.permute.xlu1 %1874 }
 0x632   : > { %3489 = vrot.lane.b32.xlu1 %v10820_v11, %s9977_s24  ;;  %3413 = vrot.lane.b32.xlu0 %v10810_v8, %s9977_s24  ;;  %v10834_v14 = vpop.permute.xlu0 %1880 }
 0x635   : > { %v10836_v15 = vpop.permute.xlu1 %1878 }
 0x636   : > { %3641 = vrot.lane.b32.xlu1 %v10828_v13, %s9977_s24  ;;  %3565 = vrot.lane.b32.xlu0 %v10826_v12, %s9977_s24  ;;  %v10842_v19 = vpop.permute.xlu0 %1884 }
 0x639   : > { %v10844_v20 = vpop.permute.xlu1 %1882 }
 0x63a   : > { %3793 = vrot.lane.b32.xlu1 %v10836_v15, %s9977_s24  ;;  %3717 = vrot.lane.b32.xlu0 %v10818_v10, %s9977_s24  ;;  %v1893_v4 = vpop.permute.xlu0 %1892 }
 0x63b   : > { %8918 = vmatpush3.xpose.msk.msra.mxu0 %vm1894_vm5, %v1893_v4 }
 0x63c   : > { %8927 = vmatprep.subr.mxu0 %v12059_v62 }
 0x63d   : > { %v10852_v21 = vpop.permute.xlu1 %1886 }
 0x63e   : > { %3945 = vrot.lane.b32.xlu1 %v10844_v20, %s9977_s24  ;;  %3869 = vrot.lane.b32.xlu0 %v10834_v14, %s9977_s24  ;;  %v10858_v22 = vpop.permute.xlu0 %1888 }
 0x63f   : > { %8920 = vmatmul.mubr.msk.f32.vlgmr.msra.gmra.mrb[8].mxu0 %vm1894_vm5, %v10704_v45 }
 0x640   : > { %8929 = vmatprep.mubr.msk.f32.mxu0 %vm9976_vm4, %v12059_v62 }
 0x641   : > { %v1970_v23 = vpop.permute.xlu1 %1969 }
 0x642   : > { %4097 = vrot.lane.b32.xlu1 %v10852_v21, %s9977_s24  ;;  %8923 = vmatpush3.xpose.msk.msra.mxu1 %vm1894_vm5, %v1970_v23  ;;  %v2046_v25 = vpop.permute.xlu0 %2045 }
 0x643   : > { %4021 = vrot.lane.b32.xlu0 %v10842_v19, %s9977_s24  ;;  %8928 = vmatpush3.xpose.msk.msra.mxu0 %vm1894_vm5, %v2046_v25 }
 0x644   : > { %8937 = vmatprep.subr.mxu0 %v12059_v62  ;;  %8932 = vmatprep.subr.mxu1 %v12059_v62 }
 0x645   : > { %8925 = vmatmul.mubr.msk.f32.vlgmr.msra.gmra.mrb[16].mxu1 %vm1894_vm5, %v10702_v44  ;;  %v10874_v29 = vpop.permute.xlu1 %1890 }
 0x646   : > { %4249 = vrot.lane.b32.xlu1 %v10874_v29, %s9977_s24  ;;  %8930 = vmatmul.mubr.msk.f32.vlgmr.msra.gmra.mrb[10].mxu0 %vm1894_vm5, %v10718_v47  ;;  %v2198_v57 = vpop.permute.xlu0 %2197 }
 0x647   : > { %4173 = vrot.lane.b32.xlu0 %v10858_v22, %s9977_s24  ;;  %8938 = vmatpush3.xpose.msk.msra.mxu0 %vm1894_vm5, %v2198_v57 }
 0x648   : > { %8939 = vmatprep.mubr.msk.f32.mxu0 %vm9976_vm4, %v12059_v62  ;;  %8947 = vmatprep.subr.mxu0 %v12059_v62 }
 0x649   : > { %v2122_v9 = vpop.permute.xlu1 %2121  ;;  %8934 = vmatprep.mubr.msk.f32.mxu1 %vm9976_vm4, %v12059_v62 }
 0x64a   : > { %4785 = vrot.lane.b32.xlu1 %v10702_v44, %s9978_s10  ;;  %8933 = vmatpush3.xpose.msk.msra.mxu1 %vm1894_vm5, %v2122_v9  ;;  %v2350_v30 = vpop.permute.xlu0 %2349 }
 0x64b   : > { %4709 = vrot.lane.b32.xlu0 %v10704_v45, %s9978_s10  ;;  %8940 = vmatmul.mubr.msk.f32.vlgmr.msra.gmra.mrb[12].mxu0 %vm1894_vm5, %v10714_v54 }
 0x64c   : > { %8948 = vmatpush3.xpose.msk.msra.mxu0 %vm1894_vm5, %v2350_v30  ;;  %8942 = vmatprep.subr.mxu1 %v12059_v62 }
 0x64d   : > { %8935 = vmatmul.mubr.msk.f32.vlgmr.msra.gmra.mrb[18].mxu1 %vm1894_vm5, %v10712_v40  ;;  %v2274_v31 = vpop.permute.xlu1 %2273  ;;  %8949 = vmatprep.mubr.msk.f32.mxu0 %vm9976_vm4, %v12059_v62 }
 0x64e   : > { %4937 = vrot.lane.b32.xlu1 %v10712_v40, %s9978_s10  ;;  %8943 = vmatpush3.xpose.msk.msra.mxu1 %vm1894_vm5, %v2274_v31 }
 0x64f   : > { %4861 = vrot.lane.b32.xlu0 %v10718_v47, %s9978_s10  ;;  %8950 = vmatmul.mubr.msk.f32.vlgmr.msra.gmra.mrb[14].mxu0 %vm1894_vm5, %v10720_v60 }
 0x650   : > { %8944 = vmatprep.mubr.msk.f32.mxu1 %vm9976_vm4, %v12059_v62  ;;  %8952 = vmatprep.subr.mxu1 %v12059_v62 }
 0x651   : > { %8945 = vmatmul.mubr.msk.f32.vlgmr.msra.gmra.mrb[20].mxu1 %vm1894_vm5, %v10724_v61  ;;  %v2426_v33 = vpop.permute.xlu1 %2425  ;;  %8957 = vmatprep.subr.mxu0 %v12059_v62 }
 0x652   : > { %5089 = vrot.lane.b32.xlu1 %v10724_v61, %s9978_s10  ;;  %8953 = vmatpush3.xpose.msk.msra.mxu1 %vm1894_vm5, %v2426_v33 }
 0x653   : > { %5013 = vrot.lane.b32.xlu0 %v10714_v54, %s9978_s10  ;;  %8954 = vmatprep.mubr.msk.f32.mxu1 %vm9976_vm4, %v12059_v62 }
 0x654   : > { %8962 = vmatprep.subr.mxu1 %v12059_v62  ;;  %8959 = vmatprep.mubr.msk.f32.mxu0 %vm9976_vm4, %v12059_v62 }
 0x655   : > { %8955 = vmatmul.mubr.msk.f32.vlgmr.msra.gmra.mrb[22].mxu1 %vm1894_vm5, %v10729_v48 }
 0x656   : > { %5241 = vrot.lane.b32.xlu1 %v10729_v48, %s9978_s10  ;;  %8964 = vmatprep.mubr.msk.f32.mxu1 %vm9976_vm4, %v12059_v62 }
 0x657   : > { %5165 = vrot.lane.b32.xlu0 %v10720_v60, %s9978_s10 }
 0x65a   : > { %5393 = vrot.lane.b32.xlu1 %v10772_v63, %s9978_s10 }
 0x65b   : > { %5317 = vrot.lane.b32.xlu0 %v10776_v0, %s9978_s10 }
 0x65e   : > { %5545 = vrot.lane.b32.xlu1 %v10784_v2, %s9978_s10 }
 0x65f   : > { %5469 = vrot.lane.b32.xlu0 %v10790_v55, %s9978_s10 }
 0x662   : > { %5697 = vrot.lane.b32.xlu1 %v10796_v5, %s9978_s10 }
 0x663   : > { %5621 = vrot.lane.b32.xlu0 %v10788_v53, %s9978_s10 }
 0x666   : > { %5849 = vrot.lane.b32.xlu1 %v10804_v7, %s9978_s10 }
 0x667   : > { %5925 = vrot.lane.b32.xlu0 %v10782_v1, %s9978_s10 }
 0x66a   : > { %6001 = vrot.lane.b32.xlu1 %v10780_v52, %s9978_s10 }
 0x66b   : > { %6077 = vrot.lane.b32.xlu0 %v10802_v6, %s9978_s10 }
 0x66e   : > { %6153 = vrot.lane.b32.xlu1 %v10812_v56, %s9978_s10 }
 0x66f   : > { %6533 = vrot.lane.b32.xlu0 %v10818_v10, %s9978_s10 }
 0x672   : > { %6229 = vrot.lane.b32.xlu1 %v10810_v8, %s9978_s10 }
 0x673   : > { %6685 = vrot.lane.b32.xlu0 %v10834_v14, %s9978_s10 }
 0x676   : > { %6305 = vrot.lane.b32.xlu1 %v10820_v11, %s9978_s10 }
 0x677   : > { %5773 = vrot.lane.b32.xlu0 %v10794_v3, %s9978_s10 }
 0x67a   : > { %6457 = vrot.lane.b32.xlu1 %v10828_v13, %s9978_s10 }
 0x67b   : > { %6381 = vrot.lane.b32.xlu0 %v10826_v12, %s9978_s10 }
 0x67e   : > { %6609 = vrot.lane.b32.xlu1 %v10836_v15, %s9978_s10 }
 0x682   : > { %6761 = vrot.lane.b32.xlu1 %v10844_v20, %s9978_s10 }
 0x684   : > { %v2578_v34 = vpop.permute.xlu1 %2577 }
 0x685   : > { %8963 = vmatpush3.xpose.msk.msra.mxu1 %vm1894_vm5, %v2578_v34  ;;  %v2502_v18 = vpop.permute.xlu0 %2501 }
 0x686   : > { %8958 = vmatpush3.xpose.msk.msra.mxu0 %vm1894_vm5, %v2502_v18  ;;  %8972 = vmatprep.subr.mxu1 %v12059_v62 }
 0x687   : > { %8967 = vmatprep.subr.mxu0 %v12059_v62 }
 0x688   : > { %8965 = vmatmul.mubr.msk.f32.vlgmr.msra.gmra.mrb[24].mxu1 %vm1894_vm5, %v10772_v63 }
 0x689   : > { %8960 = vmatmul.mubr.msk.f32.vlgmr.msra.gmra.mrb[16].mxu0 %vm1894_vm5, %v10776_v0  ;;  %8974 = vmatprep.mubr.msk.f32.mxu1 %vm9976_vm4, %v12059_v62 }
 0x68a   : > { %8969 = vmatprep.mubr.msk.f32.mxu0 %vm9976_vm4, %v12059_v62 }
 0x68c   : > { %v2730_v36 = vpop.permute.xlu1 %2729 }
 0x68d   : > { %8973 = vmatpush3.xpose.msk.msra.mxu1 %vm1894_vm5, %v2730_v36 }
 0x68e   : > { %8982 = vmatprep.subr.mxu1 %v12059_v62 }
 0x690   : > { %8975 = vmatmul.mubr.msk.f32.vlgmr.msra.gmra.mrb[26].mxu1 %vm1894_vm5, %v10784_v2  ;;  %v2654_v37 = vpop.permute.xlu0 %2653 }
 0x691   : > { %8968 = vmatpush3.xpose.msk.msra.mxu0 %vm1894_vm5, %v2654_v37  ;;  %8984 = vmatprep.mubr.msk.f32.mxu1 %vm9976_vm4, %v12059_v62 }
 0x692   : > { %8977 = vmatprep.subr.mxu0 %v12059_v62 }
 0x694   : > { %v2882_v39 = vpop.permute.xlu1 %2881  ;;  %8970 = vmatmul.mubr.msk.f32.vlgmr.msra.gmra.mrb[18].mxu0 %vm1894_vm5, %v10790_v55  ;;  %v2806_v27 = vpop.permute.xlu0 %2805 }
 0x695   : > { %8978 = vmatpush3.xpose.msk.msra.mxu0 %vm1894_vm5, %v2806_v27  ;;  %8983 = vmatpush3.xpose.msk.msra.mxu1 %vm1894_vm5, %v2882_v39 }
 0x696   : > { %8979 = vmatprep.mubr.msk.f32.mxu0 %vm9976_vm4, %v12059_v62  ;;  %8992 = vmatprep.subr.mxu1 %v12059_v62 }
 0x697   : > { %8987 = vmatprep.subr.mxu0 %v12059_v62 }
 0x698   : > { %8985 = vmatmul.mubr.msk.f32.vlgmr.msra.gmra.mrb[28].mxu1 %vm1894_vm5, %v10796_v5  ;;  %v3034_v42 = vpop.permute.xlu1 %3033  ;;  %8980 = vmatmul.mubr.msk.f32.vlgmr.msra.gmra.mrb[20].mxu0 %vm1894_vm5, %v10788_v53  ;;  %v2958_v43 = vpop.permute.xlu0 %2957 }
 0x699   : > { %8988 = vmatpush3.xpose.msk.msra.mxu0 %vm1894_vm5, %v2958_v43  ;;  %8993 = vmatpush3.xpose.msk.msra.mxu1 %vm1894_vm5, %v3034_v42 }
 0x69a   : > { %8989 = vmatprep.mubr.msk.f32.mxu0 %vm9976_vm4, %v12059_v62  ;;  %8994 = vmatprep.mubr.msk.f32.mxu1 %vm9976_vm4, %v12059_v62 }
 0x69b   : > { %9002 = vmatprep.subr.mxu1 %v12059_v62  ;;  %8997 = vmatprep.subr.mxu0 %v12059_v62 }
 0x69c   : > { %8995 = vmatmul.mubr.msk.f32.vlgmr.msra.gmra.mrb[30].mxu1 %vm1894_vm5, %v10804_v7  ;;  %v3186_v44 = vpop.permute.xlu1 %3185  ;;  %8990 = vmatmul.mubr.msk.f32.vlgmr.msra.gmra.mrb[22].mxu0 %vm1894_vm5, %v10794_v3  ;;  %v3110_v35 = vpop.permute.xlu0 %3109 }
 0x69d   : > { %8998 = vmatpush3.xpose.msk.msra.mxu0 %vm1894_vm5, %v3110_v35  ;;  %9003 = vmatpush3.xpose.msk.msra.mxu1 %vm1894_vm5, %v3186_v44 }
 0x69e   : > { %8999 = vmatprep.mubr.msk.f32.mxu0 %vm9976_vm4, %v12059_v62  ;;  %9004 = vmatprep.mubr.msk.f32.mxu1 %vm9976_vm4, %v12059_v62 }
 0x69f   : > { %9012 = vmatprep.subr.mxu1 %v12059_v62  ;;  %9007 = vmatprep.subr.mxu0 %v12059_v62 }
 0x6a0   : > { %9005 = vmatmul.mubr.msk.f32.vlgmr.msra.gmra.mrb[32].mxu1 %vm1894_vm5, %v10780_v52  ;;  %v3338_v45 = vpop.permute.xlu1 %3337  ;;  %9000 = vmatmul.mubr.msk.f32.vlgmr.msra.gmra.mrb[24].mxu0 %vm1894_vm5, %v10782_v1  ;;  %v3262_v46 = vpop.permute.xlu0 %3261 }
 0x6a1   : > { %9008 = vmatpush3.xpose.msk.msra.mxu0 %vm1894_vm5, %v3262_v46  ;;  %9013 = vmatpush3.xpose.msk.msra.mxu1 %vm1894_vm5, %v3338_v45 }
 0x6a2   : > { %9009 = vmatprep.mubr.msk.f32.mxu0 %vm9976_vm4, %v12059_v62  ;;  %9014 = vmatprep.mubr.msk.f32.mxu1 %vm9976_vm4, %v12059_v62 }
 0x6a3   : > { %9022 = vmatprep.subr.mxu1 %v12059_v62  ;;  %9017 = vmatprep.subr.mxu0 %v12059_v62 }
 0x6a4   : > { %9015 = vmatmul.mubr.msk.f32.vlgmr.msra.gmra.mrb[34].mxu1 %vm1894_vm5, %v10812_v56  ;;  %v3490_v49 = vpop.permute.xlu1 %3489  ;;  %9010 = vmatmul.mubr.msk.f32.vlgmr.msra.gmra.mrb[26].mxu0 %vm1894_vm5, %v10802_v6  ;;  %v3414_v50 = vpop.permute.xlu0 %3413 }
 0x6a5   : > { %9018 = vmatpush3.xpose.msk.msra.mxu0 %vm1894_vm5, %v3414_v50  ;;  %9023 = vmatpush3.xpose.msk.msra.mxu1 %vm1894_vm5, %v3490_v49 }
 0x6a6   : > { %9019 = vmatprep.mubr.msk.f32.mxu0 %vm9976_vm4, %v12059_v62  ;;  %9024 = vmatprep.mubr.msk.f32.mxu1 %vm9976_vm4, %v12059_v62 }
 0x6a7   : > { %9032 = vmatprep.subr.mxu1 %v12059_v62  ;;  %9027 = vmatprep.subr.mxu0 %v12059_v62 }
 0x6a8   : > { %9025 = vmatmul.mubr.msk.f32.vlgmr.msra.gmra.mrb[36].mxu1 %vm1894_vm5, %v10820_v11  ;;  %v3642_v40 = vpop.permute.xlu1 %3641  ;;  %9020 = vmatmul.mubr.msk.f32.vlgmr.msra.gmra.mrb[28].mxu0 %vm1894_vm5, %v10810_v8  ;;  %v3566_v51 = vpop.permute.xlu0 %3565 }
 0x6a9   : > { %9028 = vmatpush3.xpose.msk.msra.mxu0 %vm1894_vm5, %v3566_v51  ;;  %9033 = vmatpush3.xpose.msk.msra.mxu1 %vm1894_vm5, %v3642_v40 }
 0x6aa   : > { %9029 = vmatprep.mubr.msk.f32.mxu0 %vm9976_vm4, %v12059_v62  ;;  %9034 = vmatprep.mubr.msk.f32.mxu1 %vm9976_vm4, %v12059_v62 }
 0x6ab   : > { %9042 = vmatprep.subr.mxu1 %v12059_v62  ;;  %9037 = vmatprep.subr.mxu0 %v12059_v62 }
 0x6ac   : > { %9035 = vmatmul.mubr.msk.f32.vlgmr.msra.gmra.mrb[38].mxu1 %vm1894_vm5, %v10828_v13  ;;  %v3794_v54 = vpop.permute.xlu1 %3793  ;;  %9030 = vmatmul.mubr.msk.f32.vlgmr.msra.gmra.mrb[30].mxu0 %vm1894_vm5, %v10826_v12  ;;  %v3718_v58 = vpop.permute.xlu0 %3717 }
 0x6ad   : > { %9038 = vmatpush3.xpose.msk.msra.mxu0 %vm1894_vm5, %v3718_v58  ;;  %9043 = vmatpush3.xpose.msk.msra.mxu1 %vm1894_vm5, %v3794_v54 }
 0x6ae   : > { %9039 = vmatprep.mubr.msk.f32.mxu0 %vm9976_vm4, %v12059_v62  ;;  %9044 = vmatprep.mubr.msk.f32.mxu1 %vm9976_vm4, %v12059_v62 }
 0x6af   : > { %9052 = vmatprep.subr.mxu1 %v12059_v62  ;;  %9047 = vmatprep.subr.mxu0 %v12059_v62 }
 0x6b0   : > { %9045 = vmatmul.mubr.msk.f32.vlgmr.msra.gmra.mrb[40].mxu1 %vm1894_vm5, %v10836_v15  ;;  %v3946_v47 = vpop.permute.xlu1 %3945  ;;  %9040 = vmatmul.mubr.msk.f32.vlgmr.msra.gmra.mrb[32].mxu0 %vm1894_vm5, %v10818_v10  ;;  %v3870_v59 = vpop.permute.xlu0 %3869 }
 0x6b1   : > { %9048 = vmatpush3.xpose.msk.msra.mxu0 %vm1894_vm5, %v3870_v59  ;;  %9053 = vmatpush3.xpose.msk.msra.mxu1 %vm1894_vm5, %v3946_v47 }
 0x6b2   : > { %9049 = vmatprep.mubr.msk.f32.mxu0 %vm9976_vm4, %v12059_v62  ;;  %9054 = vmatprep.mubr.msk.f32.mxu1 %vm9976_vm4, %v12059_v62 }
 0x6b3   : > { %9062 = vmatprep.subr.mxu1 %v12059_v62  ;;  %9057 = vmatprep.subr.mxu0 %v12059_v62 }
 0x6b4   : > { %9055 = vmatmul.mubr.msk.f32.vlgmr.msra.gmra.mrb[42].mxu1 %vm1894_vm5, %v10844_v20  ;;  %v4098_v60 = vpop.permute.xlu1 %4097  ;;  %9050 = vmatmul.mubr.msk.f32.vlgmr.msra.gmra.mrb[34].mxu0 %vm1894_vm5, %v10834_v14 }
 0x6b5   : > { %v4022_v61 = vpop.permute.xlu0 %4021  ;;  %9063 = vmatpush3.xpose.msk.msra.mxu1 %vm1894_vm5, %v4098_v60  ;;  %9059 = vmatprep.mubr.msk.f32.mxu0 %vm9976_vm4, %v12059_v62 }
 0x6b6   : > { %9058 = vmatpush3.xpose.msk.msra.mxu0 %vm1894_vm5, %v4022_v61  ;;  %9064 = vmatprep.mubr.msk.f32.mxu1 %vm9976_vm4, %v12059_v62 }
 0x6b7   : > { %9072 = vmatprep.subr.mxu1 %v12059_v62  ;;  %9067 = vmatprep.subr.mxu0 %v12059_v62 }
 0x6b8   : > { %9065 = vmatmul.mubr.msk.f32.vlgmr.msra.gmra.mrb[44].mxu1 %vm1894_vm5, %v10852_v21  ;;  %v4250_v48 = vpop.permute.xlu1 %4249 }
 0x6b9   : > { %9060 = vmatmul.mubr.msk.f32.vlgmr.msra.gmra.mrb[36].mxu0 %vm1894_vm5, %v10842_v19  ;;  %v4174_v63 = vpop.permute.xlu0 %4173  ;;  %9073 = vmatpush3.xpose.msk.msra.mxu1 %vm1894_vm5, %v4250_v48 }
 0x6ba   : > { %9068 = vmatpush3.xpose.msk.msra.mxu0 %vm1894_vm5, %v4174_v63  ;;  %9069 = vmatprep.mubr.msk.f32.mxu0 %vm9976_vm4, %v12059_v62 }
 0x6bb   : > { %9074 = vmatprep.mubr.msk.f32.mxu1 %vm9976_vm4, %v12059_v62  ;;  %9082 = vmatprep.subr.mxu1 %v12059_v62 }
 0x6bc   : > { %9075 = vmatmul.mubr.msk.f32.vlgmr.msra.gmra.mrb[46].mxu1 %vm1894_vm5, %v10874_v29  ;;  %v4786_v0 = vpop.permute.xlu1 %4785  ;;  %9077 = vmatprep.subr.mxu0 %v12059_v62 }
 0x6bd   : > { %9070 = vmatmul.mubr.msk.f32.vlgmr.msra.gmra.mrb[38].mxu0 %vm1894_vm5, %v10858_v22  ;;  %v4710_v52 = vpop.permute.xlu0 %4709  ;;  %9083 = vmatpush3.msra.mxu1 %v4786_v0 }
 0x6be   : > { %9078 = vmatpush3.msra.mxu0 %v4710_v52  ;;  %9079 = vmatprep.mubr.msk.f32.mxu0 %vm9976_vm4, %v12059_v62 }
 0x6bf   : > { %9087 = vmatprep.subr.mxu0 %v12059_v62  ;;  %9084 = vmatprep.mubr.msk.f32.mxu1 %vm9976_vm4, %v12059_v62 }
 0x6c0   : > { %9092 = vmatprep.subr.mxu1 %v12059_v62  ;;  %v11150_v43 = vpop.permute.xlu1 %4937 }
 0x6c1   : > { %v11152_v44 = vpop.permute.xlu0 %4861 }
 0x6c4   : > { %v11154_v35 = vpop.permute.xlu1 %5089 }
 0x6c5   : > { %v11156_v45 = vpop.permute.xlu0 %5013 }
 0x6c8   : > { %v11158_v46 = vpop.permute.xlu1 %5241 }
 0x6c9   : > { %v11168_v60 = vpop.permute.xlu0 %5165 }
 0x6cc   : > { %v11170_v61 = vpop.permute.xlu1 %5393 }
 0x712   : > { %v1965_v1 = vpop.f32.mrb[8].mxu0 }
 0x713   : > { %v11118_v2 = vmul.f32 0.35355338, %v1965_v1  ;;  %v8921_v53 = vpop.f32.mrb[9].mxu0  ;;  %v11176_v1 = vpop.permute.xlu0 %5317 }
 0x715   : > { %v4357_v55 = vsel %vm1894_vm5, %v11118_v2, -inf }
 0x716   : > { %4358 = vmax.xlane.f32.xlu0 %v4357_v55  ;;  %v11178_v55 = vpop.permute.xlu1 %5545 }
 0x718   : > { %v2041_v3 = vpop.f32.mrb[16].mxu1 }
 0x719   : > { %v11122_v5 = vmul.f32 0.35355338, %v2041_v3  ;;  %v8926_v6 = vpop.f32.mrb[17].mxu1  ;;  %v2117_v7 = vpop.f32.mrb[10].mxu0 }
 0x71a   : > { %v8931_v8 = vpop.f32.mrb[11].mxu0  ;;  %v11128_v20 = vmul.f32 0.35355338, %v2117_v7 }
 0x71b   : > { %v4360_v56 = vsel %vm1894_vm5, %v11122_v5, -inf }
 0x71c   : > { %4361 = vmax.xlane.f32.xlu1 %v4360_v56  ;;  %v4363_v33 = vsel %vm1894_vm5, %v11128_v20, -inf }
 0x71e   : > { %v2269_v10 = vpop.f32.mrb[12].mxu0 }
 0x71f   : > { %v8941_v11 = vpop.f32.mrb[13].mxu0  ;;  %v11134_v30 = vmul.f32 0.35355338, %v2269_v10 }
 0x720   : > { %v2193_v12 = vpop.f32.mrb[18].mxu1 }
 0x721   : > { %v11126_v13 = vmul.f32 0.35355338, %v2193_v12  ;;  %v8936_v14 = vpop.f32.mrb[19].mxu1  ;;  %v4369_v27 = vsel %vm1894_vm5, %v11134_v30, -inf }
 0x722   : > { %v2421_v15 = vpop.f32.mrb[14].mxu0 }
 0x723   : > { %v8951_v4 = vpop.f32.mrb[15].mxu0  ;;  %v4366_v23 = vsel %vm1894_vm5, %v11126_v13, -inf  ;;  %v11142_v37 = vmul.f32 0.35355338, %v2421_v15  ;;  %v11188_v15 = vpop.permute.xlu0 %5469 }
 0x724   : > { %v2345_v25 = vpop.f32.mrb[20].mxu1  ;;  %4367 = vmax.xlane.f32.xlu0 %v4366_v23  ;;  %v11190_v4 = vpop.permute.xlu1 %5697 }
 0x725   : > { %v11132_v57 = vmul.f32 0.35355338, %v2345_v25  ;;  %v8946_v9 = vpop.f32.mrb[21].mxu1  ;;  %v4375_v42 = vsel %vm1894_vm5, %v11142_v37, -inf }
 0x727   : > { %v4372_v31 = vsel %vm1894_vm5, %v11132_v57, -inf }
 0x728   : > { %v2497_v34 = vpop.f32.mrb[22].mxu1  ;;  %4373 = vmax.xlane.f32.xlu1 %v4372_v31  ;;  %4364 = vmax.xlane.f32.xlu0 %v4363_v33 }
 0x729   : > { %v11140_v18 = vmul.f32 0.35355338, %v2497_v34  ;;  %v8956_v36 = vpop.f32.mrb[23].mxu1 }
 0x72b   : > { %v4378_v39 = vsel %vm1894_vm5, %v11140_v18, -inf }
 0x72c   : > { %4379 = vmax.xlane.f32.xlu1 %v4378_v39  ;;  %4370 = vmax.xlane.f32.xlu0 %v4369_v27 }
 0x730   : > { %4376 = vmax.xlane.f32.xlu0 %v4375_v42 }
 0x75b   : > { %v2649_v49 = vpop.f32.mrb[24].mxu1 }
 0x75c   : > { %v11160_v50 = vmul.f32 0.35355338, %v2649_v49  ;;  %v2573_v40 = vpop.f32.mrb[16].mxu0  ;;  %v8966_v51 = vpop.f32.mrb[25].mxu1 }
 0x75d   : > { %v11162_v54 = vmul.f32 0.35355338, %v2573_v40  ;;  %v8961_v58 = vpop.f32.mrb[17].mxu0 }
 0x75e   : > { %v4384_v47 = vsel %vm1894_vm5, %v11160_v50, -inf }
 0x75f   : > { %4385 = vmax.xlane.f32.xlu1 %v4384_v47  ;;  %v4381_v59 = vsel %vm1894_vm5, %v11162_v54, -inf }
 0x760   : > { %4382 = vmax.xlane.f32.xlu0 %v4381_v59 }
 0x763   : > { %v2801_v48 = vpop.f32.mrb[26].mxu1 }
 0x764   : > { %v11172_v63 = vmul.f32 0.35355338, %v2801_v48  ;;  %v8976_v0 = vpop.f32.mrb[27].mxu1  ;;  %v11208_v48 = vpop.permute.xlu0 %5621 }
 0x765   : > { %v11210_v0 = vpop.permute.xlu1 %5849 }
 0x766   : > { %v4390_v52 = vsel %vm1894_vm5, %v11172_v63, -inf }
 0x767   : > { %4391 = vmax.xlane.f32.xlu1 %v4390_v52  ;;  %v2725_v53 = vpop.f32.mrb[18].mxu0 }
 0x768   : > { %v11180_v3 = vmul.f32 0.35355338, %v2725_v53  ;;  %v8971_v6 = vpop.f32.mrb[19].mxu0 }
 0x76a   : > { %v4387_v7 = vsel %vm1894_vm5, %v11180_v3, -inf }
 0x76b   : > { %v2953_v8 = vpop.f32.mrb[28].mxu1  ;;  %4388 = vmax.xlane.f32.xlu0 %v4387_v7  ;;  %v2877_v56 = vpop.f32.mrb[20].mxu0 }
 0x76c   : > { %v11184_v10 = vmul.f32 0.35355338, %v2953_v8  ;;  %v11186_v11 = vmul.f32 0.35355338, %v2877_v56  ;;  %v8981_v12 = vpop.f32.mrb[21].mxu0  ;;  %v8986_v14 = vpop.f32.mrb[29].mxu1 }
 0x76e   : > { %v4396_v23 = vsel %vm1894_vm5, %v11184_v10, -inf  ;;  %v4393_v25 = vsel %vm1894_vm5, %v11186_v11, -inf }
 0x76f   : > { %v3105_v9 = vpop.f32.mrb[30].mxu1  ;;  %4397 = vmax.xlane.f32.xlu1 %v4396_v23  ;;  %4394 = vmax.xlane.f32.xlu0 %v4393_v25  ;;  %v3029_v31 = vpop.f32.mrb[22].mxu0 }
 0x770   : > { %v11196_v33 = vmul.f32 0.35355338, %v3105_v9  ;;  %v11198_v34 = vmul.f32 0.35355338, %v3029_v31  ;;  %v8991_v36 = vpop.f32.mrb[23].mxu0  ;;  %v8996_v39 = vpop.f32.mrb[31].mxu1 }
 0x772   : > { %v4402_v27 = vsel %vm1894_vm5, %v11196_v33, -inf  ;;  %v4399_v42 = vsel %vm1894_vm5, %v11198_v34, -inf }
 0x773   : > { %v3257_v49 = vpop.f32.mrb[32].mxu1  ;;  %4403 = vmax.xlane.f32.xlu1 %v4402_v27  ;;  %4400 = vmax.xlane.f32.xlu0 %v4399_v42  ;;  %v3181_v40 = vpop.f32.mrb[24].mxu0 }
 0x774   : > { %v11204_v51 = vmul.f32 0.35355338, %v3257_v49  ;;  %v11206_v58 = vmul.f32 0.35355338, %v3181_v40  ;;  %v9001_v47 = vpop.f32.mrb[25].mxu0  ;;  %v9006_v59 = vpop.f32.mrb[33].mxu1 }
 0x775   : > { %v11228_v49 = vpop.permute.xlu0 %5925  ;;  %v11230_v40 = vpop.permute.xlu1 %6001 }
 0x776   : > { %v4408_v52 = vsel %vm1894_vm5, %v11204_v51, -inf  ;;  %v4405_v53 = vsel %vm1894_vm5, %v11206_v58, -inf  ;;  %12163 = vst [vmem:[#allocation44_spill] sm:$0xff] %v11228_v49  ;;  %12164 = vst [vmem:[#allocation45_spill] sm:$0xff] %v11230_v40 }
 0x777   : > { %v3409_v6 = vpop.f32.mrb[34].mxu1  ;;  %4409 = vmax.xlane.f32.xlu1 %v4408_v52  ;;  %4406 = vmax.xlane.f32.xlu0 %v4405_v53  ;;  %v3333_v7 = vpop.f32.mrb[26].mxu0 }
 0x778   : > { %v11216_v8 = vmul.f32 0.35355338, %v3409_v6  ;;  %v11218_v56 = vmul.f32 0.35355338, %v3333_v7  ;;  %v9011_v12 = vpop.f32.mrb[27].mxu0  ;;  %v9016_v14 = vpop.f32.mrb[35].mxu1 }
 0x77a   : > { %v4414_v23 = vsel %vm1894_vm5, %v11216_v8, -inf  ;;  %v4411_v25 = vsel %vm1894_vm5, %v11218_v56, -inf }
 0x77b   : > { %v3561_v9 = vpop.f32.mrb[36].mxu1  ;;  %4415 = vmax.xlane.f32.xlu1 %v4414_v23  ;;  %4412 = vmax.xlane.f32.xlu0 %v4411_v25  ;;  %v3485_v31 = vpop.f32.mrb[28].mxu0 }
 0x77c   : > { %v11224_v36 = vmul.f32 0.35355338, %v3561_v9  ;;  %v11226_v39 = vmul.f32 0.35355338, %v3485_v31  ;;  %v9021_v27 = vpop.f32.mrb[29].mxu0  ;;  %v9026_v42 = vpop.f32.mrb[37].mxu1 }
 0x77e   : > { %v4420_v47 = vsel %vm1894_vm5, %v11224_v36, -inf  ;;  %v4417_v59 = vsel %vm1894_vm5, %v11226_v39, -inf }
 0x77f   : > { %v3713_v52 = vpop.f32.mrb[38].mxu1  ;;  %4421 = vmax.xlane.f32.xlu1 %v4420_v47  ;;  %4418 = vmax.xlane.f32.xlu0 %v4417_v59  ;;  %v3637_v53 = vpop.f32.mrb[30].mxu0 }
 0x780   : > { %v11236_v6 = vmul.f32 0.35355338, %v3713_v52  ;;  %v11238_v7 = vmul.f32 0.35355338, %v3637_v53  ;;  %v9031_v12 = vpop.f32.mrb[31].mxu0  ;;  %v9036_v14 = vpop.f32.mrb[39].mxu1 }
 0x781   : > { %v11248_v52 = vpop.permute.xlu0 %6077  ;;  %v11250_v53 = vpop.permute.xlu1 %6153 }
 0x782   : > { %v4426_v23 = vsel %vm1894_vm5, %v11236_v6, -inf  ;;  %v4423_v25 = vsel %vm1894_vm5, %v11238_v7, -inf  ;;  %12165 = vst [vmem:[#allocation46_spill] sm:$0xff] %v11248_v52  ;;  %12166 = vst [vmem:[#allocation47_spill] sm:$0xff] %v11250_v53 }
 0x783   : > { %v3865_v9 = vpop.f32.mrb[40].mxu1  ;;  %4427 = vmax.xlane.f32.xlu1 %v4426_v23  ;;  %4424 = vmax.xlane.f32.xlu0 %v4423_v25  ;;  %v3789_v31 = vpop.f32.mrb[32].mxu0 }
 0x784   : > { %v11244_v27 = vmul.f32 0.35355338, %v3865_v9  ;;  %v11246_v42 = vmul.f32 0.35355338, %v3789_v31  ;;  %v9041_v47 = vpop.f32.mrb[33].mxu0  ;;  %v9046_v59 = vpop.f32.mrb[41].mxu1 }
 0x785   : > { %v11264_v28 = vpop.permute.xlu0 %6533  ;;  %v11268_v38 = vpop.permute.xlu1 %6229 }
 0x786   : > { %v4432_v12 = vsel %vm1894_vm5, %v11244_v27, -inf  ;;  %v4429_v14 = vsel %vm1894_vm5, %v11246_v42, -inf  ;;  %12167 = vst [vmem:[#allocation48_spill] sm:$0xff] %v11264_v28  ;;  %12168 = vst [vmem:[#allocation49_spill] sm:$0xff] %v11268_v38 }
 0x787   : > { %v4017_v62 = vpop.f32.mrb[42].mxu1  ;;  %4433 = vmax.xlane.f32.xlu1 %v4432_v12  ;;  %4430 = vmax.xlane.f32.xlu0 %v4429_v14  ;;  %v3941_v23 = vpop.f32.mrb[34].mxu0 }
 0x788   : > { %v11256_v25 = vmul.f32 0.35355338, %v4017_v62  ;;  %v11258_v9 = vmul.f32 0.35355338, %v3941_v23  ;;  %v9051_v31 = vpop.f32.mrb[35].mxu0  ;;  %v9056_v47 = vpop.f32.mrb[43].mxu1 }
 0x789   : > { %v11276_v16 = vpop.permute.xlu0 %6685 }
 0x78a   : > { %v4438_v59 = vsel %vm1894_vm5, %v11256_v25, -inf  ;;  %v4435_v41 = vsel %vm1894_vm5, %v11258_v9, -inf  ;;  %12169 = vst [vmem:[#allocation50_spill] sm:$0xff] %v11276_v16 }
 0x78b   : > { %v4169_v17 = vpop.f32.mrb[44].mxu1  ;;  %4439 = vmax.xlane.f32.xlu1 %v4438_v59  ;;  %4436 = vmax.xlane.f32.xlu0 %v4435_v41 }
 0x78c   : > { %v11266_v12 = vmul.f32 0.35355338, %v4169_v17  ;;  %v4093_v14 = vpop.f32.mrb[36].mxu0  ;;  %v9066_v62 = vpop.f32.mrb[45].mxu1 }
 0x78d   : > { %v11270_v23 = vmul.f32 0.35355338, %v4093_v14  ;;  %v9061_v31 = vpop.f32.mrb[37].mxu0  ;;  %v11278_v62 = vpop.permute.xlu1 %6305 }
 0x78e   : > { %v4444_v47 = vsel %vm1894_vm5, %v11266_v12, -inf  ;;  %12170 = vst [vmem:[#allocation51_spill] sm:$0xff] %v11278_v62  ;;  %v11280_v24 = vpop.permute.xlu0 %5773 }
 0x78f   : > { %v4321_v26 = vpop.f32.mrb[46].mxu1  ;;  %4445 = vmax.xlane.f32.xlu1 %v4444_v47  ;;  %v4441_v32 = vsel %vm1894_vm5, %v11270_v23, -inf }
 0x790   : > { %4442 = vmax.xlane.f32.xlu0 %v4441_v32  ;;  %v4245_v59 = vpop.f32.mrb[38].mxu0  ;;  %v9076_v41 = vpop.f32.mrb[47].mxu1 }
 0x791   : > { %v9071_v17 = vpop.f32.mrb[39].mxu0  ;;  %v11282_v14 = vpop.permute.xlu1 %6457  ;;  %v11294_v52 = vmul.f32 0.35355338, %v4245_v59 }
 0x792   : > { %12171 = vst [vmem:[#allocation52_spill] sm:$0xff] %v11282_v14  ;;  %v11284_v31 = vpop.permute.xlu0 %6381 }
 0x793   : > { %12172 = vst [vmem:[#allocation53_spill] sm:$0xff] %v11284_v31 }
 0x795   : > { %v11286_v28 = vpop.permute.xlu1 %6609 }
 0x796   : > { %12173 = vst [vmem:[#allocation54_spill] sm:$0xff] %v11286_v28 }
 0x799   : > { %v11289_v53 = vpop.permute.xlu1 %6761 }
 0x79a   : > { %12174 = vst [vmem:[#allocation55_spill] sm:$0xff] %v11289_v53 }
 0x7a3   : > { %v4359_v47 = vpop.xlane.xlu0 %4358 }
 0x7a4   : > { %v4453_v38 = vsub.f32 %v11118_v2, %v4359_v47  ;;  %v4447_v2 = vsel %vm1894_vm5, %v11294_v52, -inf }
 0x7a6   : > { %v4485_v32 = vmul.f32 1.442695, %v4453_v38  ;;  %v11302_v38 = vmul.f32 0.35355338, %v4321_v26 }
 0x7a8   : > { %9536 = vpow2.f32 %v4485_v32 }
 0x7a9   : > { %v4362_v41 = vpop.xlane.xlu1 %4361 }
 0x7aa   : > { %v4454_v17 = vsub.f32 %v11122_v5, %v4362_v41 }
 0x7ac   : > { %v4487_v16 = vmul.f32 1.442695, %v4454_v17 }
 0x7ae   : > { %9538 = vpow2.f32 %v4487_v16  ;;  %v4450_v16 = vsel %vm1894_vm5, %v11302_v38, -inf }
 0x7b1   : > { %v4368_v59 = vpop.xlane.xlu0 %4367 }
 0x7b2   : > { %v11292_v62 = vpop.eup %9536  ;;  %v4456_v53 = vsub.f32 %v11126_v13, %v4368_v59 }
 0x7b3   : > { %v4549_v14 = vsel %vm1894_vm5, %v11292_v62, 0.0 }
 0x7b4   : > { %4550 = vadd.xlane.f32.xlu0 %v4549_v14  ;;  %v4491_v31 = vmul.f32 1.442695, %v4456_v53 }
 0x7b5   : > { %v4365_v14 = vpop.xlane.xlu0 %4364 }
 0x7b6   : > { %v4455_v26 = vsub.f32 %v11128_v20, %v4365_v14 }
 0x7b8   : > { %v11300_v47 = vpop.eup %9538  ;;  %4448 = vmax.xlane.f32.xlu0 %v4447_v2  ;;  %v4489_v41 = vmul.f32 1.442695, %v4455_v26  ;;  %v4374_v2 = vpop.xlane.xlu1 %4373 }
 0x7b9   : > { %v4552_v5 = vsel %vm1894_vm5, %v11300_v47, 0.0  ;;  %v4371_v32 = vpop.xlane.xlu0 %4370 }
 0x7ba   : > { %4553 = vadd.xlane.f32.xlu1 %v4552_v5  ;;  %v4457_v17 = vsub.f32 %v11134_v30, %v4371_v32  ;;  %9540 = vpow2.f32 %v4489_v41 }
 0x7bc   : > { %v4380_v40 = vpop.xlane.xlu1 %4379 }
 0x7bd   : > { %v4377_v5 = vpop.xlane.xlu0 %4376  ;;  %v4460_v20 = vsub.f32 %v11140_v18, %v4380_v40 }
 0x7be   : > { %4451 = vmax.xlane.f32.xlu1 %v4450_v16  ;;  %v4493_v16 = vmul.f32 1.442695, %v4457_v17  ;;  %v4459_v28 = vsub.f32 %v11142_v37, %v4377_v5 }
 0x7bf   : > { %v4499_v14 = vmul.f32 1.442695, %v4460_v20 }
 0x7c0   : > { %9542 = vpow2.f32 %v4493_v16 }
 0x7c1   : > { %9544 = vpow2.f32 %v4491_v31 }
 0x7c4   : > { %v11318_v30 = vpop.eup %9540 }
 0x7c5   : > { %v4555_v59 = vsel %vm1894_vm5, %v11318_v30, 0.0 }
 0x7ca   : > { %v11322_v37 = vpop.eup %9542 }
 0x7cb   : > { %v11326_v31 = vpop.eup %9544 }
 0x7cc   : > { %v4558_v26 = vsel %vm1894_vm5, %v11326_v31, 0.0 }
 0x7ce   : > { %6837 = vrot.lane.b32.xlu0 %v10842_v19, %s9978_s10  ;;  %v4458_v19 = vsub.f32 %v11132_v57, %v4374_v2 }
 0x7cf   : > { %6913 = vrot.lane.b32.xlu1 %v10852_v21, %s9978_s10  ;;  %v4497_v21 = vmul.f32 1.442695, %v4459_v28 }
 0x7d0   : > { %v4495_v49 = vmul.f32 1.442695, %v4458_v19 }
 0x7d1   : > { %9546 = vpow2.f32 %v4497_v21 }
 0x7d2   : > { %9548 = vpow2.f32 %v4495_v49  ;;  %v4561_v49 = vsel %vm1894_vm5, %v11322_v37, 0.0 }
 0x7d3   : > { %9550 = vpow2.f32 %v4499_v14 }
 0x7db   : > { %v11330_v32 = vpop.eup %9546 }
 0x7ec   : > { %v4386_v13 = vpop.xlane.xlu1 %4385 }
 0x7ed   : > { %v4462_v57 = vsub.f32 %v11160_v50, %v4386_v13  ;;  %4556 = vadd.xlane.f32.xlu0 %v4555_v59  ;;  %v4383_v28 = vpop.xlane.xlu0 %4382  ;;  %v11334_v50 = vpop.eup %9548 }
 0x7ee   : > { %v4461_v53 = vsub.f32 %v11162_v54, %v4383_v28  ;;  %v4567_v54 = vsel %vm1894_vm5, %v11330_v32, 0.0  ;;  %v4564_v2 = vsel %vm1894_vm5, %v11334_v50, 0.0  ;;  %v11341_v5 = vpop.eup %9550 }
 0x7ef   : > { %v4503_v18 = vmul.f32 1.442695, %v4462_v57  ;;  %v4570_v20 = vsel %vm1894_vm5, %v11341_v5, 0.0 }
 0x7f0   : > { %v4501_v40 = vmul.f32 1.442695, %v4461_v53 }
 0x7f1   : > { %9552 = vpow2.f32 %v4503_v18  ;;  %4562 = vadd.xlane.f32.xlu0 %v4561_v49 }
 0x7f2   : > { %9554 = vpow2.f32 %v4501_v40 }
 0x7f3   : > { %4559 = vadd.xlane.f32.xlu1 %v4558_v26 }
 0x7f4   : > { %v4392_v41 = vpop.xlane.xlu1 %4391 }
 0x7f5   : > { %v4464_v17 = vsub.f32 %v11172_v63, %v4392_v41  ;;  %4568 = vadd.xlane.f32.xlu0 %v4567_v54 }
 0x7f7   : > { %v4507_v16 = vmul.f32 1.442695, %v4464_v17  ;;  %4565 = vadd.xlane.f32.xlu1 %v4564_v2 }
 0x7f8   : > { %v4389_v19 = vpop.xlane.xlu0 %4388 }
 0x7f9   : > { %9556 = vpow2.f32 %v4507_v16  ;;  %v4463_v21 = vsub.f32 %v11180_v3, %v4389_v19 }
 0x7fb   : > { %v11346_v14 = vpop.eup %9552  ;;  %v4505_v13 = vmul.f32 1.442695, %v4463_v21  ;;  %4571 = vadd.xlane.f32.xlu1 %v4570_v20 }
 0x7fc   : > { %v11348_v63 = vpop.eup %9554  ;;  %v4398_v59 = vpop.xlane.xlu1 %4397  ;;  %v4576_v3 = vsel %vm1894_vm5, %v11346_v14, 0.0 }
 0x7fd   : > { %v4395_v57 = vpop.xlane.xlu0 %4394  ;;  %9558 = vpow2.f32 %v4505_v13  ;;  %v4466_v28 = vsub.f32 %v11184_v10, %v4398_v59  ;;  %v4573_v18 = vsel %vm1894_vm5, %v11348_v63, 0.0 }
 0x7fe   : > { %v4465_v53 = vsub.f32 %v11186_v11, %v4395_v57  ;;  %4574 = vadd.xlane.f32.xlu0 %v4573_v18 }
 0x7ff   : > { %v4511_v40 = vmul.f32 1.442695, %v4466_v28  ;;  %4577 = vadd.xlane.f32.xlu1 %v4576_v3 }
 0x800   : > { %v4509_v49 = vmul.f32 1.442695, %v4465_v53  ;;  %v4404_v26 = vpop.xlane.xlu1 %4403 }
 0x801   : > { %v4401_v41 = vpop.xlane.xlu0 %4400  ;;  %9560 = vpow2.f32 %v4511_v40  ;;  %v4468_v54 = vsub.f32 %v11196_v33, %v4404_v26 }
 0x802   : > { %v4467_v17 = vsub.f32 %v11198_v34, %v4401_v41  ;;  %9562 = vpow2.f32 %v4509_v49 }
 0x803   : > { %v11358_v10 = vpop.eup %9556  ;;  %v4515_v11 = vmul.f32 1.442695, %v4468_v54 }
 0x804   : > { %v4513_v2 = vmul.f32 1.442695, %v4467_v17  ;;  %v4410_v16 = vpop.xlane.xlu1 %4409  ;;  %v4582_v21 = vsel %vm1894_vm5, %v11358_v10, 0.0 }
 0x805   : > { %v4407_v19 = vpop.xlane.xlu0 %4406  ;;  %9564 = vpow2.f32 %v4515_v11  ;;  %v4470_v20 = vsub.f32 %v11204_v51, %v4410_v16  ;;  %4583 = vadd.xlane.f32.xlu1 %v4582_v21 }
 0x806   : > { %v4469_v13 = vsub.f32 %v11206_v58, %v4407_v19  ;;  %9566 = vpow2.f32 %v4513_v2 }
 0x807   : > { %v11364_v33 = vpop.eup %9558  ;;  %v4519_v34 = vmul.f32 1.442695, %v4470_v20 }
 0x808   : > { %v4517_v59 = vmul.f32 1.442695, %v4469_v13  ;;  %v4416_v57 = vpop.xlane.xlu1 %4415  ;;  %v4579_v53 = vsel %vm1894_vm5, %v11364_v33, 0.0 }
 0x809   : > { %v4413_v28 = vpop.xlane.xlu0 %4412  ;;  %9568 = vpow2.f32 %v4519_v34  ;;  %v4472_v18 = vsub.f32 %v11216_v8, %v4416_v57  ;;  %4580 = vadd.xlane.f32.xlu0 %v4579_v53 }
 0x80a   : > { %v4471_v3 = vsub.f32 %v11218_v56, %v4413_v28  ;;  %9570 = vpow2.f32 %v4517_v59 }
 0x80b   : > { %v11370_v51 = vpop.eup %9560  ;;  %v4523_v58 = vmul.f32 1.442695, %v4472_v18 }
 0x80c   : > { %v4521_v40 = vmul.f32 1.442695, %v4471_v3  ;;  %v11372_v49 = vpop.eup %9562  ;;  %v4422_v26 = vpop.xlane.xlu1 %4421  ;;  %v4588_v54 = vsel %vm1894_vm5, %v11370_v51, 0.0 }
 0x80d   : > { %v4419_v41 = vpop.xlane.xlu0 %4418  ;;  %9572 = vpow2.f32 %v4523_v58  ;;  %v4474_v17 = vsub.f32 %v11224_v36, %v4422_v26  ;;  %4589 = vadd.xlane.f32.xlu1 %v4588_v54  ;;  %v4585_v56 = vsel %vm1894_vm5, %v11372_v49, 0.0 }
 0x80e   : > { %v4473_v8 = vsub.f32 %v11226_v39, %v4419_v41  ;;  %9574 = vpow2.f32 %v4521_v40  ;;  %4586 = vadd.xlane.f32.xlu0 %v4585_v56 }
 0x80f   : > { %v11380_v11 = vpop.eup %9564  ;;  %v4527_v2 = vmul.f32 1.442695, %v4474_v17 }
 0x810   : > { %v4525_v16 = vmul.f32 1.442695, %v4473_v8  ;;  %v11382_v19 = vpop.eup %9566  ;;  %v4428_v21 = vpop.xlane.xlu1 %4427  ;;  %v4594_v13 = vsel %vm1894_vm5, %v11380_v11, 0.0 }
 0x811   : > { %v4425_v20 = vpop.xlane.xlu0 %4424  ;;  %9576 = vpow2.f32 %v4527_v2  ;;  %v4476_v36 = vsub.f32 %v11236_v6, %v4428_v21  ;;  %v4591_v34 = vsel %vm1894_vm5, %v11382_v19, 0.0 }
 0x812   : > { %v4475_v39 = vsub.f32 %v11238_v7, %v4425_v20  ;;  %9578 = vpow2.f32 %v4525_v16  ;;  %4595 = vadd.xlane.f32.xlu0 %v4594_v13  ;;  %4592 = vadd.xlane.f32.xlu1 %v4591_v34 }
 0x813   : > { %v11390_v59 = vpop.eup %9568  ;;  %v4531_v57 = vmul.f32 1.442695, %v4476_v36 }
 0x814   : > { %v4529_v28 = vmul.f32 1.442695, %v4475_v39  ;;  %v11392_v53 = vpop.eup %9570  ;;  %v4434_v18 = vpop.xlane.xlu1 %4433  ;;  %v4600_v58 = vsel %vm1894_vm5, %v11390_v59, 0.0 }
 0x815   : > { %v4431_v3 = vpop.xlane.xlu0 %4430  ;;  %9580 = vpow2.f32 %v4531_v57  ;;  %v4478_v6 = vsub.f32 %v11244_v27, %v4434_v18  ;;  %v4597_v40 = vsel %vm1894_vm5, %v11392_v53, 0.0 }
 0x816   : > { %v4477_v7 = vsub.f32 %v11246_v42, %v4431_v3  ;;  %9582 = vpow2.f32 %v4529_v28  ;;  %4601 = vadd.xlane.f32.xlu0 %v4600_v58  ;;  %4598 = vadd.xlane.f32.xlu1 %v4597_v40 }
 0x817   : > { %v11400_v26 = vpop.eup %9572  ;;  %v4535_v41 = vmul.f32 1.442695, %v4478_v6 }
 0x818   : > { %v4533_v54 = vmul.f32 1.442695, %v4477_v7  ;;  %v11402_v17 = vpop.eup %9574  ;;  %v4440_v8 = vpop.xlane.xlu1 %4439  ;;  %v4606_v2 = vsel %vm1894_vm5, %v11400_v26, 0.0 }
 0x819   : > { %v4437_v56 = vpop.xlane.xlu0 %4436  ;;  %9584 = vpow2.f32 %v4535_v41  ;;  %v4480_v27 = vsub.f32 %v11256_v25, %v4440_v8  ;;  %v4603_v16 = vsel %vm1894_vm5, %v11402_v17, 0.0 }
 0x81a   : > { %v4479_v42 = vsub.f32 %v11258_v9, %v4437_v56  ;;  %9586 = vpow2.f32 %v4533_v54  ;;  %4607 = vadd.xlane.f32.xlu0 %v4606_v2  ;;  %4604 = vadd.xlane.f32.xlu1 %v4603_v16 }
 0x81b   : > { %v11410_v21 = vpop.eup %9576  ;;  %v4539_v20 = vmul.f32 1.442695, %v4480_v27 }
 0x81c   : > { %v4537_v13 = vmul.f32 1.442695, %v4479_v42  ;;  %v11412_v36 = vpop.eup %9578  ;;  %v4446_v39 = vpop.xlane.xlu1 %4445  ;;  %v4612_v34 = vsel %vm1894_vm5, %v11410_v21, 0.0 }
 0x81d   : > { %9588 = vpow2.f32 %v4539_v20  ;;  %v4482_v25 = vsub.f32 %v11266_v12, %v4446_v39  ;;  %v4443_v9 = vpop.xlane.xlu0 %4442  ;;  %v4609_v57 = vsel %vm1894_vm5, %v11412_v36, 0.0 }
 0x81e   : > { %9590 = vpow2.f32 %v4537_v13  ;;  %v4481_v28 = vsub.f32 %v11270_v23, %v4443_v9  ;;  %4613 = vadd.xlane.f32.xlu0 %v4612_v34  ;;  %4610 = vadd.xlane.f32.xlu1 %v4609_v57 }
 0x81f   : > { %v11420_v18 = vpop.eup %9580  ;;  %v4543_v3 = vmul.f32 1.442695, %v4482_v25 }
 0x820   : > { %v11422_v58 = vpop.eup %9582  ;;  %v4541_v6 = vmul.f32 1.442695, %v4481_v28  ;;  %v4618_v7 = vsel %vm1894_vm5, %v11420_v18, 0.0 }
 0x821   : > { %9592 = vpow2.f32 %v4543_v3  ;;  %v4615_v12 = vsel %vm1894_vm5, %v11422_v58, 0.0 }
 0x822   : > { %9594 = vpow2.f32 %v4541_v6  ;;  %4619 = vadd.xlane.f32.xlu0 %v4618_v7  ;;  %4616 = vadd.xlane.f32.xlu1 %v4615_v12 }
 0x823   : > { %v11428_v40 = vpop.eup %9584 }
 0x824   : > { %v11430_v23 = vpop.eup %9586  ;;  %v4624_v41 = vsel %vm1894_vm5, %v11428_v40, 0.0 }
 0x825   : > { %v4621_v54 = vsel %vm1894_vm5, %v11430_v23, 0.0 }
 0x826   : > { %4625 = vadd.xlane.f32.xlu0 %v4624_v41  ;;  %4622 = vadd.xlane.f32.xlu1 %v4621_v54  ;;  %v12175_v41 = vmov 0.0  }
 0x827   : > { %v11436_v8 = vpop.eup %9588 }
 0x828   : > { %v11438_v56 = vpop.eup %9590  ;;  %v4630_v2 = vsel %vm1894_vm5, %v11436_v8, 0.0 }
 0x829   : > { %v4627_v27 = vsel %vm1894_vm5, %v11438_v56, 0.0 }
 0x82a   : > { %4631 = vadd.xlane.f32.xlu0 %v4630_v2  ;;  %4628 = vadd.xlane.f32.xlu1 %v4627_v27 }
 0x82b   : > { %v11444_v42 = vpop.eup %9592 }
 0x82c   : > { %v11446_v16 = vpop.eup %9594  ;;  %v4636_v20 = vsel %vm1894_vm5, %v11444_v42, 0.0 }
 0x82d   : > { %v4633_v13 = vsel %vm1894_vm5, %v11446_v16, 0.0 }
 0x82e   : > { %4637 = vadd.xlane.f32.xlu0 %v4636_v20  ;;  %4634 = vadd.xlane.f32.xlu1 %v4633_v13 }
 0x841   : > { %v4551_v39 = vpop.xlane.xlu0 %4550 }
 0x842   : > { %9596 = vrcp.f32 %v4551_v39 }
 0x845   : > { %v4449_v34 = vpop.xlane.xlu0 %4448 }
 0x846   : > { %v4483_v25 = vsub.f32 %v11294_v52, %v4449_v34 }
 0x847   : > { %v4554_v9 = vpop.xlane.xlu1 %4553 }
 0x848   : > { %v4545_v57 = vmul.f32 1.442695, %v4483_v25  ;;  %9598 = vrcp.f32 %v4554_v9 }
 0x84a   : > { %9600 = vpow2.f32 %v4545_v57 }
 0x84b   : > { %v4452_v28 = vpop.xlane.xlu1 %4451 }
 0x84c   : > { %v9597_v3 = vpop.eup %9596  ;;  %v4484_v6 = vsub.f32 %v11302_v38, %v4452_v28  ;;  %v11478_v38 = vpop.permute.xlu0 %6837 }
 0x84d   : > { %v4646_v7 = vmul.f32 %v9597_v3, %v11292_v62 }
 0x84e   : > { %v4547_v12 = vmul.f32 1.442695, %v4484_v6 }
 0x84f   : > { %9080 = vmatmul.mubr.msk.f32.vlgmr.msra.gmra.mrb[40].mxu0 %vm1894_vm5, %v4646_v7  ;;  %v11480_v27 = vpop.permute.xlu1 %6913 }
 0x850   : > { %9602 = vpow2.f32 %v4547_v12  ;;  %9088 = vmatpush3.msra.mxu0 %v11152_v44  ;;  %9089 = vmatprep.mubr.msk.f32.mxu0 %vm9976_vm4, %v12175_v41 }
 0x851   : > { %9097 = vmatprep.subr.mxu0 %v12175_v41 }
 0x852   : > { %v9599_v52 = vpop.eup %9598 }
 0x853   : > { %v4648_v54 = vmul.f32 %v9599_v52, %v11300_v47 }
 0x854   : > { %v11461_v2 = vpop.eup %9600 }
 0x855   : > { %9085 = vmatmul.mubr.msk.f32.vlgmr.msra.gmra.mrb[48].mxu1 %vm1894_vm5, %v4648_v54  ;;  %v4639_v62 = vsel %vm1894_vm5, %v11461_v2, 0.0 }
 0x856   : > { %9093 = vmatpush3.msra.mxu1 %v11150_v43  ;;  %4640 = vadd.xlane.f32.xlu1 %v4639_v62 }
 0x857   : > { %9094 = vmatprep.mubr.msk.f32.mxu1 %vm9976_vm4, %v12175_v41  ;;  %9102 = vmatprep.subr.mxu1 %v12175_v41 }
 0x85a   : > { %v11470_v44 = vpop.eup %9602 }
 0x85b   : > { %v4642_v47 = vsel %vm1894_vm5, %v11470_v44, 0.0 }
 0x85c   : > { %4643 = vadd.xlane.f32.xlu0 %v4642_v47 }
 0x867   : > { %7065 = vrot.lane.b32.xlu1 %v10874_v29, %s9978_s10 }
 0x872   : > { %6989 = vrot.lane.b32.xlu0 %v10858_v22, %s9978_s10  ;;  %s12203_s10 = sld [smem:[#allocation71_spill]] }
 0x87a   : > { %v4557_v43 = vpop.xlane.xlu0 %4556 }
 0x87b   : > { %9604 = vrcp.f32 %v4557_v43 }
 0x87e   : > { %v4563_v20 = vpop.xlane.xlu0 %4562 }
 0x87f   : > { %9606 = vrcp.f32 %v4563_v20 }
 0x880   : > { %v4560_v13 = vpop.xlane.xlu1 %4559 }
 0x881   : > { %9608 = vrcp.f32 %v4560_v13 }
 0x882   : > { %v4569_v39 = vpop.xlane.xlu0 %4568 }
 0x883   : > { %9610 = vrcp.f32 %v4569_v39 }
 0x884   : > { %v4566_v34 = vpop.xlane.xlu1 %4565 }
 0x885   : > { %v9605_v25 = vpop.eup %9604  ;;  %9612 = vrcp.f32 %v4566_v34 }
 0x886   : > { %v4650_v29 = vmul.f32 %v9605_v25, %v11318_v30 }
 0x888   : > { %9090 = vmatmul.mubr.msk.f32.vlgmr.msra.gmra.mrb[42].mxu0 %vm1894_vm5, %v4650_v29  ;;  %v4572_v22 = vpop.xlane.xlu1 %4571 }
 0x889   : > { %v9607_v9 = vpop.eup %9606  ;;  %9098 = vmatpush3.msra.mxu0 %v11156_v45  ;;  %9614 = vrcp.f32 %v4572_v22  ;;  %9099 = vmatprep.mubr.msk.f32.mxu0 %vm9976_vm4, %v12175_v41 }
 0x88a   : > { %v4654_v57 = vmul.f32 %v9607_v9, %v11322_v37  ;;  %9107 = vmatprep.subr.mxu0 %v12175_v41  ;;  %v12177_v9 = vld [vmem:[#allocation45_spill] sm:$0xff] }
 0x88b   : > { %v9609_v28 = vpop.eup %9608  ;;  %v4575_v3 = vpop.xlane.xlu0 %4574 }
 0x88c   : > { %v4652_v6 = vmul.f32 %v9609_v28, %v11326_v31  ;;  %9100 = vmatmul.mubr.msk.f32.vlgmr.msra.gmra.mrb[44].mxu0 %vm1894_vm5, %v4654_v57  ;;  %9616 = vrcp.f32 %v4575_v3  ;;  %v4578_v30 = vpop.xlane.xlu1 %4577  ;;  %v12178_v3 = vld [vmem:[#allocation46_spill] sm:$0xff] }
 0x88d   : > { %v9611_v7 = vpop.eup %9610  ;;  %9108 = vmatpush3.msra.mxu0 %v11168_v60  ;;  %9618 = vrcp.f32 %v4578_v30  ;;  %9109 = vmatprep.mubr.msk.f32.mxu0 %vm9976_vm4, %v12175_v41 }
 0x88e   : > { %v4658_v45 = vmul.f32 %v9611_v7, %v11330_v32  ;;  %9095 = vmatmul.mubr.msk.f32.vlgmr.msra.gmra.mrb[50].mxu1 %vm1894_vm5, %v4652_v6  ;;  %9117 = vmatprep.subr.mxu0 %v12175_v41 }
 0x88f   : > { %v9613_v37 = vpop.eup %9612  ;;  %9103 = vmatpush3.msra.mxu1 %v11154_v35  ;;  %9104 = vmatprep.mubr.msk.f32.mxu1 %vm9976_vm4, %v12175_v41 }
 0x890   : > { %v4656_v31 = vmul.f32 %v9613_v37, %v11334_v50  ;;  %9110 = vmatmul.mubr.msk.f32.vlgmr.msra.gmra.mrb[46].mxu0 %vm1894_vm5, %v4658_v45  ;;  %9112 = vmatprep.subr.mxu1 %v12175_v41 }
 0x891   : > { %9118 = vmatpush3.msra.mxu0 %v11176_v1  ;;  %9119 = vmatprep.mubr.msk.f32.mxu0 %vm9976_vm4, %v12175_v41 }
 0x892   : > { %9105 = vmatmul.mubr.msk.f32.vlgmr.msra.gmra.mrb[52].mxu1 %vm1894_vm5, %v4656_v31  ;;  %v4584_v60 = vpop.xlane.xlu1 %4583  ;;  %9127 = vmatprep.subr.mxu0 %v12175_v41  ;;  %v12180_v31 = vld [vmem:[#allocation49_spill] sm:$0xff] }
 0x893   : > { %v9615_v35 = vpop.eup %9614  ;;  %9113 = vmatpush3.msra.mxu1 %v11158_v46  ;;  %9620 = vrcp.f32 %v4584_v60  ;;  %9114 = vmatprep.mubr.msk.f32.mxu1 %vm9976_vm4, %v12175_v41 }
 0x894   : > { %v4660_v32 = vmul.f32 %v9615_v35, %v11341_v5  ;;  %9122 = vmatprep.subr.mxu1 %v12175_v41 }
 0x896   : > { %v9617_v1 = vpop.eup %9616  ;;  %9115 = vmatmul.mubr.msk.f32.vlgmr.msra.gmra.mrb[54].mxu1 %vm1894_vm5, %v4660_v32  ;;  %v4581_v50 = vpop.xlane.xlu0 %4580 }
 0x897   : > { %v9619_v12 = vpop.eup %9618  ;;  %v4662_v52 = vmul.f32 %v9617_v1, %v11348_v63  ;;  %9123 = vmatpush3.msra.mxu1 %v11170_v61  ;;  %9622 = vrcp.f32 %v4581_v50  ;;  %9124 = vmatprep.mubr.msk.f32.mxu1 %vm9976_vm4, %v12175_v41 }
 0x898   : > { %v4664_v46 = vmul.f32 %v9619_v12, %v11346_v14  ;;  %9132 = vmatprep.subr.mxu1 %v12175_v41  ;;  %v12182_v12 = vld [vmem:[#allocation53_spill] sm:$0xff] }
 0x899   : > { %9120 = vmatmul.mubr.msk.f32.vlgmr.msra.gmra.mrb[48].mxu0 %vm1894_vm5, %v4662_v52 }
 0x89a   : > { %9128 = vmatpush3.msra.mxu0 %v11188_v15  ;;  %9125 = vmatmul.mubr.msk.f32.vlgmr.msra.gmra.mrb[56].mxu1 %vm1894_vm5, %v4664_v46  ;;  %v4590_v5 = vpop.xlane.xlu1 %4589 }
 0x89b   : > { %9133 = vmatpush3.msra.mxu1 %v11178_v55  ;;  %9624 = vrcp.f32 %v4590_v5  ;;  %v4587_v63 = vpop.xlane.xlu0 %4586  ;;  %9134 = vmatprep.mubr.msk.f32.mxu1 %vm9976_vm4, %v12175_v41 }
 0x89c   : > { %9626 = vrcp.f32 %v4587_v63  ;;  %9142 = vmatprep.subr.mxu1 %v12175_v41  ;;  %9129 = vmatprep.mubr.msk.f32.mxu0 %vm9976_vm4, %v12175_v41 }
 0x89d   : > { %v9621_v61 = vpop.eup %9620  ;;  %9137 = vmatprep.subr.mxu0 %v12175_v41 }
 0x89e   : > { %v4668_v15 = vmul.f32 %v9621_v61, %v11358_v10 }
 0x89f   : > { %v4593_v14 = vpop.xlane.xlu1 %4592  ;;  %v4596_v54 = vpop.xlane.xlu0 %4595 }
 0x8a0   : > { %9628 = vrcp.f32 %v4593_v14  ;;  %9135 = vmatmul.mubr.msk.f32.vlgmr.msra.gmra.mrb[58].mxu1 %vm1894_vm5, %v4668_v15  ;;  %v12184_v15 = vld [vmem:[#allocation48_spill] sm:$0xff] }
 0x8a1   : > { %v9623_v55 = vpop.eup %9622  ;;  %9630 = vrcp.f32 %v4596_v54  ;;  %9143 = vmatpush3.msra.mxu1 %v11190_v4  ;;  %9144 = vmatprep.mubr.msk.f32.mxu1 %vm9976_vm4, %v12175_v41 }
 0x8a2   : > { %v4666_v62 = vmul.f32 %v9623_v55, %v11364_v33  ;;  %9152 = vmatprep.subr.mxu1 %v12175_v41 }
 0x8a3   : > { %v4599_v47 = vpop.xlane.xlu1 %4598  ;;  %v4602_v43 = vpop.xlane.xlu0 %4601 }
 0x8a4   : > { %9632 = vrcp.f32 %v4599_v47  ;;  %9130 = vmatmul.mubr.msk.f32.vlgmr.msra.gmra.mrb[50].mxu0 %vm1894_vm5, %v4666_v62 }
 0x8a5   : > { %v9625_v10 = vpop.eup %9624  ;;  %9634 = vrcp.f32 %v4602_v43  ;;  %9138 = vmatpush3.msra.mxu0 %v11208_v48  ;;  %9139 = vmatprep.mubr.msk.f32.mxu0 %vm9976_vm4, %v12175_v41 }
 0x8a6   : > { %v9627_v4 = vpop.eup %9626  ;;  %v4672_v20 = vmul.f32 %v9625_v10, %v11370_v51  ;;  %9147 = vmatprep.subr.mxu0 %v12175_v41  ;;  %v12187_v10 = vld [vmem:[#allocation55_spill] sm:$0xff] }
 0x8a7   : > { %v4670_v33 = vmul.f32 %v9627_v4, %v11372_v49  ;;  %v4605_v13 = vpop.xlane.xlu1 %4604  ;;  %v4608_v39 = vpop.xlane.xlu0 %4607 }
 0x8a8   : > { %9636 = vrcp.f32 %v4605_v13  ;;  %9145 = vmatmul.mubr.msk.f32.vlgmr.msra.gmra.mrb[60].mxu1 %vm1894_vm5, %v4672_v20 }
 0x8a9   : > { %9638 = vrcp.f32 %v4608_v39  ;;  %9140 = vmatmul.mubr.msk.f32.vlgmr.msra.gmra.mrb[52].mxu0 %vm1894_vm5, %v4670_v33  ;;  %9153 = vmatpush3.msra.mxu1 %v11210_v0  ;;  %v12176_v0 = vld [vmem:[#allocation44_spill] sm:$0xff] }
 0x8aa   : > { %v9629_v48 = vpop.eup %9628  ;;  %9148 = vmatpush3.msra.mxu0 %v11280_v24  ;;  %9149 = vmatprep.mubr.msk.f32.mxu0 %vm9976_vm4, %v12175_v41 }
 0x8ab   : > { %v9631_v51 = vpop.eup %9630  ;;  %v4674_v34 = vmul.f32 %v9629_v48, %v11382_v19  ;;  %v4611_v49 = vpop.xlane.xlu1 %4610  ;;  %9154 = vmatprep.mubr.msk.f32.mxu1 %vm9976_vm4, %v12175_v41  ;;  %9157 = vmatprep.subr.mxu0 %v12175_v41 }
 0x8ac   : > { %v4614_v25 = vpop.xlane.xlu0 %4613  ;;  %v4676_v29 = vmul.f32 %v9631_v51, %v11380_v11  ;;  %9640 = vrcp.f32 %v4611_v49  ;;  %9162 = vmatprep.subr.mxu1 %v12175_v41 }
 0x8ad   : > { %9642 = vrcp.f32 %v4614_v25  ;;  %9150 = vmatmul.mubr.msk.f32.vlgmr.msra.gmra.mrb[54].mxu0 %vm1894_vm5, %v4674_v34 }
 0x8ae   : > { %v9633_v24 = vpop.eup %9632  ;;  %9155 = vmatmul.mubr.msk.f32.vlgmr.msra.gmra.mrb[62].mxu1 %vm1894_vm5, %v4676_v29  ;;  %9158 = vmatpush3.msra.mxu0 %v12176_v0 }
 0x8af   : > { %v9635_v19 = vpop.eup %9634  ;;  %v4678_v22 = vmul.f32 %v9633_v24, %v11392_v53  ;;  %9163 = vmatpush3.msra.mxu1 %v12177_v9  ;;  %v4617_v57 = vpop.xlane.xlu1 %4616  ;;  %9159 = vmatprep.mubr.msk.f32.mxu0 %vm9976_vm4, %v12175_v41 }
 0x8b0   : > { %v4620_v28 = vpop.xlane.xlu0 %4619  ;;  %v4680_v11 = vmul.f32 %v9635_v19, %v11390_v59  ;;  %9644 = vrcp.f32 %v4617_v57  ;;  %9164 = vmatprep.mubr.msk.f32.mxu1 %vm9976_vm4, %v12175_v41  ;;  %9167 = vmatprep.subr.mxu0 %v12175_v41  ;;  %v12179_v59 = vld [vmem:[#allocation47_spill] sm:$0xff] }
 0x8b1   : > { %9646 = vrcp.f32 %v4620_v28  ;;  %9172 = vmatprep.subr.mxu1 %v12175_v41  ;;  %9160 = vmatmul.mubr.msk.f32.vlgmr.msra.gmra.mrb[56].mxu0 %vm1894_vm5, %v4678_v22 }
 0x8b2   : > { %v9637_v53 = vpop.eup %9636  ;;  %9165 = vmatmul.mubr.msk.f32.vlgmr.msra.gmra.mrb[64].mxu1 %vm1894_vm5, %v4680_v11  ;;  %9168 = vmatpush3.msra.mxu0 %v12178_v3 }
 0x8b3   : > { %v9639_v6 = vpop.eup %9638  ;;  %v4682_v30 = vmul.f32 %v9637_v53, %v11402_v17  ;;  %9173 = vmatpush3.msra.mxu1 %v12179_v59  ;;  %v4623_v7 = vpop.xlane.xlu1 %4622  ;;  %9169 = vmatprep.mubr.msk.f32.mxu0 %vm9976_vm4, %v12175_v41 }
 0x8b4   : > { %v4626_v45 = vpop.xlane.xlu0 %4625  ;;  %v4684_v37 = vmul.f32 %v9639_v6, %v11400_v26  ;;  %9648 = vrcp.f32 %v4623_v7  ;;  %9174 = vmatprep.mubr.msk.f32.mxu1 %vm9976_vm4, %v12175_v41  ;;  %9177 = vmatprep.subr.mxu0 %v12175_v41  ;;  %v12181_v26 = vld [vmem:[#allocation51_spill] sm:$0xff] }
 0x8b5   : > { %9650 = vrcp.f32 %v4626_v45  ;;  %9182 = vmatprep.subr.mxu1 %v12175_v41  ;;  %9170 = vmatmul.mubr.msk.f32.vlgmr.msra.gmra.mrb[58].mxu0 %vm1894_vm5, %v4682_v30 }
 0x8b6   : > { %v9641_v17 = vpop.eup %9640  ;;  %9175 = vmatmul.mubr.msk.f32.vlgmr.msra.gmra.mrb[66].mxu1 %vm1894_vm5, %v4684_v37  ;;  %9178 = vmatpush3.msra.mxu0 %v12180_v31 }
 0x8b7   : > { %v9643_v60 = vpop.eup %9642  ;;  %v4686_v35 = vmul.f32 %v9641_v17, %v11412_v36  ;;  %9183 = vmatpush3.msra.mxu1 %v12181_v26  ;;  %v4629_v32 = vpop.xlane.xlu1 %4628  ;;  %9179 = vmatprep.mubr.msk.f32.mxu0 %vm9976_vm4, %v12175_v41 }
 0x8b8   : > { %v4632_v1 = vpop.xlane.xlu0 %4631  ;;  %v4688_v50 = vmul.f32 %v9643_v60, %v11410_v21  ;;  %9652 = vrcp.f32 %v4629_v32  ;;  %9184 = vmatprep.mubr.msk.f32.mxu1 %vm9976_vm4, %v12175_v41  ;;  %9187 = vmatprep.subr.mxu0 %v12175_v41  ;;  %v12183_v21 = vld [vmem:[#allocation52_spill] sm:$0xff] }
 0x8b9   : > { %9654 = vrcp.f32 %v4632_v1  ;;  %9192 = vmatprep.subr.mxu1 %v12175_v41  ;;  %9180 = vmatmul.mubr.msk.f32.vlgmr.msra.gmra.mrb[60].mxu0 %vm1894_vm5, %v4686_v35 }
 0x8ba   : > { %v9645_v36 = vpop.eup %9644  ;;  %9185 = vmatmul.mubr.msk.f32.vlgmr.msra.gmra.mrb[68].mxu1 %vm1894_vm5, %v4688_v50  ;;  %9188 = vmatpush3.msra.mxu0 %v12182_v12  ;;  %v1696_v50 = vld [vmem:[%s10433_s15] sm:$0xff] }
 0x8bb   : > { %v9647_v52 = vpop.eup %9646  ;;  %v4690_v46 = vmul.f32 %v9645_v36, %v11422_v58  ;;  %9193 = vmatpush3.msra.mxu1 %v12183_v21  ;;  %v4635_v5 = vpop.xlane.xlu1 %4634  ;;  %9189 = vmatprep.mubr.msk.f32.mxu0 %vm9976_vm4, %v12175_v41  ;;  %v1697_v36 = vld [vmem:[%s10433_s15 + $0x8] sm:$0xff] }
 0x8bc   : > { %v4638_v63 = vpop.xlane.xlu0 %4637  ;;  %v4692_v61 = vmul.f32 %v9647_v52, %v11420_v18  ;;  %9656 = vrcp.f32 %v4635_v5  ;;  %9194 = vmatprep.mubr.msk.f32.mxu1 %vm9976_vm4, %v12175_v41  ;;  %9197 = vmatprep.subr.mxu0 %v12175_v41  ;;  %v12185_v18 = vld [vmem:[#allocation54_spill] sm:$0xff]  ;;  %v9341_v52 = vpack.c.bf16 %v1697_v36, %v1696_v50 }
 0x8bd   : > { %9658 = vrcp.f32 %v4638_v63  ;;  %9202 = vmatprep.subr.mxu1 %v12175_v41  ;;  %9190 = vmatmul.mubr.msk.f32.vlgmr.msra.gmra.mrb[62].mxu0 %vm1894_vm5, %v4690_v46  ;;  %v1698_v63 = vld [vmem:[%s10433_s15 + $0x10] sm:$0xff] }
 0x8be   : > { %v9649_v58 = vpop.eup %9648  ;;  %9195 = vmatmul.mubr.msk.f32.vlgmr.msra.gmra.mrb[70].mxu1 %vm1894_vm5, %v4692_v61  ;;  %9198 = vmatpush3.msra.mxu0 %v12184_v15  ;;  %v1699_v61 = vld [vmem:[%s10433_s15 + $0x18] sm:$0xff]  ;;  %s9981_s15 = smov 24  }
 0x8bf   : > { %v9651_v14 = vpop.eup %9650  ;;  %v4694_v54 = vmul.f32 %v9649_v58, %v11430_v23  ;;  %9203 = vmatpush3.msra.mxu1 %v12185_v18  ;;  %9199 = vmatprep.mubr.msk.f32.mxu0 %vm9976_vm4, %v12175_v41  ;;  %v12186_v23 = vld [vmem:[#allocation50_spill] sm:$0xff]  ;;  %v9345_v15 = vpack.c.bf16 %v1699_v61, %v1698_v63 }
 0x8c0   : > { %v4696_v55 = vmul.f32 %v9651_v14, %v11428_v40  ;;  %9204 = vmatprep.mubr.msk.f32.mxu1 %vm9976_vm4, %v12175_v41  ;;  %9207 = vmatprep.subr.mxu0 %v12175_v41 }
 0x8c1   : > { %9212 = vmatprep.subr.mxu1 %v12175_v41  ;;  %9200 = vmatmul.mubr.msk.f32.vlgmr.msra.gmra.mrb[64].mxu0 %vm1894_vm5, %v4694_v54 }
 0x8c2   : > { %v9653_v62 = vpop.eup %9652  ;;  %9205 = vmatmul.mubr.msk.f32.vlgmr.msra.gmra.mrb[72].mxu1 %vm1894_vm5, %v4696_v55  ;;  %9208 = vmatpush3.msra.mxu0 %v12186_v23 }
 0x8c3   : > { %v9655_v47 = vpop.eup %9654  ;;  %v4698_v43 = vmul.f32 %v9653_v62, %v11438_v56  ;;  %9213 = vmatpush3.msra.mxu1 %v12187_v10  ;;  %9209 = vmatprep.mubr.msk.f32.mxu0 %vm9976_vm4, %v12175_v41 }
 0x8c4   : > { %v4700_v40 = vmul.f32 %v9655_v47, %v11436_v8  ;;  %9214 = vmatprep.mubr.msk.f32.mxu1 %vm9976_vm4, %v12175_v41  ;;  %9217 = vmatprep.subr.mxu0 %v12175_v41 }
 0x8c5   : > { %9222 = vmatprep.subr.mxu1 %v12175_v41  ;;  %9210 = vmatmul.mubr.msk.f32.vlgmr.msra.gmra.mrb[66].mxu0 %vm1894_vm5, %v4698_v43 }
 0x8c6   : > { %v9657_v4 = vpop.eup %9656  ;;  %9215 = vmatmul.mubr.msk.f32.vlgmr.msra.gmra.mrb[74].mxu1 %vm1894_vm5, %v4700_v40  ;;  %9218 = vmatpush3.msra.mxu0 %v11478_v38 }
 0x8c7   : > { %v9659_v56 = vpop.eup %9658  ;;  %v4702_v20 = vmul.f32 %v9657_v4, %v11446_v16  ;;  %9223 = vmatpush3.msra.mxu1 %v11480_v27  ;;  %9219 = vmatprep.mubr.msk.f32.mxu0 %vm9976_vm4, %v12175_v41 }
 0x8c8   : > { %v4704_v8 = vmul.f32 %v9659_v56, %v11444_v42  ;;  %9224 = vmatprep.mubr.msk.f32.mxu1 %vm9976_vm4, %v12175_v41  ;;  %9232 = vmatprep.subr.mxu1 %v12175_v41 }
 0x8c9   : > { %9220 = vmatmul.mubr.msk.f32.vlgmr.msra.gmra.mrb[68].mxu0 %vm1894_vm5, %v4702_v20  ;;  %9227 = vmatprep.subr.mxu0 %v12175_v41 }
 0x8ca   : > { %9225 = vmatmul.mubr.msk.f32.vlgmr.msra.gmra.mrb[76].mxu1 %vm1894_vm5, %v4704_v8  ;;  %9229 = vmatprep.mubr.msk.f32.mxu0 %vm9976_vm4, %v12175_v41 }
 0x8cb   : > { %9234 = vmatprep.mubr.msk.f32.mxu1 %vm9976_vm4, %v12175_v41 }
 0x8e3   : > { %v4641_v16 = vpop.xlane.xlu1 %4640 }
 0x8e4   : > { %9660 = vrcp.f32 %v4641_v16 }
 0x8e7   : > { %v7066_v42 = vpop.permute.xlu1 %7065 }
 0x8e8   : > { %9233 = vmatpush3.msra.mxu1 %v7066_v42 }
 0x8e9   : > { %v4644_v38 = vpop.xlane.xlu0 %4643 }
 0x8ea   : > { %9662 = vrcp.f32 %v4644_v38 }
 0x8ed   : > { %v6990_v27 = vpop.permute.xlu0 %6989 }
 0x8ee   : > { %v9661_v33 = vpop.eup %9660  ;;  %9228 = vmatpush3.msra.mxu0 %v6990_v27 }
 0x8ef   : > { %v4706_v13 = vmul.f32 %v9661_v33, %v11461_v2  ;;  %9342 = vmatprep.subr.bf16.mxu0 %v9341_v52 }
 0x8f1   : > { %9230 = vmatmul.mubr.msk.f32.vlgmr.msra.gmra.mrb[70].mxu0 %vm1894_vm5, %v4706_v13 }
 0x8f2   : > { %9344 = vmatpush3.bf16.msra.mxu0 %v9341_v52 }
 0x8f3   : > { %9346 = vmatprep.subr.bf16.mxu0 %v9345_v15 }
 0x8f4   : > { %v9663_v39 = vpop.eup %9662 }
 0x8f5   : > { %v4708_v48 = vmul.f32 %v9663_v39, %v11470_v44 }
 0x8f6   : > { %9348 = vmatpush3.bf16.msra.mxu0 %v9345_v15 }
 0x8f7   : > { %9235 = vmatmul.mubr.msk.f32.vlgmr.msra.gmra.mrb[78].mxu1 %vm1894_vm5, %v4708_v48 }
 0x922   : > { %v11650_v51 = vpop.f32.mrb[40].mxu0 }
 0x923   : > { %v9081_v41 = vpop.f32.mrb[41].mxu0 }
 0x928   : > { %v11652_v34 = vpop.f32.mrb[48].mxu1 }
 0x929   : > { %v9086_v49 = vpop.f32.mrb[49].mxu1 }
 0x95b   : > { %v11654_v25 = vpop.f32.mrb[42].mxu0 }
 0x95c   : > { %v9091_v29 = vpop.f32.mrb[43].mxu0 }
 0x95f   : > { %v11656_v24 = vpop.f32.mrb[44].mxu0 }
 0x960   : > { %v9101_v0 = vpop.f32.mrb[45].mxu0 }
 0x961   : > { %v11658_v2 = vpop.f32.mrb[50].mxu1 }
 0x962   : > { %v9096_v19 = vpop.f32.mrb[51].mxu1 }
 0x963   : > { %v11660_v22 = vpop.f32.mrb[46].mxu0 }
 0x964   : > { %v9111_v44 = vpop.f32.mrb[47].mxu0 }
 0x965   : > { %v11662_v9 = vpop.f32.mrb[52].mxu1 }
 0x966   : > { %v9106_v57 = vpop.f32.mrb[53].mxu1 }
 0x969   : > { %v11664_v28 = vpop.f32.mrb[54].mxu1 }
 0x96a   : > { %v9116_v11 = vpop.f32.mrb[55].mxu1 }
 0x96c   : > { %v5389_v53 = vpop.f32.mrb[48].mxu0 }
 0x96d   : > { %v5465_v3 = vpop.f32.mrb[56].mxu1  ;;  %7149 = vrot.lane.b32.xlu0 %v5389_v53, %s9979_s2  ;;  %v9121_v6 = vpop.f32.mrb[49].mxu0 }
 0x96e   : > { %v9126_v30 = vpop.f32.mrb[57].mxu1  ;;  %7151 = vrot.lane.b32.xlu1 %v5465_v3, %s9979_s2 }
 0x973   : > { %v5617_v59 = vpop.f32.mrb[58].mxu1 }
 0x974   : > { %v9136_v7 = vpop.f32.mrb[59].mxu1  ;;  %7155 = vrot.lane.b32.xlu1 %v5617_v59, %s9979_s2 }
 0x977   : > { %v5541_v45 = vpop.f32.mrb[50].mxu0 }
 0x978   : > { %7153 = vrot.lane.b32.xlu0 %v5541_v45, %s9979_s2  ;;  %v9131_v37 = vpop.f32.mrb[51].mxu0 }
 0x97b   : > { %v5769_v17 = vpop.f32.mrb[60].mxu1 }
 0x97c   : > { %v5693_v31 = vpop.f32.mrb[52].mxu0  ;;  %v9146_v60 = vpop.f32.mrb[61].mxu1  ;;  %7159 = vrot.lane.b32.xlu1 %v5769_v17, %s9979_s2 }
 0x97d   : > { %7157 = vrot.lane.b32.xlu0 %v5693_v31, %s9979_s2  ;;  %v9141_v35 = vpop.f32.mrb[53].mxu0 }
 0x980   : > { %v5845_v26 = vpop.f32.mrb[54].mxu0 }
 0x981   : > { %v5921_v32 = vpop.f32.mrb[62].mxu1  ;;  %7161 = vrot.lane.b32.xlu0 %v5845_v26, %s9979_s2  ;;  %v9151_v1 = vpop.f32.mrb[55].mxu0 }
 0x982   : > { %7163 = vrot.lane.b32.xlu1 %v5921_v32, %s9979_s2  ;;  %v9156_v12 = vpop.f32.mrb[63].mxu1  ;;  %s12204_s2 = scalar_lea.vmem %s12203_s10, %s10402_s22 }
 0x984   : > { %v5997_v46 = vpop.f32.mrb[56].mxu0 }
 0x985   : > { %v6073_v21 = vpop.f32.mrb[64].mxu1  ;;  %7181 = vrot.lane.b32.xlu0 %v5997_v46, %s9980_s5  ;;  %v9161_v5 = vpop.f32.mrb[57].mxu0 }
 0x986   : > { %7183 = vrot.lane.b32.xlu1 %v6073_v21, %s9980_s5  ;;  %v9166_v58 = vpop.f32.mrb[65].mxu1 }
 0x988   : > { %v6149_v14 = vpop.f32.mrb[58].mxu0 }
 0x989   : > { %v6225_v54 = vpop.f32.mrb[66].mxu1  ;;  %7185 = vrot.lane.b32.xlu0 %v6149_v14, %s9980_s5  ;;  %v9171_v18 = vpop.f32.mrb[59].mxu0 }
 0x98a   : > { %7187 = vrot.lane.b32.xlu1 %v6225_v54, %s9980_s5  ;;  %v9176_v55 = vpop.f32.mrb[67].mxu1 }
 0x98c   : > { %v6301_v62 = vpop.f32.mrb[60].mxu0 }
 0x98d   : > { %v6377_v23 = vpop.f32.mrb[68].mxu1  ;;  %7189 = vrot.lane.b32.xlu0 %v6301_v62, %s9980_s5  ;;  %v9181_v47 = vpop.f32.mrb[61].mxu0 }
 0x98e   : > { %7191 = vrot.lane.b32.xlu1 %v6377_v23, %s9980_s5  ;;  %v9186_v43 = vpop.f32.mrb[69].mxu1 }
 0x990   : > { %v6453_v10 = vpop.f32.mrb[62].mxu0 }
 0x991   : > { %v6529_v40 = vpop.f32.mrb[70].mxu1  ;;  %7193 = vrot.lane.b32.xlu0 %v6453_v10, %s9980_s5  ;;  %v9191_v4 = vpop.f32.mrb[63].mxu0 }
 0x992   : > { %7195 = vrot.lane.b32.xlu1 %v6529_v40, %s9980_s5  ;;  %v9196_v56 = vpop.f32.mrb[71].mxu1 }
 0x994   : > { %v6605_v20 = vpop.f32.mrb[64].mxu0 }
 0x995   : > { %v6681_v8 = vpop.f32.mrb[72].mxu1  ;;  %7213 = vrot.lane.b32.xlu0 %v6605_v20, %s9981_s15  ;;  %v9201_v16 = vpop.f32.mrb[65].mxu0  ;;  %v8573_v20 = vld [vmem:[%s12188_s14] ss:$0 sm:$0xff] }
 0x996   : > { %7215 = vrot.lane.b32.xlu1 %v6681_v8, %s9981_s15  ;;  %v9206_v42 = vpop.f32.mrb[73].mxu1  ;;  %v7398_v16 = vstv %s1242_s17 }
 0x998   : > { %v6757_v38 = vpop.f32.mrb[66].mxu0 }
 0x999   : > { %v6833_v27 = vpop.f32.mrb[74].mxu1  ;;  %7217 = vrot.lane.b32.xlu0 %v6757_v38, %s9981_s15  ;;  %v9211_v33 = vpop.f32.mrb[67].mxu0 }
 0x99a   : > { %7219 = vrot.lane.b32.xlu1 %v6833_v27, %s9981_s15  ;;  %v9216_v13 = vpop.f32.mrb[75].mxu1 }
 0x99c   : > { %v6909_v39 = vpop.f32.mrb[68].mxu0 }
 0x99d   : > { %v6985_v48 = vpop.f32.mrb[76].mxu1  ;;  %7221 = vrot.lane.b32.xlu0 %v6909_v39, %s9981_s15  ;;  %v9221_v41 = vpop.f32.mrb[69].mxu0 }
 0x99e   : > { %7223 = vrot.lane.b32.xlu1 %v6985_v48, %s9981_s15  ;;  %v9226_v49 = vpop.f32.mrb[77].mxu1 }
 0x99f   : > { %v12189_v49 = vld [vmem:[#allocation37_spill] sm:$0xff] }
 0x9c4   : > { %v7061_v29 = vpop.f32.mrb[70].mxu0 }
 0x9c5   : > { %7225 = vrot.lane.b32.xlu0 %v7061_v29, %s9981_s15  ;;  %v9231_v0 = vpop.f32.mrb[71].mxu0 }
 0x9ca   : > { %v7137_v19 = vpop.f32.mrb[78].mxu1 }
 0x9cb   : > { %7227 = vrot.lane.b32.xlu1 %v7137_v19, %s9981_s15  ;;  %v9236_v44 = vpop.f32.mrb[79].mxu1  ;;  %v12190_v19 = vld [vmem:[#allocation36_spill] sm:$0xff] }
 0x9df   : > { %v7150_v57 = vpop.permute.xlu0 %7149 }
 0x9e0   : > { %v7152_v11 = vpop.permute.xlu1 %7151  ;;  %v7237_v36 = vsel %vm1894_vm5, %v11650_v51, %v7150_v57 }
 0x9e1   : > { %v7238_v12 = vsel %vm1894_vm5, %v11652_v34, %v7152_v11 }
 0x9e6   : > { %v7156_v53 = vpop.permute.xlu1 %7155 }
 0x9e7   : > { %v7240_v51 = vsel %vm1894_vm5, %v11658_v2, %v7156_v53 }
 0x9ea   : > { %v7154_v3 = vpop.permute.xlu0 %7153 }
 0x9eb   : > { %v7239_v63 = vsel %vm1894_vm5, %v11654_v25, %v7154_v3 }
 0x9ee   : > { %v7160_v6 = vpop.permute.xlu1 %7159 }
 0x9ef   : > { %v7158_v30 = vpop.permute.xlu0 %7157  ;;  %v7242_v2 = vsel %vm1894_vm5, %v11662_v9, %v7160_v6 }
 0x9f0   : > { %v7241_v25 = vsel %vm1894_vm5, %v11656_v24, %v7158_v30 }
 0x9f3   : > { %v7162_v59 = vpop.permute.xlu0 %7161 }
 0x9f4   : > { %v7164_v7 = vpop.permute.xlu1 %7163  ;;  %v7243_v45 = vsel %vm1894_vm5, %v11660_v22, %v7162_v59 }
 0x9f5   : > { %v7244_v37 = vsel %vm1894_vm5, %v11664_v28, %v7164_v7  ;;  %v12191_v7 = vld [vmem:[#allocation39_spill] sm:$0xff] }
 0x9f7   : > { %v7182_v17 = vpop.permute.xlu0 %7181 }
 0x9f8   : > { %v7184_v31 = vpop.permute.xlu1 %7183  ;;  %v7246_v22 = vsel %vm7245_vm6, %v7237_v36, %v7182_v17 }
 0x9f9   : > { %v7247_v28 = vsel %vm7245_vm6, %v7238_v12, %v7184_v31  ;;  %v12194_v12 = vld [vmem:[#allocation40_spill] sm:$0xff] }
 0x9fb   : > { %v7186_v60 = vpop.permute.xlu0 %7185 }
 0x9fc   : > { %v7188_v35 = vpop.permute.xlu1 %7187  ;;  %v7248_v34 = vsel %vm7245_vm6, %v7239_v63, %v7186_v60 }
 0x9fd   : > { %v7249_v58 = vsel %vm7245_vm6, %v7240_v51, %v7188_v35  ;;  %v12192_v35 = vld [vmem:[#allocation38_spill] sm:$0xff] }
 0x9ff   : > { %v7190_v26 = vpop.permute.xlu0 %7189 }
 0xa00   : > { %v7192_v32 = vpop.permute.xlu1 %7191  ;;  %v7250_v18 = vsel %vm7245_vm6, %v7241_v25, %v7190_v26 }
 0xa01   : > { %v7251_v62 = vsel %vm7245_vm6, %v7242_v2, %v7192_v32  ;;  %v12193_v32 = vld [vmem:[#allocation41_spill] sm:$0xff] }
 0xa03   : > { %v7194_v1 = vpop.permute.xlu0 %7193 }
 0xa04   : > { %v7196_v50 = vpop.permute.xlu1 %7195  ;;  %v7252_v24 = vsel %vm7245_vm6, %v7243_v45, %v7194_v1 }
 0xa05   : > { %v7253_v40 = vsel %vm7245_vm6, %v7244_v37, %v7196_v50 }
 0xa07   : > { %v7214_v52 = vpop.permute.xlu0 %7213 }
 0xa08   : > { %v7216_v46 = vpop.permute.xlu1 %7215  ;;  %v7255_v21 = vsel %vm7254_vm7, %v7246_v22, %v7214_v52 }
 0xa09   : > { %v7256_v5 = vsel %vm7254_vm7, %v7247_v28, %v7216_v46  ;;  %9245 = vmatprep.mubr.msk.f32.mxu0 %vm1265_vm2, %v7255_v21 }
 0xa0a   : > { %9246 = vmatmul.mubr.msk.f32.vlgmr.msra.gmra.mrb[72].mxu0 %vm1265_vm2, %v7256_v5 }
 0xa0b   : > { %v7218_v61 = vpop.permute.xlu0 %7217 }
 0xa0c   : > { %v7220_v15 = vpop.permute.xlu1 %7219  ;;  %v7257_v14 = vsel %vm7254_vm7, %v7248_v34, %v7218_v61  ;;  %v12195_v34 = vld [vmem:[#allocation43_spill] sm:$0xff] }
 0xa0d   : > { %v7258_v54 = vsel %vm7254_vm7, %v7249_v58, %v7220_v15  ;;  %9248 = vmatprep.mubr.msk.f32.mxu0 %vm1265_vm2, %v7257_v14  ;;  %v12196_v58 = vld [vmem:[#allocation42_spill] sm:$0xff] }
 0xa0e   : > { %9249 = vmatmul.mubr.msk.f32.gmra.mrb[74].mxu0 %vm1265_vm2, %v7258_v54 }
 0xa0f   : > { %v7222_v55 = vpop.permute.xlu0 %7221 }
 0xa10   : > { %v7224_v23 = vpop.permute.xlu1 %7223  ;;  %v7259_v47 = vsel %vm7254_vm7, %v7250_v18, %v7222_v55 }
 0xa11   : > { %v7260_v43 = vsel %vm7254_vm7, %v7251_v62, %v7224_v23  ;;  %9251 = vmatprep.mubr.msk.f32.mxu0 %vm1265_vm2, %v7259_v47 }
 0xa12   : > { %9252 = vmatmul.mubr.msk.f32.gmra.mrb[76].mxu0 %vm1265_vm2, %v7260_v43 }
 0xa37   : > { %v7226_v10 = vpop.permute.xlu0 %7225 }
 0xa38   : > { %v7261_v9 = vsel %vm7254_vm7, %v7252_v24, %v7226_v10 }
 0xa39   : > { %9254 = vmatprep.mubr.msk.f32.mxu0 %vm1265_vm2, %v7261_v9 }
 0xa3d   : > { %v7228_v4 = vpop.permute.xlu1 %7227 }
 0xa3e   : > { %v7262_v56 = vsel %vm7254_vm7, %v7253_v40, %v7228_v4 }
 0xa3f   : > { %9255 = vmatmul.mubr.msk.f32.gmra.mrb[78].mxu0 %vm1265_vm2, %v7262_v56 }
 0xadd   : > { %v9247_v8 = vpop.f32.mrb[72].mxu0 }
 0xade   : > { %v7365_v42 = vadd.f32 %v9247_v8, %v8573_v20  ;;  %v7359_v38 = vpop.f32.mrb[73].mxu0 }
 0xadf   : > { %v7360_v27 = vadd.f32 %v8573_v20, %v7359_v38 }
 0xae0   : > { %v7400_v33 = vmul.f32 %v7398_v16, %v7365_v42 }
 0xae1   : > { %v7399_v13 = vmul.f32 %v7398_v16, %v7360_v27  ;;  %v9250_v39 = vpop.f32.mrb[74].mxu0 }
 0xae2   : > { %v7375_v48 = vadd.f32 %v9250_v39, %v8573_v20  ;;  %v7369_v41 = vpop.f32.mrb[75].mxu0  ;;  %v7408_v29 = vadd.f32 %v7400_v33, %v12189_v49 }
 0xae3   : > { %v7370_v0 = vadd.f32 %v8573_v20, %v7369_v41  ;;  %v7407_v44 = vadd.f32 %v7399_v13, %v12190_v19 }
 0xae4   : > { %v7402_v57 = vmul.f32 %v7398_v16, %v7375_v48  ;;  %v7420_v11 = vsel %vm1265_vm2, %v7408_v29, 0.0 }
 0xae5   : > { %v7401_v53 = vmul.f32 %v7398_v16, %v7370_v0  ;;  %7421 = vadd.xlane.f32.xlu1 %v7420_v11  ;;  %v9253_v3 = vpop.f32.mrb[76].mxu0  ;;  %v7417_v6 = vsel %vm1265_vm2, %v7407_v44, 0.0  ;;  %v7550_v11 = vld [vmem:[%s12197_s16 + $0x8] sm:$0xff] }
 0xae6   : > { %v7385_v30 = vadd.f32 %v9253_v3, %v8573_v20  ;;  %7418 = vadd.xlane.f32.xlu0 %v7417_v6  ;;  %v7379_v59 = vpop.f32.mrb[77].mxu0  ;;  %v7410_v45 = vadd.f32 %v7402_v57, %v12191_v7  ;;  %v7549_v57 = vld [vmem:[%s12197_s16] sm:$0xff]  ;;  %v7551_v3 = vld [vmem:[%s12197_s16 + $0x10] sm:$0xff]  ;;  %v7552_v6 = vld [vmem:[%s12197_s16 + $0x18] sm:$0xff] }
 0xae7   : > { %v7380_v37 = vadd.f32 %v8573_v20, %v7379_v59  ;;  %v7409_v26 = vadd.f32 %v7401_v53, %v12192_v35  ;;  %v9349_v53 = vpack.c.bf16 %v7550_v11, %v7549_v57 }
 0xae8   : > { %v7404_v17 = vmul.f32 %v7398_v16, %v7385_v30  ;;  %v7426_v31 = vsel %vm1265_vm2, %v7410_v45, 0.0  ;;  %v9353_v30 = vpack.c.bf16 %v7552_v6, %v7551_v3 }
 0xae9   : > { %v7403_v60 = vmul.f32 %v7398_v16, %v7380_v37  ;;  %v7423_v36 = vsel %vm1265_vm2, %v7409_v26, 0.0  ;;  %9350 = vmatprep.subr.bf16.mxu1 %v9349_v53 }
 0xaea   : > { %7427 = vadd.xlane.f32.xlu0 %v7426_v31  ;;  %v7412_v1 = vadd.f32 %v7404_v17, %v12193_v32  ;;  %9352 = vmatpush3.bf16.msra.mxu1 %v9349_v53 }
 0xaeb   : > { %v7411_v22 = vadd.f32 %v7403_v60, %v12194_v12  ;;  %9354 = vmatprep.subr.bf16.mxu1 %v9353_v30 }
 0xaec   : > { %v7432_v50 = vsel %vm1265_vm2, %v7412_v1, 0.0 }
 0xaed   : > { %7433 = vadd.xlane.f32.xlu1 %v7432_v50  ;;  %v7429_v52 = vsel %vm1265_vm2, %v7411_v22, 0.0  ;;  %v7555_v50 = vld [vmem:[%s12198_s27 + $0x8] sm:$0xff] }
 0xaee   : > { %7424 = vadd.xlane.f32.xlu0 %v7423_v36  ;;  %9356 = vmatpush3.bf16.msra.mxu1 %v9353_v30  ;;  %v7556_v36 = vld [vmem:[%s12198_s27 + $0x10] sm:$0xff] }
 0xaf2   : > { %7430 = vadd.xlane.f32.xlu0 %v7429_v52 }
 0xb12   : > { %v9256_v28 = vpop.f32.mrb[78].mxu0 }
 0xb13   : > { %v7395_v46 = vadd.f32 %v9256_v28, %v8573_v20  ;;  %v7389_v21 = vpop.f32.mrb[79].mxu0  ;;  %v7558_v28 = vld [vmem:[%s12198_s27 + $0x20] sm:$0xff] }
 0xb14   : > { %v7390_v5 = vadd.f32 %v8573_v20, %v7389_v21 }
 0xb15   : > { %v7406_v63 = vmul.f32 %v7398_v16, %v7395_v46  ;;  %v7559_v46 = vld [vmem:[%s12198_s27 + $0x28] sm:$0xff] }
 0xb16   : > { %v7405_v51 = vmul.f32 %v7398_v16, %v7390_v5  ;;  %v9365_v21 = vpack.c.bf16 %v7559_v46, %v7558_v28  ;;  %v7561_v28 = vld [vmem:[%s12198_s27 + $0x38] sm:$0xff] }
 0xb17   : > { %v7414_v61 = vadd.f32 %v7406_v63, %v12195_v34 }
 0xb18   : > { %v7413_v15 = vadd.f32 %v7405_v51, %v12196_v58 }
 0xb19   : > { %v7438_v14 = vsel %vm1265_vm2, %v7414_v61, 0.0 }
 0xb1a   : > { %7439 = vadd.xlane.f32.xlu1 %v7438_v14  ;;  %v7435_v54 = vsel %vm1265_vm2, %v7413_v15, 0.0 }
 0xb1b   : > { %7436 = vadd.xlane.f32.xlu0 %v7435_v54 }
 0xb72   : > { %v7422_v25 = vpop.xlane.xlu1 %7421 }
 0xb73   : > { %v7442_v2 = vmul.f32 0.03125, %v7422_v25  ;;  %v7419_v18 = vpop.xlane.xlu0 %7418 }
 0xb74   : > { %v7441_v55 = vmul.f32 0.03125, %v7419_v18 }
 0xb75   : > { %v11729_v62 = vsub.f32 %v7408_v29, %v7442_v2 }
 0xb76   : > { %v11731_v23 = vsub.f32 %v7407_v44, %v7441_v55 }
 0xb77   : > { %v7428_v47 = vpop.xlane.xlu0 %7427  ;;  %v7458_v43 = vmul.f32 %v11729_v62, %v11729_v62 }
 0xb78   : > { %v7444_v24 = vmul.f32 0.03125, %v7428_v47  ;;  %v7457_v10 = vmul.f32 %v11731_v23, %v11731_v23 }
 0xb79   : > { %v7468_v9 = vsel %vm1265_vm2, %v7458_v43, 0.0 }
 0xb7a   : > { %v11738_v40 = vsub.f32 %v7410_v45, %v7444_v24  ;;  %v7434_v4 = vpop.xlane.xlu1 %7433  ;;  %7469 = vadd.xlane.f32.xlu1 %v7468_v9  ;;  %v7465_v56 = vsel %vm1265_vm2, %v7457_v10, 0.0 }
 0xb7b   : > { %v7446_v20 = vmul.f32 0.03125, %v7434_v4  ;;  %7466 = vadd.xlane.f32.xlu0 %v7465_v56  ;;  %v7425_v8 = vpop.xlane.xlu0 %7424  ;;  %v8582_v4 = vld [vmem:[%s1060_s20] ss:$0 sm:$0xff] }
 0xb7c   : > { %v7443_v16 = vmul.f32 0.03125, %v7425_v8  ;;  %v7460_v42 = vmul.f32 %v11738_v40, %v11738_v40 }
 0xb7d   : > { %v11743_v38 = vsub.f32 %v7412_v1, %v7446_v20  ;;  %v7554_v1 = vld [vmem:[%s12198_s27] sm:$0xff] }
 0xb7e   : > { %v11745_v27 = vsub.f32 %v7409_v26, %v7443_v16  ;;  %v7474_v33 = vsel %vm1265_vm2, %v7460_v42, 0.0  ;;  %v9357_v12 = vpack.c.bf16 %v7555_v50, %v7554_v1  ;;  %v8583_v42 = vld [vmem:[%s1063_s21] ss:$0 sm:$0xff] }
 0xb7f   : > { %7475 = vadd.xlane.f32.xlu1 %v7474_v33  ;;  %v7431_v13 = vpop.xlane.xlu0 %7430  ;;  %v7462_v39 = vmul.f32 %v11743_v38, %v11743_v38 }
 0xb80   : > { %v7445_v48 = vmul.f32 0.03125, %v7431_v13  ;;  %v7459_v41 = vmul.f32 %v11745_v27, %v11745_v27  ;;  %9358 = vmatprep.subr.bf16.mxu0 %v9357_v12 }
 0xb81   : > { %v7480_v49 = vsel %vm1265_vm2, %v7462_v39, 0.0  ;;  %9360 = vmatpush3.bf16.msra.mxu0 %v9357_v12 }
 0xb82   : > { %v11753_v29 = vsub.f32 %v7411_v22, %v7445_v48  ;;  %v7471_v0 = vsel %vm1265_vm2, %v7459_v41, 0.0  ;;  %v7557_v22 = vld [vmem:[%s12198_s27 + $0x18] sm:$0xff] }
 0xb83   : > { %7481 = vadd.xlane.f32.xlu1 %v7480_v49  ;;  %7472 = vadd.xlane.f32.xlu0 %v7471_v0  ;;  %v9361_v52 = vpack.c.bf16 %v7557_v22, %v7556_v36 }
 0xb84   : > { %v7461_v19 = vmul.f32 %v11753_v29, %v11753_v29 }
 0xb85   : > { %9362 = vmatprep.subr.bf16.mxu0 %v9361_v52 }
 0xb86   : > { %v7477_v44 = vsel %vm1265_vm2, %v7461_v19, 0.0  ;;  %9364 = vmatpush3.bf16.msra.mxu0 %v9361_v52  ;;  %v7560_v52 = vld [vmem:[%s12198_s27 + $0x30] sm:$0xff] }
 0xb87   : > { %7478 = vadd.xlane.f32.xlu0 %v7477_v44  ;;  %9366 = vmatprep.subr.bf16.mxu0 %v9365_v21  ;;  %v9369_v46 = vpack.c.bf16 %v7561_v28, %v7560_v52 }
 0xb8a   : > { %9368 = vmatpush3.bf16.msra.mxu0 %v9365_v21 }
 0xb8b   : > { %9370 = vmatprep.subr.bf16.mxu0 %v9369_v46 }
 0xb8e   : > { %9372 = vmatpush3.bf16.msra.mxu0 %v9369_v46 }
 0xba7   : > { %v7440_v59 = vpop.xlane.xlu1 %7439 }
 0xba8   : > { %v7448_v7 = vmul.f32 0.03125, %v7440_v59  ;;  %v7437_v45 = vpop.xlane.xlu0 %7436 }
 0xba9   : > { %v7447_v37 = vmul.f32 0.03125, %v7437_v45 }
 0xbaa   : > { %v11763_v17 = vsub.f32 %v7414_v61, %v7448_v7 }
 0xbab   : > { %v11765_v31 = vsub.f32 %v7413_v15, %v7447_v37 }
 0xbac   : > { %v7464_v60 = vmul.f32 %v11763_v17, %v11763_v17 }
 0xbad   : > { %v7463_v35 = vmul.f32 %v11765_v31, %v11765_v31 }
 0xbae   : > { %v7486_v26 = vsel %vm1265_vm2, %v7464_v60, 0.0 }
 0xbaf   : > { %7487 = vadd.xlane.f32.xlu1 %v7486_v26  ;;  %v7483_v32 = vsel %vm1265_vm2, %v7463_v35, 0.0 }
 0xbb0   : > { %7484 = vadd.xlane.f32.xlu0 %v7483_v32 }
 0xc07   : > { %v7470_v5 = vpop.xlane.xlu1 %7469 }
 0xc08   : > { %v7490_v63 = vmul.f32 0.03125, %v7470_v5  ;;  %v7467_v51 = vpop.xlane.xlu0 %7466 }
 0xc09   : > { %v7489_v34 = vmul.f32 0.03125, %v7467_v51 }
 0xc0a   : > { %v7498_v61 = vadd.f32 1e-05, %v7490_v63 }
 0xc0b   : > { %v7497_v58 = vadd.f32 1e-05, %v7489_v34 }
 0xc0c   : > { %9664 = vrsqrt.f32 %v7498_v61  ;;  %v7476_v15 = vpop.xlane.xlu1 %7475 }
 0xc0d   : > { %9666 = vrsqrt.f32 %v7497_v58  ;;  %v7492_v14 = vmul.f32 0.03125, %v7476_v15 }
 0xc0f   : > { %v7500_v54 = vadd.f32 1e-05, %v7492_v14 }
 0xc10   : > { %v7482_v25 = vpop.xlane.xlu1 %7481  ;;  %v7473_v2 = vpop.xlane.xlu0 %7472 }
 0xc11   : > { %9668 = vrsqrt.f32 %v7500_v54  ;;  %v7494_v18 = vmul.f32 0.03125, %v7482_v25  ;;  %v7491_v55 = vmul.f32 0.03125, %v7473_v2 }
 0xc13   : > { %v7502_v47 = vadd.f32 1e-05, %v7494_v18  ;;  %v7499_v43 = vadd.f32 1e-05, %v7491_v55 }
 0xc14   : > { %v7479_v24 = vpop.xlane.xlu0 %7478 }
 0xc15   : > { %9670 = vrsqrt.f32 %v7502_v47  ;;  %v7493_v10 = vmul.f32 0.03125, %v7479_v24 }
 0xc16   : > { %v9665_v9 = vpop.eup %9664  ;;  %9672 = vrsqrt.f32 %v7499_v43 }
 0xc17   : > { %v9667_v56 = vpop.eup %9666  ;;  %v7514_v20 = vmul.f32 %v9665_v9, %v11729_v62  ;;  %v7501_v8 = vadd.f32 1e-05, %v7493_v10 }
 0xc18   : > { %v7513_v16 = vmul.f32 %v9667_v56, %v11731_v23 }
 0xc19   : > { %9674 = vrsqrt.f32 %v7501_v8  ;;  %v7528_v33 = vmul.f32 %v8582_v4, %v7514_v20 }
 0xc1a   : > { %v7527_v13 = vmul.f32 %v8582_v4, %v7513_v16  ;;  %v8593_v16 = vld [vmem:[%s12204_s2] ss:$0 sm:$0xff] }
 0xc1b   : > { %v9669_v39 = vpop.eup %9668  ;;  %v11793_v41 = vadd.f32 %v8583_v42, %v7528_v33  ;;  %v7841_v33 = vstv %s1244_s7 }
 0xc1c   : > { %v11791_v48 = vadd.f32 %v8583_v42, %v7527_v13  ;;  %v7516_v62 = vmul.f32 %v9669_v39, %v11738_v40 }
 0xc1e   : > { %9265 = vmatprep.mubr.msk.f32.mxu1 %vm1265_vm2, %v11791_v48  ;;  %v7530_v19 = vmul.f32 %v8582_v4, %v7516_v62 }
 0xc1f   : > { %v9671_v49 = vpop.eup %9670  ;;  %9266 = vmatmul.mubr.msk.f32.vlgmr.msra.gmra.mrb[80].mxu1 %vm1265_vm2, %v11793_v41 }
 0xc20   : > { %v9673_v23 = vpop.eup %9672  ;;  %v7518_v44 = vmul.f32 %v9671_v49, %v11743_v38  ;;  %v11805_v6 = vadd.f32 %v8583_v42, %v7530_v19 }
 0xc21   : > { %v7515_v0 = vmul.f32 %v9673_v23, %v11745_v27 }
 0xc22   : > { %v7532_v40 = vmul.f32 %v8582_v4, %v7518_v44 }
 0xc23   : > { %v9675_v57 = vpop.eup %9674  ;;  %v7529_v11 = vmul.f32 %v8582_v4, %v7515_v0 }
 0xc24   : > { %v7517_v53 = vmul.f32 %v9675_v57, %v11753_v29  ;;  %v11815_v38 = vadd.f32 %v8583_v42, %v7532_v40 }
 0xc25   : > { %v11803_v3 = vadd.f32 %v8583_v42, %v7529_v11 }
 0xc26   : > { %v7531_v30 = vmul.f32 %v8582_v4, %v7517_v53 }
 0xc27   : > { %9268 = vmatprep.mubr.msk.f32.mxu1 %vm1265_vm2, %v11803_v3 }
 0xc28   : > { %9269 = vmatmul.mubr.msk.f32.gmra.mrb[82].mxu1 %vm1265_vm2, %v11805_v6  ;;  %v11811_v27 = vadd.f32 %v8583_v42, %v7531_v30 }
 0xc2a   : > { %9271 = vmatprep.mubr.msk.f32.mxu1 %vm1265_vm2, %v11811_v27 }
 0xc2c   : > { %9272 = vmatmul.mubr.msk.f32.gmra.mrb[84].mxu1 %vm1265_vm2, %v11815_v38 }
 0xc3c   : > { %v7488_v29 = vpop.xlane.xlu1 %7487 }
 0xc3d   : > { %v7496_v59 = vmul.f32 0.03125, %v7488_v29  ;;  %v7485_v7 = vpop.xlane.xlu0 %7484 }
 0xc3e   : > { %v7495_v45 = vmul.f32 0.03125, %v7485_v7 }
 0xc3f   : > { %v7504_v37 = vadd.f32 1e-05, %v7496_v59 }
 0xc40   : > { %v7503_v60 = vadd.f32 1e-05, %v7495_v45 }
 0xc41   : > { %9676 = vrsqrt.f32 %v7504_v37 }
 0xc42   : > { %9678 = vrsqrt.f32 %v7503_v60 }
 0xc4b   : > { %v9677_v35 = vpop.eup %9676 }
 0xc4c   : > { %v9679_v26 = vpop.eup %9678  ;;  %v7520_v32 = vmul.f32 %v9677_v35, %v11763_v17  ;;  %v8584_v17 = vld [vmem:[%s12202_s1] ss:$0 sm:$0xff] }
 0xc4d   : > { %v7519_v1 = vmul.f32 %v9679_v26, %v11765_v31 }
 0xc4e   : > { %v7534_v50 = vmul.f32 %v8582_v4, %v7520_v32 }
 0xc4f   : > { %v7533_v36 = vmul.f32 %v8582_v4, %v7519_v1 }
 0xc50   : > { %v11823_v22 = vadd.f32 %v8583_v42, %v7534_v50 }
 0xc51   : > { %v11821_v12 = vadd.f32 %v8583_v42, %v7533_v36 }
 0xc53   : > { %9274 = vmatprep.mubr.msk.f32.mxu1 %vm1265_vm2, %v11821_v12 }
 0xc54   : > { %9275 = vmatmul.mubr.msk.f32.gmra.mrb[86].mxu1 %vm1265_vm2, %v11823_v22 }
 0xcf2   : > { %v9267_v31 = vpop.f32.mrb[80].mxu1 }
 0xcf3   : > { %v7665_v21 = vadd.f32 %v9267_v31, %v8584_v17  ;;  %v7659_v5 = vpop.f32.mrb[81].mxu1 }
 0xcf4   : > { %v7660_v63 = vadd.f32 %v8584_v17, %v7659_v5 }
 0xcf5   : > { %v7699_v34 = vmax.f32 %v7665_v21, 0.0 }
 0xcf6   : > { %v7698_v51 = vmax.f32 %v7660_v63, 0.0 }
 0xcf8   : > { %9293 = vmatprep.mubr.msk.f32.mxu0 %vm1409_vm3, %v7698_v51 }
 0xcf9   : > { %9294 = vmatmul.mubr.msk.f32.vlgmr.msra.gmra.mrb[80].mxu0 %vm1409_vm3, %v7699_v34 }
 0xcfb   : > { %v9270_v61 = vpop.f32.mrb[82].mxu1 }
 0xcfc   : > { %v7675_v58 = vadd.f32 %v9270_v61, %v8584_v17  ;;  %v7669_v15 = vpop.f32.mrb[83].mxu1 }
 0xcfd   : > { %v7670_v14 = vadd.f32 %v8584_v17, %v7669_v15 }
 0xcfe   : > { %v7701_v2 = vmax.f32 %v7675_v58, 0.0 }
 0xcff   : > { %v7700_v54 = vmax.f32 %v7670_v14, 0.0  ;;  %v9273_v25 = vpop.f32.mrb[84].mxu1 }
 0xd00   : > { %v7685_v18 = vadd.f32 %v9273_v25, %v8584_v17  ;;  %v7679_v55 = vpop.f32.mrb[85].mxu1 }
 0xd01   : > { %v7680_v47 = vadd.f32 %v8584_v17, %v7679_v55  ;;  %9296 = vmatprep.mubr.msk.f32.mxu0 %vm1409_vm3, %v7700_v54 }
 0xd02   : > { %9297 = vmatmul.mubr.msk.f32.gmra.mrb[82].mxu0 %vm1409_vm3, %v7701_v2  ;;  %v7703_v24 = vmax.f32 %v7685_v18, 0.0 }
 0xd03   : > { %v7702_v43 = vmax.f32 %v7680_v47, 0.0 }
 0xd05   : > { %9299 = vmatprep.mubr.msk.f32.mxu0 %vm1409_vm3, %v7702_v43 }
 0xd06   : > { %9300 = vmatmul.mubr.msk.f32.gmra.mrb[84].mxu0 %vm1409_vm3, %v7703_v24 }
 0xd27   : > { %v9276_v10 = vpop.f32.mrb[86].mxu1 }
 0xd28   : > { %v7695_v9 = vadd.f32 %v9276_v10, %v8584_v17  ;;  %v7689_v4 = vpop.f32.mrb[87].mxu1 }
 0xd29   : > { %v7690_v56 = vadd.f32 %v8584_v17, %v7689_v4 }
 0xd2a   : > { %v7705_v8 = vmax.f32 %v7695_v9, 0.0 }
 0xd2b   : > { %v7704_v20 = vmax.f32 %v7690_v56, 0.0 }
 0xd2d   : > { %9302 = vmatprep.mubr.msk.f32.mxu0 %vm1409_vm3, %v7704_v20 }
 0xd2e   : > { %9303 = vmatmul.mubr.msk.f32.gmra.mrb[86].mxu0 %vm1409_vm3, %v7705_v8 }
 0xdcc   : > { %v9295_v42 = vpop.f32.mrb[80].mxu0 }
 0xdcd   : > { %v7808_v13 = vadd.f32 %v9295_v42, %v8593_v16  ;;  %v7802_v39 = vpop.f32.mrb[81].mxu0 }
 0xdce   : > { %v7803_v62 = vadd.f32 %v8593_v16, %v7802_v39 }
 0xdcf   : > { %v7843_v49 = vmul.f32 %v7841_v33, %v7808_v13 }
 0xdd0   : > { %v7842_v23 = vmul.f32 %v7841_v33, %v7803_v62 }
 0xdd1   : > { %v7851_v0 = vadd.f32 %v7843_v49, %v11793_v41 }
 0xdd2   : > { %v7850_v19 = vadd.f32 %v7842_v23, %v11791_v48 }
 0xdd3   : > { %v7863_v44 = vsel %vm1265_vm2, %v7851_v0, 0.0 }
 0xdd4   : > { %7864 = vadd.xlane.f32.xlu1 %v7863_v44  ;;  %v7860_v57 = vsel %vm1265_vm2, %v7850_v19, 0.0 }
 0xdd5   : > { %v9298_v11 = vpop.f32.mrb[82].mxu0  ;;  %7861 = vadd.xlane.f32.xlu0 %v7860_v57 }
 0xdd6   : > { %v7818_v53 = vadd.f32 %v9298_v11, %v8593_v16  ;;  %v7812_v30 = vpop.f32.mrb[83].mxu0 }
 0xdd7   : > { %v7813_v40 = vadd.f32 %v8593_v16, %v7812_v30 }
 0xdd8   : > { %v7845_v29 = vmul.f32 %v7841_v33, %v7818_v53 }
 0xdd9   : > { %v7844_v59 = vmul.f32 %v7841_v33, %v7813_v40  ;;  %v9301_v7 = vpop.f32.mrb[84].mxu0 }
 0xdda   : > { %v7828_v45 = vadd.f32 %v9301_v7, %v8593_v16  ;;  %v7822_v37 = vpop.f32.mrb[85].mxu0  ;;  %v7853_v60 = vadd.f32 %v7845_v29, %v11805_v6 }
 0xddb   : > { %v7823_v41 = vadd.f32 %v8593_v16, %v7822_v37  ;;  %v7852_v48 = vadd.f32 %v7844_v59, %v11803_v3 }
 0xddc   : > { %v7847_v35 = vmul.f32 %v7841_v33, %v7828_v45  ;;  %v7869_v26 = vsel %vm1265_vm2, %v7853_v60, 0.0 }
 0xddd   : > { %v7846_v32 = vmul.f32 %v7841_v33, %v7823_v41  ;;  %7870 = vadd.xlane.f32.xlu1 %v7869_v26  ;;  %v7866_v1 = vsel %vm1265_vm2, %v7852_v48, 0.0 }
 0xdde   : > { %7867 = vadd.xlane.f32.xlu0 %v7866_v1  ;;  %v7855_v50 = vadd.f32 %v7847_v35, %v11815_v38 }
 0xddf   : > { %v7854_v36 = vadd.f32 %v7846_v32, %v11811_v27 }
 0xde0   : > { %v7875_v52 = vsel %vm1265_vm2, %v7855_v50, 0.0 }
 0xde1   : > { %7876 = vadd.xlane.f32.xlu1 %v7875_v52  ;;  %v7872_v6 = vsel %vm1265_vm2, %v7854_v36, 0.0 }
 0xde2   : > { %7873 = vadd.xlane.f32.xlu0 %v7872_v6 }
 0xe01   : > { %v9304_v28 = vpop.f32.mrb[86].mxu0 }
 0xe02   : > { %v7838_v3 = vadd.f32 %v9304_v28, %v8593_v16  ;;  %v7832_v46 = vpop.f32.mrb[87].mxu0 }
 0xe03   : > { %v7833_v17 = vadd.f32 %v8593_v16, %v7832_v46  ;;  %v8602_v46 = vld [vmem:[%s1066_s4] ss:$0 sm:$0xff] }
 0xe04   : > { %v7849_v31 = vmul.f32 %v7841_v33, %v7838_v3 }
 0xe05   : > { %v7848_v21 = vmul.f32 %v7841_v33, %v7833_v17 }
 0xe06   : > { %v7857_v5 = vadd.f32 %v7849_v31, %v11823_v22 }
 0xe07   : > { %v7856_v63 = vadd.f32 %v7848_v21, %v11821_v12 }
 0xe08   : > { %v7881_v38 = vsel %vm1265_vm2, %v7857_v5, 0.0 }
 0xe09   : > { %7882 = vadd.xlane.f32.xlu1 %v7881_v38  ;;  %v7878_v27 = vsel %vm1265_vm2, %v7856_v63, 0.0 }
 0xe0a   : > { %7879 = vadd.xlane.f32.xlu0 %v7878_v27 }
 0xe61   : > { %v7865_v51 = vpop.xlane.xlu1 %7864 }
 0xe62   : > { %v7885_v34 = vmul.f32 0.03125, %v7865_v51  ;;  %v7862_v61 = vpop.xlane.xlu0 %7861 }
 0xe63   : > { %v7884_v58 = vmul.f32 0.03125, %v7862_v61 }
 0xe64   : > { %v11866_v15 = vsub.f32 %v7851_v0, %v7885_v34 }
 0xe65   : > { %v11868_v14 = vsub.f32 %v7850_v19, %v7884_v58 }
 0xe66   : > { %v7901_v54 = vmul.f32 %v11866_v15, %v11866_v15 }
 0xe67   : > { %v7900_v12 = vmul.f32 %v11868_v14, %v11868_v14 }
 0xe68   : > { %v7911_v22 = vsel %vm1265_vm2, %v7901_v54, 0.0 }
 0xe69   : > { %7912 = vadd.xlane.f32.xlu1 %v7911_v22  ;;  %v7908_v25 = vsel %vm1265_vm2, %v7900_v12, 0.0 }
 0xe6a   : > { %v7871_v2 = vpop.xlane.xlu1 %7870  ;;  %7909 = vadd.xlane.f32.xlu0 %v7908_v25 }
 0xe6b   : > { %v7887_v18 = vmul.f32 0.03125, %v7871_v2  ;;  %v7868_v55 = vpop.xlane.xlu0 %7867 }
 0xe6c   : > { %v7886_v47 = vmul.f32 0.03125, %v7868_v55 }
 0xe6d   : > { %v11876_v43 = vsub.f32 %v7853_v60, %v7887_v18 }
 0xe6e   : > { %v11878_v24 = vsub.f32 %v7852_v48, %v7886_v47  ;;  %v7877_v10 = vpop.xlane.xlu1 %7876 }
 0xe6f   : > { %v7889_v9 = vmul.f32 0.03125, %v7877_v10  ;;  %v7874_v4 = vpop.xlane.xlu0 %7873  ;;  %v7903_v56 = vmul.f32 %v11876_v43, %v11876_v43 }
 0xe70   : > { %v7888_v20 = vmul.f32 0.03125, %v7874_v4  ;;  %v7902_v8 = vmul.f32 %v11878_v24, %v11878_v24 }
 0xe71   : > { %v11884_v16 = vsub.f32 %v7855_v50, %v7889_v9  ;;  %v7917_v42 = vsel %vm1265_vm2, %v7903_v56, 0.0 }
 0xe72   : > { %v11887_v33 = vsub.f32 %v7854_v36, %v7888_v20  ;;  %7918 = vadd.xlane.f32.xlu1 %v7917_v42  ;;  %v7914_v13 = vsel %vm1265_vm2, %v7902_v8, 0.0 }
 0xe73   : > { %7915 = vadd.xlane.f32.xlu0 %v7914_v13  ;;  %v7905_v39 = vmul.f32 %v11884_v16, %v11884_v16 }
 0xe74   : > { %v7904_v62 = vmul.f32 %v11887_v33, %v11887_v33 }
 0xe75   : > { %v7923_v49 = vsel %vm1265_vm2, %v7905_v39, 0.0 }
 0xe76   : > { %7924 = vadd.xlane.f32.xlu1 %v7923_v49  ;;  %v7920_v23 = vsel %vm1265_vm2, %v7904_v62, 0.0 }
 0xe77   : > { %7921 = vadd.xlane.f32.xlu0 %v7920_v23 }
 0xe96   : > { %v7883_v0 = vpop.xlane.xlu1 %7882 }
 0xe97   : > { %v7891_v19 = vmul.f32 0.03125, %v7883_v0  ;;  %v7880_v44 = vpop.xlane.xlu0 %7879 }
 0xe98   : > { %v7890_v57 = vmul.f32 0.03125, %v7880_v44 }
 0xe99   : > { %v11896_v11 = vsub.f32 %v7857_v5, %v7891_v19 }
 0xe9a   : > { %v11898_v53 = vsub.f32 %v7856_v63, %v7890_v57  ;;  %v8603_v63 = vld [vmem:[%s1069_s28] ss:$0 sm:$0xff] }
 0xe9b   : > { %v7907_v30 = vmul.f32 %v11896_v11, %v11896_v11 }
 0xe9c   : > { %v7906_v40 = vmul.f32 %v11898_v53, %v11898_v53 }
 0xe9d   : > { %v7929_v29 = vsel %vm1265_vm2, %v7907_v30, 0.0 }
 0xe9e   : > { %7930 = vadd.xlane.f32.xlu1 %v7929_v29  ;;  %v7926_v59 = vsel %vm1265_vm2, %v7906_v40, 0.0 }
 0xe9f   : > { %7927 = vadd.xlane.f32.xlu0 %v7926_v59 }
 0xef6   : > { %v7913_v7 = vpop.xlane.xlu1 %7912 }
 0xef7   : > { %v7933_v45 = vmul.f32 0.03125, %v7913_v7  ;;  %v7910_v37 = vpop.xlane.xlu0 %7909 }
 0xef8   : > { %v7932_v60 = vmul.f32 0.03125, %v7910_v37 }
 0xef9   : > { %v7941_v41 = vadd.f32 1e-05, %v7933_v45 }
 0xefa   : > { %v7940_v48 = vadd.f32 1e-05, %v7932_v60 }
 0xefb   : > { %9680 = vrsqrt.f32 %v7941_v41 }
 0xefc   : > { %9682 = vrsqrt.f32 %v7940_v48 }
 0xeff   : > { %v7919_v35 = vpop.xlane.xlu1 %7918 }
 0xf00   : > { %v7935_v26 = vmul.f32 0.03125, %v7919_v35  ;;  %v7916_v32 = vpop.xlane.xlu0 %7915 }
 0xf01   : > { %v7934_v1 = vmul.f32 0.03125, %v7916_v32 }
 0xf02   : > { %v7943_v50 = vadd.f32 1e-05, %v7935_v26 }
 0xf03   : > { %v7942_v36 = vadd.f32 1e-05, %v7934_v1  ;;  %v7925_v52 = vpop.xlane.xlu1 %7924 }
 0xf04   : > { %9684 = vrsqrt.f32 %v7943_v50  ;;  %v7937_v6 = vmul.f32 0.03125, %v7925_v52  ;;  %v7922_v28 = vpop.xlane.xlu0 %7921 }
 0xf05   : > { %v9681_v3 = vpop.eup %9680  ;;  %9686 = vrsqrt.f32 %v7942_v36  ;;  %v7936_v17 = vmul.f32 0.03125, %v7922_v28 }
 0xf06   : > { %v9683_v31 = vpop.eup %9682  ;;  %v7957_v21 = vmul.f32 %v9681_v3, %v11866_v15  ;;  %v7945_v5 = vadd.f32 1e-05, %v7937_v6 }
 0xf07   : > { %v7956_v38 = vmul.f32 %v9683_v31, %v11868_v14  ;;  %v7944_v27 = vadd.f32 1e-05, %v7936_v17 }
 0xf08   : > { %v7971_v51 = vmul.f32 %v8602_v46, %v7957_v21  ;;  %9688 = vrsqrt.f32 %v7945_v5 }
 0xf09   : > { %v7970_v34 = vmul.f32 %v8602_v46, %v7956_v38  ;;  %9690 = vrsqrt.f32 %v7944_v27 }
 0xf0a   : > { %v7985_v61 = vadd.f32 %v8603_v63, %v7971_v51 }
 0xf0b   : > { %v7984_v58 = vadd.f32 %v8603_v63, %v7970_v34 }
 0xf0c   : > { %7993 = vst.msk [vmem:[#allocation2 + $0x8] sm:$0xff] %vm1265_vm2, %v7985_v61  ;;  %v8011_v40 = vsel (!%p8604_p9), %vm1265_vm2, %v7985_v61, 0.0 }
 0xf0d   : > { %7992 = vst.msk [vmem:[#allocation2] sm:$0xff] %vm1265_vm2, %v7984_v58  ;;  %v8004_v30 = vsel (!%p8604_p9), %vm1265_vm2, %v7984_v58, 0.0  ;;  %v8012_v59 = vrot.slane (!%p8604_p9), %v8011_v40, 4 }
 0xf0e   : > { %v9685_v15 = vpop.eup %9684 }
 0xf0f   : > { %v9687_v54 = vpop.eup %9686  ;;  %v7959_v12 = vmul.f32 %v9685_v15, %v11876_v43  ;;  %v8013_v26 = vadd.f32 (!%p8604_p9), %v8012_v59, %v8011_v40 }
 0xf10   : > { %v7958_v22 = vmul.f32 %v9687_v54, %v11878_v24 }
 0xf11   : > { %v7973_v25 = vmul.f32 %v8602_v46, %v7959_v12  ;;  %v8014_v3 = vrot.slane (!%p8604_p9), %v8013_v26, 2 }
 0xf12   : > { %v9689_v2 = vpop.eup %9688  ;;  %v7972_v14 = vmul.f32 %v8602_v46, %v7958_v22 }
 0xf13   : > { %v9691_v18 = vpop.eup %9690  ;;  %v7987_v55 = vadd.f32 %v8603_v63, %v7973_v25  ;;  %v7961_v47 = vmul.f32 %v9689_v2, %v11884_v16  ;;  %v8015_v27 = vadd.f32 (!%p8604_p9), %v8014_v3, %v8013_v26 }
 0xf14   : > { %v7986_v10 = vadd.f32 %v8603_v63, %v7972_v14  ;;  %v7960_v9 = vmul.f32 %v9691_v18, %v11887_v33 }
 0xf15   : > { %7995 = vst.msk [vmem:[#allocation2 + $0x18] sm:$0xff] %vm1265_vm2, %v7987_v55  ;;  %v7975_v4 = vmul.f32 %v8602_v46, %v7961_v47  ;;  %v8016_v22 = vrot.slane (!%p8604_p9), %v8015_v27, 1 }
 0xf16   : > { %7994 = vst.msk [vmem:[#allocation2 + $0x10] sm:$0xff] %vm1265_vm2, %v7986_v10  ;;  %v7974_v56 = vmul.f32 %v8602_v46, %v7960_v9  ;;  %v8018_v29 = vsel (!%p8604_p9), %vm1265_vm2, %v7986_v10, 0.0 }
 0xf17   : > { %v7989_v20 = vadd.f32 %v8603_v63, %v7975_v4  ;;  %v8019_v7 = vrot.slane (!%p8604_p9), %v8018_v29, 4  ;;  %v8017_v9 = vadd.f32 (!%p8604_p9), %v8016_v22, %v8015_v27 }
 0xf18   : > { %v7988_v43 = vadd.f32 %v8603_v63, %v7974_v56 }
 0xf19   : > { %7997 = vst.msk [vmem:[#allocation2 + $0x28] sm:$0xff] %vm1265_vm2, %v7989_v20  ;;  %v8039_v60 = vsel (!%p8604_p9), %vm1265_vm2, %v7989_v20, 0.0  ;;  %v8020_v32 = vadd.f32 (!%p8604_p9), %v8019_v7, %v8018_v29 }
 0xf1a   : > { %7996 = vst.msk [vmem:[#allocation2 + $0x20] sm:$0xff] %vm1265_vm2, %v7988_v43  ;;  %v8032_v37 = vsel (!%p8604_p9), %vm1265_vm2, %v7988_v43, 0.0  ;;  %v8040_v36 = vrot.slane (!%p8604_p9), %v8039_v60, 4 }
 0xf1b   : > { %v8033_v50 = vrot.slane (!%p8604_p9), %v8032_v37, 4 }
 0xf1c   : > { %v8041_v21 = vadd.f32 (!%p8604_p9), %v8040_v36, %v8039_v60 }
 0xf1d   : > { %v8034_v31 = vadd.f32 (!%p8604_p9), %v8033_v50, %v8032_v37 }
 0xf1e   : > { %v8042_v58 = vrot.slane (!%p8604_p9), %v8041_v21, 2 }
 0xf1f   : > { %v8035_v61 = vrot.slane (!%p8604_p9), %v8034_v31, 2 }
 0xf20   : > { %v8043_v18 = vadd.f32 (!%p8604_p9), %v8042_v58, %v8041_v21 }
 0xf21   : > { %v8036_v14 = vadd.f32 (!%p8604_p9), %v8035_v61, %v8034_v31 }
 0xf22   : > { %v8044_v43 = vrot.slane (!%p8604_p9), %v8043_v18, 1 }
 0xf23   : > { %v8037_v20 = vrot.slane (!%p8604_p9), %v8036_v14, 1 }
 0xf2b   : > { %v7931_v24 = vpop.xlane.xlu1 %7930 }
 0xf2c   : > { %v7939_v8 = vmul.f32 0.03125, %v7931_v24  ;;  %v7928_v42 = vpop.xlane.xlu0 %7927 }
 0xf2d   : > { %v7938_v13 = vmul.f32 0.03125, %v7928_v42 }
 0xf2e   : > { %v7947_v16 = vadd.f32 1e-05, %v7939_v8 }
 0xf2f   : > { %v7946_v39 = vadd.f32 1e-05, %v7938_v13  ;;  %v8062_v13 = vmul.f32 (!%p8604_p9), 0.125, %v8017_v9 }
 0xf30   : > { %9692 = vrsqrt.f32 %v7947_v16  ;;  %v8038_v16 = vadd.f32 (!%p8604_p9), %v8037_v20, %v8036_v14 }
 0xf31   : > { %9694 = vrsqrt.f32 %v7946_v39  ;;  %v8045_v39 = vadd.f32 (!%p8604_p9), %v8044_v43, %v8043_v18 }
 0xf3a   : > { %v9693_v33 = vpop.eup %9692 }
 0xf3b   : > { %v9695_v62 = vpop.eup %9694  ;;  %v7963_v49 = vmul.f32 %v9693_v33, %v11896_v11  ;;  %v8025_v11 = vsel (!%p8604_p9), %vm1265_vm2, %v7987_v55, 0.0 }
 0xf3c   : > { %v7962_v23 = vmul.f32 %v9695_v62, %v11898_v53  ;;  %8003 = sbr.rel (%p8604_p9) target bundleno = 3924 (0xf54), region = 136  ;;  %v8005_v53 = vrot.slane (!%p8604_p9), %v8004_v30, 4  ;;  %v8026_v45 = vrot.slane (!%p8604_p9), %v8025_v11, 4 }
 0xf3d   : > { %v7977_v0 = vmul.f32 %v8602_v46, %v7963_v49 }
 0xf3e   : > { %v7976_v19 = vmul.f32 %v8602_v46, %v7962_v23  ;;  %v8006_v35 = vadd.f32 (!%p8604_p9), %v8005_v53, %v8004_v30  ;;  %v8027_v1 = vadd.f32 (!%p8604_p9), %v8026_v45, %v8025_v11  ;;  %v8021_v46 = vrot.slane (!%p8604_p9), %v8020_v32, 2 }
 0xf3f   : > { %v7991_v44 = vadd.f32 %v8603_v63, %v7977_v0  ;;  %v8065_v0 = vmul.f32 (!%p8604_p9), 0.125, %v8038_v16 }
 0xf40   : > { %v7990_v57 = vadd.f32 %v8603_v63, %v7976_v19  ;;  %v8007_v28 = vrot.slane (!%p8604_p9), %v8006_v35, 2  ;;  %v8028_v17 = vrot.slane (!%p8604_p9), %v8027_v1, 2  ;;  %v8022_v51 = vadd.f32 (!%p8604_p9), %v8021_v46, %v8020_v32 }
 0xf41   : > { %7999 = vst.msk [vmem:[#allocation2 + $0x38] sm:$0xff] %vm1265_vm2, %v7991_v44  ;;  %v8053_v48 = vsel (!%p8604_p9), %vm1265_vm2, %v7991_v44, 0.0  ;;  %v8066_v19 = vmul.f32 (!%p8604_p9), 0.125, %v8045_v39 }
 0xf42   : > { %7998 = vst.msk [vmem:[#allocation2 + $0x30] sm:$0xff] %vm1265_vm2, %v7990_v57  ;;  %v8046_v41 = vsel (!%p8604_p9), %vm1265_vm2, %v7990_v57, 0.0  ;;  %v8054_v6 = vrot.slane (!%p8604_p9), %v8053_v48, 4  ;;  %v8008_v38 = vadd.f32 (!%p8604_p9), %v8007_v28, %v8006_v35  ;;  %v8029_v34 = vadd.f32 (!%p8604_p9), %v8028_v17, %v8027_v1 }
 0xf43   : > { %v8047_v52 = vrot.slane %v8046_v41, 4  ;;  %v8023_v25 = vrot.slane %v8022_v51, 1 }
 0xf44   : > { %v8055_v63 = vadd.f32 %v8054_v6, %v8053_v48  ;;  %v8009_v12 = vrot.slane %v8008_v38, 1  ;;  %v8030_v2 = vrot.slane %v8029_v34, 1 }
 0xf45   : > { %v8048_v5 = vadd.f32 %v8047_v52, %v8046_v41  ;;  %v8024_v4 = vadd.f32 %v8023_v25, %v8022_v51 }
 0xf46   : > { %v8056_v54 = vrot.slane %v8055_v63, 2  ;;  %v8010_v10 = vadd.f32 %v8009_v12, %v8008_v38  ;;  %v8031_v56 = vadd.f32 %v8030_v2, %v8029_v34 }
 0xf47   : > { %v8049_v15 = vrot.slane %v8048_v5, 2  ;;  %v8063_v62 = vmul.f32 0.125, %v8024_v4 }
 0xf48   : > { %v8057_v47 = vadd.f32 %v8056_v54, %v8055_v63  ;;  %v8061_v42 = vmul.f32 0.125, %v8010_v10  ;;  %v8064_v23 = vmul.f32 0.125, %v8031_v56 }
 0xf49   : > { %v8050_v55 = vadd.f32 %v8049_v15, %v8048_v5 }
 0xf4a   : > { %v8058_v8 = vrot.slane %v8057_v47, 1  ;;  %v8078_v44 = vsel %vm8077_vm8, %v8062_v13, %v8061_v42 }
 0xf4b   : > { %v8051_v24 = vrot.slane %v8050_v55, 1  ;;  %v8080_v30 = vsel %vm8079_vm9, %v8063_v62, %v8078_v44 }
 0xf4c   : > { %v8059_v49 = vadd.f32 %v8058_v8, %v8057_v47  ;;  %v8082_v29 = vsel %vm8081_vm10, %v8064_v23, %v8080_v30 }
 0xf4d   : > { %v8052_v33 = vadd.f32 %v8051_v24, %v8050_v55  ;;  %v8084_v11 = vsel %vm8083_vm11, %v8065_v0, %v8082_v29 }
 0xf4e   : > { %v8068_v40 = vmul.f32 0.125, %v8059_v49  ;;  %v8086_v53 = vsel %vm8085_vm12, %v8066_v19, %v8084_v11 }
 0xf4f   : > { %v8067_v57 = vmul.f32 0.125, %v8052_v33 }
 0xf51   : > { %v8088_v59 = vsel %vm8087_vm13, %v8067_v57, %v8086_v53 }
 0xf52   : > { %v8090_v7 = vsel %vm8089_vm14, %v8068_v40, %v8088_v59 }
 0xf53   : > { %8092 = vst.msk [vmem:[%s1006_s25] sm:$0xff] %vm1265_vm2, %v8090_v7 }
 0xf54 PF: > { %s12207_s23 = sld [smem:[#allocation24_spill]]  ;;  %s12208_s22 = sld [smem:[#allocation20_spill]] }
 0xf55   : > { %s12209_s4 = sld [smem:[#allocation32_spill]]  ;;  %s12210_s13 = sld [smem:[#allocation78_spill]] }
 0xf56   : > { %s8107_s9 = sshll.u32 %s1006_s25, 4  ;;  %s9982_s20 = smov [#allocation13]   ;;  %s8108_s9 = int_to_ptr.vmem [resolvable:$true] %s8107_s9 }
 0xf57   : > { %s9829_s8 = scalar_lea.vmem %s8108_s9, 128  ;;  %s9833_s21 = sshll.u32 %s9982_s20, 4  ;;  %s9834_s21 = int_to_ptr.vmem [resolvable:$false] %s9833_s21 }
 0xf58   : > { %p9830_p8 = scmp.ne.s32.totalorder %s8108_s9, %s9829_s8  ;;  %s9835_s11 = scalar_lea.vmem %s9834_s21, 256 }
 0xf59   : > { %p9836_p0 = scmp.lt.s32.totalorder %s8108_s9, %s9834_s21  ;;  %p9837_p1 = scmp.lt.s32.totalorder %s9835_s11, %s9829_s8 }
 0xf5a   : > { %s8606_s28 = sshll.u32 %s12207_s23, 7  ;;  %s12211_s6 = sand.u32 1, %s12208_s22  }
 0xf5b   : > { %s11948_s3 = scalar_lea.hbm %s12210_s13, %s8606_s28  ;;  %s8094_s30 = scalar_lea.sflag [#allocation5], %s12211_s6 }
 0xf5c   : > { %p12212_p6 = scmp.ne.s32.totalorder %s12209_s4, 0  ;;  %p9838_p10 = por %p9837_p1, %p9836_p0 }
 0xf5e   : > { %p9831_p11 = pnand %p9830_p8, %p12212_p6 }
 0xf60   : > { %p9832_p13 = pneg %p9831_p11 }
 0xf62   : > { %p9839_p3 = pnand %p9838_p10, %p9832_p13 }
 0xf64   : > { %9842 = shalt.err (!%p9839_p3)
}
 0xf65   : > { %s9843_s29 = scalar_lea.hbm %s11948_s3, 128  ;;  %s9847_s26 = scalar_lea.hbm %s12210_s13, 256 }
 0xf66   : > { %p9844_p5 = scmp.ne.s32.totalorder %s11948_s3, %s9843_s29  ;;  %p9848_p2 = scmp.lt.u32.totalorder %s11948_s3, %s12210_s13 }
 0xf67   : > { %p9849_p7 = scmp.lt.u32.totalorder %s9847_s26, %s9843_s29  ;;  %p9851_p8 = scmp.lt.u32.totalorder %s9843_s29, %s11948_s3 }
 0xf68   : > { %p9845_p12 = pnand %p9844_p5, %p12212_p6 }
 0xf69   : > { %p9850_p9 = por %p9849_p7, %p9848_p2 }
 0xf6a   : > { %p9846_p4 = pneg %p9845_p12 }
 0xf6b   : > { %p9852_p11 = por %p9851_p8, %p9850_p9 }
 0xf6d   : > { %p9853_p13 = pnand %p9852_p11, %p9846_p4 }
 0xf6f   : > { %9856 = shalt.err (!%p9853_p13)
}
 0xf70   : > { %9389 = dma.vmem_to_hbm [thread:$0]  (%p12212_p6), %s8108_s9, 128, %s11948_s3, %s8094_s30  }
 0xf71 PF: > { %s12213_s24 = sld [smem:[#allocation27_spill]]  ;;  %s12214_s10 = sld [smem:[#allocation19_spill]] }
 0xf72   : > { %s12215_s2 = sld [smem:[#allocation33_spill]] }
 0xf77   : > { %p9417_p0 = scmp.ge.s32.totalorder %s12213_s24, 2  ;;  %s8119_s12 = sand.u32 1, %s12214_s10  }
 0xf78   : > { %p12216_p1 = scmp.ne.s32.totalorder %s12215_s2, 0  ;;  %s8120_s5 = scalar_lea.sflag [#allocation5], %s8119_s12 }
 0xf7a   : > { %p9409_p10 = pnand %p9417_p0, %p12216_p1 }
 0xf7c   : > { %9918 = dma.done.wait (!%p9409_p10), %s8120_s5, 128  }
 0xf7d   : > { %9920 = vsyncadd (!%p9409_p10), %s8120_s5, 4294967168  ;;  %s43_s6 = sadd.s32 1, %s12213_s24   ;;  %s12217_s3 = sld [smem:[#allocation20_spill]] }
 0xf7e   : > { %p40_p3 = scmp.ge.s32.totalorder %s43_s6, 6   ;;  %s12218_s28 = sld [smem:[#allocation21_spill]] }
 0xf7f   : > { %s12219_s29 = sld [smem:[#allocation31_spill]]  ;;  %s12220_s30 = sld [smem:[#allocation22_spill]] }
 0xf80   : > { %s12221_s4 = sld [smem:[#allocation23_spill]]  ;;  %s12222_s0 = sld [smem:[#allocation30_spill]] }
 0xf81   : > { %s12223_s23 = sld [smem:[#allocation25_spill]]  ;;  %s12224_s1 = sld [smem:[#allocation26_spill]] }
 0xf82   : > { %s12225_s5 = sld [smem:[#allocation28_spill]]  ;;  %s12226_s24 = sld [smem:[#allocation29_spill]] }
 0xf83   :  { %42 = sbr.rel (!%p40_p3) target bundleno = 37 (0x25), region = 243 }
 0xf8a   :  { %8125 = vsyncpa [#allocation4], 1 }
 0xf8b   :  { %8127 = vsyncpa [#allocation4 + $0x1], 1 }
 0xf8c   :  { %8128 = vsyncpa [#allocation9], 1 }
 0xf8d   :  { %8130 = vsyncpa [#allocation9 + $0x1], 1 }
 0xf8e   :  { %8131 = vsyncpa [#allocation12], 1 }
 0xf8f   :  { %8133 = vsyncpa [#allocation12 + $0x1], 1 }
 0xf90   :  { %8134 = vsyncpa [#allocation5], 1 }
 0xf91   :  { %8136 = vsyncpa [#allocation5 + $0x1], 1 }
 0xf92   :  { %8137 = vsyncpa [#allocation6], 1 }
 0xf93   :  { %8139 = vsyncpa [#allocation6 + $0x1], 1 }

</bundles_post_ra>
